<compile_context>
chip_gen: v6e
topology: v6e:2x2x1
jax: 0.10.0
libtpu: 0.0.40
codegen_flags: <defaults>
</compile_context>

<pallas_src>
import functools

import jax
import jax.numpy as jnp
from jax import lax
from jax.experimental import pallas as pl
from jax.experimental.pallas import tpu as pltpu  # noqa: F401  (TPU backend)

NEG_INF = -1e30  # additive mask value (avoids -inf NaN corner cases)


# ---------------------------------------------------------------------------
# In-kernel helpers (operate on values / refs already resident in VMEM)
# ---------------------------------------------------------------------------
def _mha(xq, xkv, wq, bq, wk, bk, wv, bv, wo, bo,
         *, n_batch, n_heads, head_dim, bias):
    """Multi-head attention on batch-folded slabs.

    xq: (N*Lq, E) value, xkv: (N*S, E) value; w*/b* are VMEM refs.
    Q/K/V and the output projection are single full-width matmuls; only the
    score and PV matmuls are per (batch, head).  Softmax is one pass over the
    stacked (N*heads*Lq, S) score slab.
    """
    lq = xq.shape[0] // n_batch
    s_len = xkv.shape[0] // n_batch
    scale = 1.0 / (head_dim ** 0.5)

    q = jnp.dot(xq, wq[...], preferred_element_type=jnp.float32) + bq[...]
    k = jnp.dot(xkv, wk[...], preferred_element_type=jnp.float32) + bk[...]
    v = jnp.dot(xkv, wv[...], preferred_element_type=jnp.float32) + bv[...]

    # Per-(batch, head) scores, stacked into one slab for a single softmax.
    s_tiles = []
    for n in range(n_batch):
        qn = q[n * lq:(n + 1) * lq, :]
        kn = k[n * s_len:(n + 1) * s_len, :]
        for h in range(n_heads):
            lo = h * head_dim
            hi = lo + head_dim
            st = lax.dot_general(qn[:, lo:hi], kn[:, lo:hi],
                                 (((1,), (1,)), ((), ())),
                                 preferred_element_type=jnp.float32) * scale
            if bias is not None:
                st = st + bias
            s_tiles.append(st)
    s_all = jnp.concatenate(s_tiles, axis=0)               # (N*H*Lq, S)

    m = jnp.max(s_all, axis=-1, keepdims=True)
    p = jnp.exp(s_all - m)
    p = p * pl.reciprocal(jnp.sum(p, axis=-1, keepdims=True), approx=True)

    # Per-(batch, head) PV, reassembled into one (N*Lq, E) slab -> one Wo matmul.
    rows = []
    for n in range(n_batch):
        vn = v[n * s_len:(n + 1) * s_len, :]
        heads = []
        for h in range(n_heads):
            idx = n * n_heads + h
            lo = h * head_dim
            hi = lo + head_dim
            pnh = p[idx * lq:(idx + 1) * lq, :]             # (Lq, S)
            heads.append(jnp.dot(pnh, vn[:, lo:hi],
                                 preferred_element_type=jnp.float32))
        rows.append(jnp.concatenate(heads, axis=-1))        # (Lq, E)
    attn = jnp.concatenate(rows, axis=0)                     # (N*Lq, E)
    return jnp.dot(attn, wo[...], preferred_element_type=jnp.float32) + bo[...]


def _add_layernorm(x, r, g_ref, b_ref, eps=1e-5):
    """LayerNorm(x + r) over the last dim.  x, r: (M, E) values."""
    y = x + r
    mu = jnp.mean(y, axis=-1, keepdims=True)
    var = jnp.mean(jnp.square(y - mu), axis=-1, keepdims=True)
    return (y - mu) * lax.rsqrt(var + eps) * g_ref[...] + b_ref[...]


def _ffn(x, w1_ref, b1_ref, w2_ref, b2_ref):
    """linear2(relu(linear1(x))).  x: (M, E) value."""
    h = jnp.dot(x, w1_ref[...], preferred_element_type=jnp.float32) + b1_ref[...]
    h = jnp.maximum(h, 0.0)
    return jnp.dot(h, w2_ref[...], preferred_element_type=jnp.float32) + b2_ref[...]


# ---------------------------------------------------------------------------
# Single fused kernel: encoder layer -> decoder layer -> fc_out
# ---------------------------------------------------------------------------
def _transformer_kernel(src_ref, trg_ref,
                        e_wq, e_bq, e_wk, e_bk, e_wv, e_bv, e_wo, e_bo,
                        e_ln1g, e_ln1b, e_w1, e_b1, e_w2, e_b2, e_ln2g, e_ln2b,
                        d_swq, d_sbq, d_swk, d_sbk, d_swv, d_sbv, d_swo, d_sbo,
                        d_ln1g, d_ln1b,
                        d_cwq, d_cbq, d_cwk, d_cbk, d_cwv, d_cbv, d_cwo, d_cbo,
                        d_ln2g, d_ln2b,
                        d_w1, d_b1, d_w2, d_b2, d_ln3g, d_ln3b,
                        fc_w, fc_b,
                        out_ref, *, n_heads):
    """src_ref: (N, S, E), trg_ref: (N, L, E), out_ref: (N, L, V_pad)."""
    n_batch, s_len, e = src_ref.shape
    l_len = trg_ref.shape[1]
    hd = e // n_heads

    # Leading-dim collapse -> batch folded into the M dimension (no relayout).
    src = src_ref[...].reshape(n_batch * s_len, e)
    trg = trg_ref[...].reshape(n_batch * l_len, e)

    # ---------------- encoder layer (dropout = identity) ----------------
    a = _mha(src, src, e_wq, e_bq, e_wk, e_bk, e_wv, e_bv, e_wo, e_bo,
             n_batch=n_batch, n_heads=n_heads, head_dim=hd, bias=None)
    x1 = _add_layernorm(src, a, e_ln1g, e_ln1b)
    f = _ffn(x1, e_w1, e_b1, e_w2, e_b2)
    mem = _add_layernorm(x1, f, e_ln2g, e_ln2b)          # (N*S, E), stays in VMEM

    # ---------------- decoder layer + fc_out ----------------
    # Causal bias built once, reused for every (batch, head) score tile.
    row = lax.broadcasted_iota(jnp.int32, (l_len, l_len), 0)
    col = lax.broadcasted_iota(jnp.int32, (l_len, l_len), 1)
    causal = jnp.where(col > row, NEG_INF, 0.0).astype(jnp.float32)

    sa = _mha(trg, trg, d_swq, d_sbq, d_swk, d_sbk, d_swv, d_sbv, d_swo, d_sbo,
              n_batch=n_batch, n_heads=n_heads, head_dim=hd, bias=causal)
    y1 = _add_layernorm(trg, sa, d_ln1g, d_ln1b)
    ca = _mha(y1, mem, d_cwq, d_cbq, d_cwk, d_cbk, d_cwv, d_cbv, d_cwo, d_cbo,
              n_batch=n_batch, n_heads=n_heads, head_dim=hd, bias=None)
    y2 = _add_layernorm(y1, ca, d_ln2g, d_ln2b)
    f2 = _ffn(y2, d_w1, d_b1, d_w2, d_b2)
    y3 = _add_layernorm(y2, f2, d_ln3g, d_ln3b)

    logits = jnp.dot(y3, fc_w[...], preferred_element_type=jnp.float32) + fc_b[...]
    # Lane-dense (V_pad = multiple of 128) full-slab store; no masked vst.
    out_ref[...] = logits.reshape(n_batch, l_len, -1).astype(out_ref.dtype)


# ---------------------------------------------------------------------------
# Wrapper (one pallas_call; everything lives in VMEM — no grid at these sizes)
# ---------------------------------------------------------------------------
def _r2(v):
    return v.reshape(1, -1)


def transformer_forward(params, src, trg, src_pad_idx=0, trg_pad_idx=0, *, n_heads):
    """Transformer.forward.  src:(S,N,E) trg:(L,N,E) -> (L,N,tgt_vocab)."""
    S, N, E = src.shape
    L = trg.shape[0]
    fc_w = params["fc_w"]
    fc_b = params["fc_b"]
    V = fc_w.shape[1]
    v_pad = ((V + 127) // 128) * 128          # lane-dense logits (>=128, mult of 128)
    fc_w_p = jnp.pad(fc_w, ((0, 0), (0, v_pad - V)))
    fc_b_p = jnp.pad(fc_b, ((0, v_pad - V),))

    # Tiny one-time relayout to batch-major so the kernel can collapse batch
    # into the matmul M dimension with a free leading-dim reshape.
    src_b = jnp.transpose(src, (1, 0, 2))     # (N, S, E)
    trg_b = jnp.transpose(trg, (1, 0, 2))     # (N, L, E)

    # TODO(synk): the reference builds padding masks from the float embedding
    # tensors themselves ((seq != pad_idx)) with shape-incompatible
    # broadcasting; that plumbing is not reproducible — only the intended
    # causal mask (generated in-kernel) is applied to decoder self-attention.
    enc = params["encoder"]
    dec = params["decoder"]
    esa = enc["self_attn"]
    dsa = dec["self_attn"]
    dca = dec["cross_attn"]

    logits_b = pl.pallas_call(
        functools.partial(_transformer_kernel, n_heads=n_heads),
        out_shape=jax.ShapeDtypeStruct((N, L, v_pad), jnp.float32),
    )(src_b, trg_b,
      esa["wq"], _r2(esa["bq"]), esa["wk"], _r2(esa["bk"]),
      esa["wv"], _r2(esa["bv"]), esa["wo"], _r2(esa["bo"]),
      _r2(enc["ln1_g"]), _r2(enc["ln1_b"]),
      enc["w1"], _r2(enc["b1"]), enc["w2"], _r2(enc["b2"]),
      _r2(enc["ln2_g"]), _r2(enc["ln2_b"]),
      dsa["wq"], _r2(dsa["bq"]), dsa["wk"], _r2(dsa["bk"]),
      dsa["wv"], _r2(dsa["bv"]), dsa["wo"], _r2(dsa["bo"]),
      _r2(dec["ln1_g"]), _r2(dec["ln1_b"]),
      dca["wq"], _r2(dca["bq"]), dca["wk"], _r2(dca["bk"]),
      dca["wv"], _r2(dca["bv"]), dca["wo"], _r2(dca["bo"]),
      _r2(dec["ln2_g"]), _r2(dec["ln2_b"]),
      dec["w1"], _r2(dec["b1"]), dec["w2"], _r2(dec["b2"]),
      _r2(dec["ln3_g"]), _r2(dec["ln3_b"]),
      fc_w_p, _r2(fc_b_p))

    # Strip vocab padding and return (L, N, V) to match the reference layout.
    return jnp.transpose(logits_b[..., :V], (1, 0, 2))


# ---------------------------------------------------------------------------
# Deterministic parameter init (xavier-uniform weights, zero biases).
# Weights stored as (in, out) so kernels compute x @ W + b (== PyTorch x @ W.T + b).
# ---------------------------------------------------------------------------
def _init_linear(key, fan_in, fan_out):
    limit = (6.0 / (fan_in + fan_out)) ** 0.5
    w = jax.random.uniform(key, (fan_in, fan_out), jnp.float32, -limit, limit)
    b = jnp.zeros((fan_out,), jnp.float32)
    return w, b


def _init_mha(key, e):
    ks = jax.random.split(key, 4)
    wq, bq = _init_linear(ks[0], e, e)
    wk, bk = _init_linear(ks[1], e, e)
    wv, bv = _init_linear(ks[2], e, e)
    wo, bo = _init_linear(ks[3], e, e)
    return dict(wq=wq, bq=bq, wk=wk, bk=bk, wv=wv, bv=bv, wo=wo, bo=bo)


def _init_ln(e):
    return jnp.ones((e,), jnp.float32), jnp.zeros((e,), jnp.float32)


def init_transformer(key, d_model, d_ff, tgt_vocab):
    ks = jax.random.split(key, 8)
    enc = dict(self_attn=_init_mha(ks[0], d_model))
    enc["w1"], enc["b1"] = _init_linear(ks[1], d_model, d_ff)
    enc["w2"], enc["b2"] = _init_linear(ks[2], d_ff, d_model)
    enc["ln1_g"], enc["ln1_b"] = _init_ln(d_model)
    enc["ln2_g"], enc["ln2_b"] = _init_ln(d_model)

    dec = dict(self_attn=_init_mha(ks[3], d_model),
               cross_attn=_init_mha(ks[4], d_model))
    dec["w1"], dec["b1"] = _init_linear(ks[5], d_model, d_ff)
    dec["w2"], dec["b2"] = _init_linear(ks[6], d_ff, d_model)
    dec["ln1_g"], dec["ln1_b"] = _init_ln(d_model)
    dec["ln2_g"], dec["ln2_b"] = _init_ln(d_model)
    dec["ln3_g"], dec["ln3_b"] = _init_ln(d_model)

    fc_w, fc_b = _init_linear(ks[7], d_model, tgt_vocab)
    # TODO(synk): self.pos_encoding (PositionalEncoding) is undefined in the
    # reference and never used in forward(), so it is omitted.
    return dict(encoder=enc, decoder=dec, fc_w=fc_w, fc_b=fc_b)


# ---------------------------------------------------------------------------
if __name__ == "__main__":
    D_MODEL, N_HEADS, D_FF = 32, 4, 1024          # dim_feedforward=1024 as in the module
    SRC_LEN, TGT_LEN, BATCH = 8, 8, 2
    TGT_VOCAB = 16

    key = jax.random.PRNGKey(0)
    k_params, k_src, k_trg = jax.random.split(key, 3)
    params = init_transformer(k_params, D_MODEL, D_FF, TGT_VOCAB)

    # (seq_len, batch, d_model) embeddings (batch_first=False layout)
    src = jax.random.normal(k_src, (SRC_LEN, BATCH, D_MODEL), jnp.float32)
    trg = jax.random.normal(k_trg, (TGT_LEN, BATCH, D_MODEL), jnp.float32)

    fwd = jax.jit(functools.partial(transformer_forward, n_heads=N_HEADS))
    out = fwd(params, src, trg)
    out = jax.block_until_ready(out)

    assert out.shape == (TGT_LEN, BATCH, TGT_VOCAB), out.shape
    assert bool(jnp.all(jnp.isfinite(out)))
    print("KERNEL_OK")
</pallas_src>

<mosaic_0001>
module attributes {stable_mosaic.version = 11 : i64} {
  func.func @_transformer_kernel(%arg0: memref<2x8x32xf32, #tpu.memory_space<vmem>>, %arg1: memref<2x8x32xf32, #tpu.memory_space<vmem>>, %arg2: memref<32x32xf32, #tpu.memory_space<vmem>>, %arg3: memref<1x32xf32, #tpu.memory_space<vmem>>, %arg4: memref<32x32xf32, #tpu.memory_space<vmem>>, %arg5: memref<1x32xf32, #tpu.memory_space<vmem>>, %arg6: memref<32x32xf32, #tpu.memory_space<vmem>>, %arg7: memref<1x32xf32, #tpu.memory_space<vmem>>, %arg8: memref<32x32xf32, #tpu.memory_space<vmem>>, %arg9: memref<1x32xf32, #tpu.memory_space<vmem>>, %arg10: memref<1x32xf32, #tpu.memory_space<vmem>>, %arg11: memref<1x32xf32, #tpu.memory_space<vmem>>, %arg12: memref<32x1024xf32, #tpu.memory_space<vmem>>, %arg13: memref<1x1024xf32, #tpu.memory_space<vmem>>, %arg14: memref<1024x32xf32, #tpu.memory_space<vmem>>, %arg15: memref<1x32xf32, #tpu.memory_space<vmem>>, %arg16: memref<1x32xf32, #tpu.memory_space<vmem>>, %arg17: memref<1x32xf32, #tpu.memory_space<vmem>>, %arg18: memref<32x32xf32, #tpu.memory_space<vmem>>, %arg19: memref<1x32xf32, #tpu.memory_space<vmem>>, %arg20: memref<32x32xf32, #tpu.memory_space<vmem>>, %arg21: memref<1x32xf32, #tpu.memory_space<vmem>>, %arg22: memref<32x32xf32, #tpu.memory_space<vmem>>, %arg23: memref<1x32xf32, #tpu.memory_space<vmem>>, %arg24: memref<32x32xf32, #tpu.memory_space<vmem>>, %arg25: memref<1x32xf32, #tpu.memory_space<vmem>>, %arg26: memref<1x32xf32, #tpu.memory_space<vmem>>, %arg27: memref<1x32xf32, #tpu.memory_space<vmem>>, %arg28: memref<32x32xf32, #tpu.memory_space<vmem>>, %arg29: memref<1x32xf32, #tpu.memory_space<vmem>>, %arg30: memref<32x32xf32, #tpu.memory_space<vmem>>, %arg31: memref<1x32xf32, #tpu.memory_space<vmem>>, %arg32: memref<32x32xf32, #tpu.memory_space<vmem>>, %arg33: memref<1x32xf32, #tpu.memory_space<vmem>>, %arg34: memref<32x32xf32, #tpu.memory_space<vmem>>, %arg35: memref<1x32xf32, #tpu.memory_space<vmem>>, %arg36: memref<1x32xf32, #tpu.memory_space<vmem>>, %arg37: memref<1x32xf32, #tpu.memory_space<vmem>>, %arg38: memref<32x1024xf32, #tpu.memory_space<vmem>>, %arg39: memref<1x1024xf32, #tpu.memory_space<vmem>>, %arg40: memref<1024x32xf32, #tpu.memory_space<vmem>>, %arg41: memref<1x32xf32, #tpu.memory_space<vmem>>, %arg42: memref<1x32xf32, #tpu.memory_space<vmem>>, %arg43: memref<1x32xf32, #tpu.memory_space<vmem>>, %arg44: memref<32x128xf32, #tpu.memory_space<vmem>>, %arg45: memref<1x128xf32, #tpu.memory_space<vmem>>, %arg46: memref<2x8x128xf32, #tpu.memory_space<vmem>>) attributes {dimension_semantics = [], scalar_prefetch = 0 : i64, scratch_operands = 0 : i64, tpu.core_type = #tpu.core_type<tc>} {
    %c0 = arith.constant 0 : index
    %c0_0 = arith.constant 0 : index
    %c0_1 = arith.constant 0 : index
    %0 = vector.load %arg0[%c0, %c0_0, %c0_1] : memref<2x8x32xf32, #tpu.memory_space<vmem>>, vector<2x8x32xf32>
    %1 = vector.shape_cast %0 : vector<2x8x32xf32> to vector<16x32xf32>
    %c0_2 = arith.constant 0 : index
    %c0_3 = arith.constant 0 : index
    %c0_4 = arith.constant 0 : index
    %2 = vector.load %arg1[%c0_2, %c0_3, %c0_4] : memref<2x8x32xf32, #tpu.memory_space<vmem>>, vector<2x8x32xf32>
    %3 = vector.shape_cast %2 : vector<2x8x32xf32> to vector<16x32xf32>
    %c0_5 = arith.constant 0 : index
    %c0_6 = arith.constant 0 : index
    %4 = vector.load %arg2[%c0_5, %c0_6] : memref<32x32xf32, #tpu.memory_space<vmem>>, vector<32x32xf32>
    %cst = arith.constant dense<0.000000e+00> : vector<16x32xf32>
    %5 = tpu.matmul %1, %4, %cst {dimension_numbers = #tpu.dot_dimension_numbers<[1], [0], [0], [1], [0, 0, 1, 1], [], []>} : vector<16x32xf32>, vector<32x32xf32>, vector<16x32xf32> -> vector<16x32xf32>
    %c0_7 = arith.constant 0 : index
    %c0_8 = arith.constant 0 : index
    %6 = vector.load %arg3[%c0_7, %c0_8] : memref<1x32xf32, #tpu.memory_space<vmem>>, vector<1x32xf32>
    %7 = vector.broadcast %6 : vector<1x32xf32> to vector<16x32xf32>
    %8 = arith.addf %5, %7 : vector<16x32xf32>
    %c0_9 = arith.constant 0 : index
    %c0_10 = arith.constant 0 : index
    %9 = vector.load %arg4[%c0_9, %c0_10] : memref<32x32xf32, #tpu.memory_space<vmem>>, vector<32x32xf32>
    %cst_11 = arith.constant dense<0.000000e+00> : vector<16x32xf32>
    %10 = tpu.matmul %1, %9, %cst_11 {dimension_numbers = #tpu.dot_dimension_numbers<[1], [0], [0], [1], [0, 0, 1, 1], [], []>} : vector<16x32xf32>, vector<32x32xf32>, vector<16x32xf32> -> vector<16x32xf32>
    %c0_12 = arith.constant 0 : index
    %c0_13 = arith.constant 0 : index
    %11 = vector.load %arg5[%c0_12, %c0_13] : memref<1x32xf32, #tpu.memory_space<vmem>>, vector<1x32xf32>
    %12 = vector.broadcast %11 : vector<1x32xf32> to vector<16x32xf32>
    %13 = arith.addf %10, %12 : vector<16x32xf32>
    %c0_14 = arith.constant 0 : index
    %c0_15 = arith.constant 0 : index
    %14 = vector.load %arg6[%c0_14, %c0_15] : memref<32x32xf32, #tpu.memory_space<vmem>>, vector<32x32xf32>
    %cst_16 = arith.constant dense<0.000000e+00> : vector<16x32xf32>
    %15 = tpu.matmul %1, %14, %cst_16 {dimension_numbers = #tpu.dot_dimension_numbers<[1], [0], [0], [1], [0, 0, 1, 1], [], []>} : vector<16x32xf32>, vector<32x32xf32>, vector<16x32xf32> -> vector<16x32xf32>
    %c0_17 = arith.constant 0 : index
    %c0_18 = arith.constant 0 : index
    %16 = vector.load %arg7[%c0_17, %c0_18] : memref<1x32xf32, #tpu.memory_space<vmem>>, vector<1x32xf32>
    %17 = vector.broadcast %16 : vector<1x32xf32> to vector<16x32xf32>
    %18 = arith.addf %15, %17 : vector<16x32xf32>
    %19 = vector.extract_strided_slice %8 {offsets = [0, 0], sizes = [8, 32], strides = [1, 1]} : vector<16x32xf32> to vector<8x32xf32>
    %20 = vector.extract_strided_slice %13 {offsets = [0, 0], sizes = [8, 32], strides = [1, 1]} : vector<16x32xf32> to vector<8x32xf32>
    %21 = vector.extract_strided_slice %19 {offsets = [0, 0], sizes = [8, 8], strides = [1, 1]} : vector<8x32xf32> to vector<8x8xf32>
    %22 = vector.extract_strided_slice %20 {offsets = [0, 0], sizes = [8, 8], strides = [1, 1]} : vector<8x32xf32> to vector<8x8xf32>
    %cst_19 = arith.constant dense<0.000000e+00> : vector<8x8xf32>
    %23 = tpu.matmul %21, %22, %cst_19 {dimension_numbers = #tpu.dot_dimension_numbers<[1], [1], [0], [0], [0, 0, 1, 0], [], []>} : vector<8x8xf32>, vector<8x8xf32>, vector<8x8xf32> -> vector<8x8xf32>
    %cst_20 = arith.constant 0.353553385 : f32
    %24 = vector.broadcast %cst_20 : f32 to vector<8x8xf32>
    %25 = arith.mulf %23, %24 : vector<8x8xf32>
    %26 = vector.extract_strided_slice %19 {offsets = [0, 8], sizes = [8, 8], strides = [1, 1]} : vector<8x32xf32> to vector<8x8xf32>
    %27 = vector.extract_strided_slice %20 {offsets = [0, 8], sizes = [8, 8], strides = [1, 1]} : vector<8x32xf32> to vector<8x8xf32>
    %cst_21 = arith.constant dense<0.000000e+00> : vector<8x8xf32>
    %28 = tpu.matmul %26, %27, %cst_21 {dimension_numbers = #tpu.dot_dimension_numbers<[1], [1], [0], [0], [0, 0, 1, 0], [], []>} : vector<8x8xf32>, vector<8x8xf32>, vector<8x8xf32> -> vector<8x8xf32>
    %cst_22 = arith.constant 0.353553385 : f32
    %29 = vector.broadcast %cst_22 : f32 to vector<8x8xf32>
    %30 = arith.mulf %28, %29 : vector<8x8xf32>
    %31 = vector.extract_strided_slice %19 {offsets = [0, 16], sizes = [8, 8], strides = [1, 1]} : vector<8x32xf32> to vector<8x8xf32>
    %32 = vector.extract_strided_slice %20 {offsets = [0, 16], sizes = [8, 8], strides = [1, 1]} : vector<8x32xf32> to vector<8x8xf32>
    %cst_23 = arith.constant dense<0.000000e+00> : vector<8x8xf32>
    %33 = tpu.matmul %31, %32, %cst_23 {dimension_numbers = #tpu.dot_dimension_numbers<[1], [1], [0], [0], [0, 0, 1, 0], [], []>} : vector<8x8xf32>, vector<8x8xf32>, vector<8x8xf32> -> vector<8x8xf32>
    %cst_24 = arith.constant 0.353553385 : f32
    %34 = vector.broadcast %cst_24 : f32 to vector<8x8xf32>
    %35 = arith.mulf %33, %34 : vector<8x8xf32>
    %36 = vector.extract_strided_slice %19 {offsets = [0, 24], sizes = [8, 8], strides = [1, 1]} : vector<8x32xf32> to vector<8x8xf32>
    %37 = vector.extract_strided_slice %20 {offsets = [0, 24], sizes = [8, 8], strides = [1, 1]} : vector<8x32xf32> to vector<8x8xf32>
    %cst_25 = arith.constant dense<0.000000e+00> : vector<8x8xf32>
    %38 = tpu.matmul %36, %37, %cst_25 {dimension_numbers = #tpu.dot_dimension_numbers<[1], [1], [0], [0], [0, 0, 1, 0], [], []>} : vector<8x8xf32>, vector<8x8xf32>, vector<8x8xf32> -> vector<8x8xf32>
    %cst_26 = arith.constant 0.353553385 : f32
    %39 = vector.broadcast %cst_26 : f32 to vector<8x8xf32>
    %40 = arith.mulf %38, %39 : vector<8x8xf32>
    %41 = vector.extract_strided_slice %8 {offsets = [8, 0], sizes = [8, 32], strides = [1, 1]} : vector<16x32xf32> to vector<8x32xf32>
    %42 = vector.extract_strided_slice %13 {offsets = [8, 0], sizes = [8, 32], strides = [1, 1]} : vector<16x32xf32> to vector<8x32xf32>
    %43 = vector.extract_strided_slice %41 {offsets = [0, 0], sizes = [8, 8], strides = [1, 1]} : vector<8x32xf32> to vector<8x8xf32>
    %44 = vector.extract_strided_slice %42 {offsets = [0, 0], sizes = [8, 8], strides = [1, 1]} : vector<8x32xf32> to vector<8x8xf32>
    %cst_27 = arith.constant dense<0.000000e+00> : vector<8x8xf32>
    %45 = tpu.matmul %43, %44, %cst_27 {dimension_numbers = #tpu.dot_dimension_numbers<[1], [1], [0], [0], [0, 0, 1, 0], [], []>} : vector<8x8xf32>, vector<8x8xf32>, vector<8x8xf32> -> vector<8x8xf32>
    %cst_28 = arith.constant 0.353553385 : f32
    %46 = vector.broadcast %cst_28 : f32 to vector<8x8xf32>
    %47 = arith.mulf %45, %46 : vector<8x8xf32>
    %48 = vector.extract_strided_slice %41 {offsets = [0, 8], sizes = [8, 8], strides = [1, 1]} : vector<8x32xf32> to vector<8x8xf32>
    %49 = vector.extract_strided_slice %42 {offsets = [0, 8], sizes = [8, 8], strides = [1, 1]} : vector<8x32xf32> to vector<8x8xf32>
    %cst_29 = arith.constant dense<0.000000e+00> : vector<8x8xf32>
    %50 = tpu.matmul %48, %49, %cst_29 {dimension_numbers = #tpu.dot_dimension_numbers<[1], [1], [0], [0], [0, 0, 1, 0], [], []>} : vector<8x8xf32>, vector<8x8xf32>, vector<8x8xf32> -> vector<8x8xf32>
    %cst_30 = arith.constant 0.353553385 : f32
    %51 = vector.broadcast %cst_30 : f32 to vector<8x8xf32>
    %52 = arith.mulf %50, %51 : vector<8x8xf32>
    %53 = vector.extract_strided_slice %41 {offsets = [0, 16], sizes = [8, 8], strides = [1, 1]} : vector<8x32xf32> to vector<8x8xf32>
    %54 = vector.extract_strided_slice %42 {offsets = [0, 16], sizes = [8, 8], strides = [1, 1]} : vector<8x32xf32> to vector<8x8xf32>
    %cst_31 = arith.constant dense<0.000000e+00> : vector<8x8xf32>
    %55 = tpu.matmul %53, %54, %cst_31 {dimension_numbers = #tpu.dot_dimension_numbers<[1], [1], [0], [0], [0, 0, 1, 0], [], []>} : vector<8x8xf32>, vector<8x8xf32>, vector<8x8xf32> -> vector<8x8xf32>
    %cst_32 = arith.constant 0.353553385 : f32
    %56 = vector.broadcast %cst_32 : f32 to vector<8x8xf32>
    %57 = arith.mulf %55, %56 : vector<8x8xf32>
    %58 = vector.extract_strided_slice %41 {offsets = [0, 24], sizes = [8, 8], strides = [1, 1]} : vector<8x32xf32> to vector<8x8xf32>
    %59 = vector.extract_strided_slice %42 {offsets = [0, 24], sizes = [8, 8], strides = [1, 1]} : vector<8x32xf32> to vector<8x8xf32>
    %cst_33 = arith.constant dense<0.000000e+00> : vector<8x8xf32>
    %60 = tpu.matmul %58, %59, %cst_33 {dimension_numbers = #tpu.dot_dimension_numbers<[1], [1], [0], [0], [0, 0, 1, 0], [], []>} : vector<8x8xf32>, vector<8x8xf32>, vector<8x8xf32> -> vector<8x8xf32>
    %cst_34 = arith.constant 0.353553385 : f32
    %61 = vector.broadcast %cst_34 : f32 to vector<8x8xf32>
    %62 = arith.mulf %60, %61 : vector<8x8xf32>
    %63 = tpu.concatenate %25, %30, %35, %40, %47, %52, %57, %62 in 0 : vector<8x8xf32>, vector<8x8xf32>, vector<8x8xf32>, vector<8x8xf32>, vector<8x8xf32>, vector<8x8xf32>, vector<8x8xf32>, vector<8x8xf32> -> vector<64x8xf32>
    %cst_35 = arith.constant dense<0xFF800000> : vector<64xf32>
    %64 = vector.multi_reduction <maximumf>, %63, %cst_35 [1] : vector<64x8xf32> to vector<64xf32>
    %65 = vector.shape_cast %64 : vector<64xf32> to vector<64x1xf32>
    %66 = vector.broadcast %65 : vector<64x1xf32> to vector<64x8xf32>
    %67 = arith.subf %63, %66 : vector<64x8xf32>
    %68 = math.exp %67 : vector<64x8xf32>
    %cst_36 = arith.constant dense<0.000000e+00> : vector<64xf32>
    %69 = vector.multi_reduction <add>, %68, %cst_36 [1] : vector<64x8xf32> to vector<64xf32>
    %70 = vector.shape_cast %69 : vector<64xf32> to vector<64x1xf32>
    %71 = tpu.reciprocal %70 {approx = true} : vector<64x1xf32> -> vector<64x1xf32>
    %72 = vector.broadcast %71 : vector<64x1xf32> to vector<64x8xf32>
    %73 = arith.mulf %68, %72 : vector<64x8xf32>
    %74 = vector.extract_strided_slice %18 {offsets = [0, 0], sizes = [8, 32], strides = [1, 1]} : vector<16x32xf32> to vector<8x32xf32>
    %75 = vector.extract_strided_slice %73 {offsets = [0, 0], sizes = [8, 8], strides = [1, 1]} : vector<64x8xf32> to vector<8x8xf32>
    %76 = vector.extract_strided_slice %74 {offsets = [0, 0], sizes = [8, 8], strides = [1, 1]} : vector<8x32xf32> to vector<8x8xf32>
    %cst_37 = arith.constant dense<0.000000e+00> : vector<8x8xf32>
    %77 = tpu.matmul %75, %76, %cst_37 {dimension_numbers = #tpu.dot_dimension_numbers<[1], [0], [0], [1], [0, 0, 1, 1], [], []>} : vector<8x8xf32>, vector<8x8xf32>, vector<8x8xf32> -> vector<8x8xf32>
    %78 = vector.extract_strided_slice %73 {offsets = [8, 0], sizes = [8, 8], strides = [1, 1]} : vector<64x8xf32> to vector<8x8xf32>
    %79 = vector.extract_strided_slice %74 {offsets = [0, 8], sizes = [8, 8], strides = [1, 1]} : vector<8x32xf32> to vector<8x8xf32>
    %cst_38 = arith.constant dense<0.000000e+00> : vector<8x8xf32>
    %80 = tpu.matmul %78, %79, %cst_38 {dimension_numbers = #tpu.dot_dimension_numbers<[1], [0], [0], [1], [0, 0, 1, 1], [], []>} : vector<8x8xf32>, vector<8x8xf32>, vector<8x8xf32> -> vector<8x8xf32>
    %81 = vector.extract_strided_slice %73 {offsets = [16, 0], sizes = [8, 8], strides = [1, 1]} : vector<64x8xf32> to vector<8x8xf32>
    %82 = vector.extract_strided_slice %74 {offsets = [0, 16], sizes = [8, 8], strides = [1, 1]} : vector<8x32xf32> to vector<8x8xf32>
    %cst_39 = arith.constant dense<0.000000e+00> : vector<8x8xf32>
    %83 = tpu.matmul %81, %82, %cst_39 {dimension_numbers = #tpu.dot_dimension_numbers<[1], [0], [0], [1], [0, 0, 1, 1], [], []>} : vector<8x8xf32>, vector<8x8xf32>, vector<8x8xf32> -> vector<8x8xf32>
    %84 = vector.extract_strided_slice %73 {offsets = [24, 0], sizes = [8, 8], strides = [1, 1]} : vector<64x8xf32> to vector<8x8xf32>
    %85 = vector.extract_strided_slice %74 {offsets = [0, 24], sizes = [8, 8], strides = [1, 1]} : vector<8x32xf32> to vector<8x8xf32>
    %cst_40 = arith.constant dense<0.000000e+00> : vector<8x8xf32>
    %86 = tpu.matmul %84, %85, %cst_40 {dimension_numbers = #tpu.dot_dimension_numbers<[1], [0], [0], [1], [0, 0, 1, 1], [], []>} : vector<8x8xf32>, vector<8x8xf32>, vector<8x8xf32> -> vector<8x8xf32>
    %87 = tpu.concatenate %77, %80, %83, %86 in 1 : vector<8x8xf32>, vector<8x8xf32>, vector<8x8xf32>, vector<8x8xf32> -> vector<8x32xf32>
    %88 = vector.extract_strided_slice %18 {offsets = [8, 0], sizes = [8, 32], strides = [1, 1]} : vector<16x32xf32> to vector<8x32xf32>
    %89 = vector.extract_strided_slice %73 {offsets = [32, 0], sizes = [8, 8], strides = [1, 1]} : vector<64x8xf32> to vector<8x8xf32>
    %90 = vector.extract_strided_slice %88 {offsets = [0, 0], sizes = [8, 8], strides = [1, 1]} : vector<8x32xf32> to vector<8x8xf32>
    %cst_41 = arith.constant dense<0.000000e+00> : vector<8x8xf32>
    %91 = tpu.matmul %89, %90, %cst_41 {dimension_numbers = #tpu.dot_dimension_numbers<[1], [0], [0], [1], [0, 0, 1, 1], [], []>} : vector<8x8xf32>, vector<8x8xf32>, vector<8x8xf32> -> vector<8x8xf32>
    %92 = vector.extract_strided_slice %73 {offsets = [40, 0], sizes = [8, 8], strides = [1, 1]} : vector<64x8xf32> to vector<8x8xf32>
    %93 = vector.extract_strided_slice %88 {offsets = [0, 8], sizes = [8, 8], strides = [1, 1]} : vector<8x32xf32> to vector<8x8xf32>
    %cst_42 = arith.constant dense<0.000000e+00> : vector<8x8xf32>
    %94 = tpu.matmul %92, %93, %cst_42 {dimension_numbers = #tpu.dot_dimension_numbers<[1], [0], [0], [1], [0, 0, 1, 1], [], []>} : vector<8x8xf32>, vector<8x8xf32>, vector<8x8xf32> -> vector<8x8xf32>
    %95 = vector.extract_strided_slice %73 {offsets = [48, 0], sizes = [8, 8], strides = [1, 1]} : vector<64x8xf32> to vector<8x8xf32>
    %96 = vector.extract_strided_slice %88 {offsets = [0, 16], sizes = [8, 8], strides = [1, 1]} : vector<8x32xf32> to vector<8x8xf32>
    %cst_43 = arith.constant dense<0.000000e+00> : vector<8x8xf32>
    %97 = tpu.matmul %95, %96, %cst_43 {dimension_numbers = #tpu.dot_dimension_numbers<[1], [0], [0], [1], [0, 0, 1, 1], [], []>} : vector<8x8xf32>, vector<8x8xf32>, vector<8x8xf32> -> vector<8x8xf32>
    %98 = vector.extract_strided_slice %73 {offsets = [56, 0], sizes = [8, 8], strides = [1, 1]} : vector<64x8xf32> to vector<8x8xf32>
    %99 = vector.extract_strided_slice %88 {offsets = [0, 24], sizes = [8, 8], strides = [1, 1]} : vector<8x32xf32> to vector<8x8xf32>
    %cst_44 = arith.constant dense<0.000000e+00> : vector<8x8xf32>
    %100 = tpu.matmul %98, %99, %cst_44 {dimension_numbers = #tpu.dot_dimension_numbers<[1], [0], [0], [1], [0, 0, 1, 1], [], []>} : vector<8x8xf32>, vector<8x8xf32>, vector<8x8xf32> -> vector<8x8xf32>
    %101 = tpu.concatenate %91, %94, %97, %100 in 1 : vector<8x8xf32>, vector<8x8xf32>, vector<8x8xf32>, vector<8x8xf32> -> vector<8x32xf32>
    %102 = tpu.concatenate %87, %101 in 0 : vector<8x32xf32>, vector<8x32xf32> -> vector<16x32xf32>
    %c0_45 = arith.constant 0 : index
    %c0_46 = arith.constant 0 : index
    %103 = vector.load %arg8[%c0_45, %c0_46] : memref<32x32xf32, #tpu.memory_space<vmem>>, vector<32x32xf32>
    %cst_47 = arith.constant dense<0.000000e+00> : vector<16x32xf32>
    %104 = tpu.matmul %102, %103, %cst_47 {dimension_numbers = #tpu.dot_dimension_numbers<[1], [0], [0], [1], [0, 0, 1, 1], [], []>} : vector<16x32xf32>, vector<32x32xf32>, vector<16x32xf32> -> vector<16x32xf32>
    %c0_48 = arith.constant 0 : index
    %c0_49 = arith.constant 0 : index
    %105 = vector.load %arg9[%c0_48, %c0_49] : memref<1x32xf32, #tpu.memory_space<vmem>>, vector<1x32xf32>
    %106 = vector.broadcast %105 : vector<1x32xf32> to vector<16x32xf32>
    %107 = arith.addf %104, %106 : vector<16x32xf32>
    %108 = arith.addf %1, %107 : vector<16x32xf32>
    %cst_50 = arith.constant dense<0.000000e+00> : vector<16xf32>
    %109 = vector.multi_reduction <add>, %108, %cst_50 [1] : vector<16x32xf32> to vector<16xf32>
    %110 = vector.shape_cast %109 : vector<16xf32> to vector<16x1xf32>
    %cst_51 = arith.constant 3.200000e+01 : f32
    %111 = vector.broadcast %cst_51 : f32 to vector<16x1xf32>
    %112 = arith.divf %110, %111 : vector<16x1xf32>
    %113 = vector.broadcast %112 : vector<16x1xf32> to vector<16x32xf32>
    %114 = arith.subf %108, %113 : vector<16x32xf32>
    %115 = arith.mulf %114, %114 : vector<16x32xf32>
    %cst_52 = arith.constant dense<0.000000e+00> : vector<16xf32>
    %116 = vector.multi_reduction <add>, %115, %cst_52 [1] : vector<16x32xf32> to vector<16xf32>
    %117 = vector.shape_cast %116 : vector<16xf32> to vector<16x1xf32>
    %cst_53 = arith.constant 3.200000e+01 : f32
    %118 = vector.broadcast %cst_53 : f32 to vector<16x1xf32>
    %119 = arith.divf %117, %118 : vector<16x1xf32>
    %120 = vector.broadcast %112 : vector<16x1xf32> to vector<16x32xf32>
    %121 = arith.subf %108, %120 : vector<16x32xf32>
    %cst_54 = arith.constant 9.99999974E-6 : f32
    %122 = vector.broadcast %cst_54 : f32 to vector<16x1xf32>
    %123 = arith.addf %119, %122 : vector<16x1xf32>
    %124 = math.rsqrt %123 : vector<16x1xf32>
    %125 = vector.broadcast %124 : vector<16x1xf32> to vector<16x32xf32>
    %126 = arith.mulf %121, %125 : vector<16x32xf32>
    %c0_55 = arith.constant 0 : index
    %c0_56 = arith.constant 0 : index
    %127 = vector.load %arg10[%c0_55, %c0_56] : memref<1x32xf32, #tpu.memory_space<vmem>>, vector<1x32xf32>
    %128 = vector.broadcast %127 : vector<1x32xf32> to vector<16x32xf32>
    %129 = arith.mulf %126, %128 : vector<16x32xf32>
    %c0_57 = arith.constant 0 : index
    %c0_58 = arith.constant 0 : index
    %130 = vector.load %arg11[%c0_57, %c0_58] : memref<1x32xf32, #tpu.memory_space<vmem>>, vector<1x32xf32>
    %131 = vector.broadcast %130 : vector<1x32xf32> to vector<16x32xf32>
    %132 = arith.addf %129, %131 : vector<16x32xf32>
    %c0_59 = arith.constant 0 : index
    %c0_60 = arith.constant 0 : index
    %133 = vector.load %arg12[%c0_59, %c0_60] : memref<32x1024xf32, #tpu.memory_space<vmem>>, vector<32x1024xf32>
    %cst_61 = arith.constant dense<0.000000e+00> : vector<16x1024xf32>
    %134 = tpu.matmul %132, %133, %cst_61 {dimension_numbers = #tpu.dot_dimension_numbers<[1], [0], [0], [1], [0, 0, 1, 1], [], []>} : vector<16x32xf32>, vector<32x1024xf32>, vector<16x1024xf32> -> vector<16x1024xf32>
    %c0_62 = arith.constant 0 : index
    %c0_63 = arith.constant 0 : index
    %135 = vector.load %arg13[%c0_62, %c0_63] : memref<1x1024xf32, #tpu.memory_space<vmem>>, vector<1x1024xf32>
    %136 = vector.broadcast %135 : vector<1x1024xf32> to vector<16x1024xf32>
    %137 = arith.addf %134, %136 : vector<16x1024xf32>
    %cst_64 = arith.constant 0.000000e+00 : f32
    %138 = vector.broadcast %cst_64 : f32 to vector<16x1024xf32>
    %139 = arith.maximumf %137, %138 : vector<16x1024xf32>
    %c0_65 = arith.constant 0 : index
    %c0_66 = arith.constant 0 : index
    %140 = vector.load %arg14[%c0_65, %c0_66] : memref<1024x32xf32, #tpu.memory_space<vmem>>, vector<1024x32xf32>
    %cst_67 = arith.constant dense<0.000000e+00> : vector<16x32xf32>
    %141 = tpu.matmul %139, %140, %cst_67 {dimension_numbers = #tpu.dot_dimension_numbers<[1], [0], [0], [1], [0, 0, 1, 1], [], []>} : vector<16x1024xf32>, vector<1024x32xf32>, vector<16x32xf32> -> vector<16x32xf32>
    %c0_68 = arith.constant 0 : index
    %c0_69 = arith.constant 0 : index
    %142 = vector.load %arg15[%c0_68, %c0_69] : memref<1x32xf32, #tpu.memory_space<vmem>>, vector<1x32xf32>
    %143 = vector.broadcast %142 : vector<1x32xf32> to vector<16x32xf32>
    %144 = arith.addf %141, %143 : vector<16x32xf32>
    %145 = arith.addf %132, %144 : vector<16x32xf32>
    %cst_70 = arith.constant dense<0.000000e+00> : vector<16xf32>
    %146 = vector.multi_reduction <add>, %145, %cst_70 [1] : vector<16x32xf32> to vector<16xf32>
    %147 = vector.shape_cast %146 : vector<16xf32> to vector<16x1xf32>
    %cst_71 = arith.constant 3.200000e+01 : f32
    %148 = vector.broadcast %cst_71 : f32 to vector<16x1xf32>
    %149 = arith.divf %147, %148 : vector<16x1xf32>
    %150 = vector.broadcast %149 : vector<16x1xf32> to vector<16x32xf32>
    %151 = arith.subf %145, %150 : vector<16x32xf32>
    %152 = arith.mulf %151, %151 : vector<16x32xf32>
    %cst_72 = arith.constant dense<0.000000e+00> : vector<16xf32>
    %153 = vector.multi_reduction <add>, %152, %cst_72 [1] : vector<16x32xf32> to vector<16xf32>
    %154 = vector.shape_cast %153 : vector<16xf32> to vector<16x1xf32>
    %cst_73 = arith.constant 3.200000e+01 : f32
    %155 = vector.broadcast %cst_73 : f32 to vector<16x1xf32>
    %156 = arith.divf %154, %155 : vector<16x1xf32>
    %157 = vector.broadcast %149 : vector<16x1xf32> to vector<16x32xf32>
    %158 = arith.subf %145, %157 : vector<16x32xf32>
    %cst_74 = arith.constant 9.99999974E-6 : f32
    %159 = vector.broadcast %cst_74 : f32 to vector<16x1xf32>
    %160 = arith.addf %156, %159 : vector<16x1xf32>
    %161 = math.rsqrt %160 : vector<16x1xf32>
    %162 = vector.broadcast %161 : vector<16x1xf32> to vector<16x32xf32>
    %163 = arith.mulf %158, %162 : vector<16x32xf32>
    %c0_75 = arith.constant 0 : index
    %c0_76 = arith.constant 0 : index
    %164 = vector.load %arg16[%c0_75, %c0_76] : memref<1x32xf32, #tpu.memory_space<vmem>>, vector<1x32xf32>
    %165 = vector.broadcast %164 : vector<1x32xf32> to vector<16x32xf32>
    %166 = arith.mulf %163, %165 : vector<16x32xf32>
    %c0_77 = arith.constant 0 : index
    %c0_78 = arith.constant 0 : index
    %167 = vector.load %arg17[%c0_77, %c0_78] : memref<1x32xf32, #tpu.memory_space<vmem>>, vector<1x32xf32>
    %168 = vector.broadcast %167 : vector<1x32xf32> to vector<16x32xf32>
    %169 = arith.addf %166, %168 : vector<16x32xf32>
    %170 = tpu.iota {dimensions = array<i32: 0>} : vector<8x8xi32>
    %171 = tpu.iota {dimensions = array<i32: 1>} : vector<8x8xi32>
    %172 = arith.cmpi sgt, %171, %170 : vector<8x8xi32>
    %cst_79 = arith.constant -1.000000e+30 : f32
    %cst_80 = arith.constant 0.000000e+00 : f32
    %173 = vector.broadcast %cst_79 : f32 to vector<8x8xf32>
    %174 = vector.broadcast %cst_80 : f32 to vector<8x8xf32>
    %175 = arith.select %172, %173, %174 : vector<8x8xi1>, vector<8x8xf32>
    %c0_81 = arith.constant 0 : index
    %c0_82 = arith.constant 0 : index
    %176 = vector.load %arg18[%c0_81, %c0_82] : memref<32x32xf32, #tpu.memory_space<vmem>>, vector<32x32xf32>
    %cst_83 = arith.constant dense<0.000000e+00> : vector<16x32xf32>
    %177 = tpu.matmul %3, %176, %cst_83 {dimension_numbers = #tpu.dot_dimension_numbers<[1], [0], [0], [1], [0, 0, 1, 1], [], []>} : vector<16x32xf32>, vector<32x32xf32>, vector<16x32xf32> -> vector<16x32xf32>
    %c0_84 = arith.constant 0 : index
    %c0_85 = arith.constant 0 : index
    %178 = vector.load %arg19[%c0_84, %c0_85] : memref<1x32xf32, #tpu.memory_space<vmem>>, vector<1x32xf32>
    %179 = vector.broadcast %178 : vector<1x32xf32> to vector<16x32xf32>
    %180 = arith.addf %177, %179 : vector<16x32xf32>
    %c0_86 = arith.constant 0 : index
    %c0_87 = arith.constant 0 : index
    %181 = vector.load %arg20[%c0_86, %c0_87] : memref<32x32xf32, #tpu.memory_space<vmem>>, vector<32x32xf32>
    %cst_88 = arith.constant dense<0.000000e+00> : vector<16x32xf32>
    %182 = tpu.matmul %3, %181, %cst_88 {dimension_numbers = #tpu.dot_dimension_numbers<[1], [0], [0], [1], [0, 0, 1, 1], [], []>} : vector<16x32xf32>, vector<32x32xf32>, vector<16x32xf32> -> vector<16x32xf32>
    %c0_89 = arith.constant 0 : index
    %c0_90 = arith.constant 0 : index
    %183 = vector.load %arg21[%c0_89, %c0_90] : memref<1x32xf32, #tpu.memory_space<vmem>>, vector<1x32xf32>
    %184 = vector.broadcast %183 : vector<1x32xf32> to vector<16x32xf32>
    %185 = arith.addf %182, %184 : vector<16x32xf32>
    %c0_91 = arith.constant 0 : index
    %c0_92 = arith.constant 0 : index
    %186 = vector.load %arg22[%c0_91, %c0_92] : memref<32x32xf32, #tpu.memory_space<vmem>>, vector<32x32xf32>
    %cst_93 = arith.constant dense<0.000000e+00> : vector<16x32xf32>
    %187 = tpu.matmul %3, %186, %cst_93 {dimension_numbers = #tpu.dot_dimension_numbers<[1], [0], [0], [1], [0, 0, 1, 1], [], []>} : vector<16x32xf32>, vector<32x32xf32>, vector<16x32xf32> -> vector<16x32xf32>
    %c0_94 = arith.constant 0 : index
    %c0_95 = arith.constant 0 : index
    %188 = vector.load %arg23[%c0_94, %c0_95] : memref<1x32xf32, #tpu.memory_space<vmem>>, vector<1x32xf32>
    %189 = vector.broadcast %188 : vector<1x32xf32> to vector<16x32xf32>
    %190 = arith.addf %187, %189 : vector<16x32xf32>
    %191 = vector.extract_strided_slice %180 {offsets = [0, 0], sizes = [8, 32], strides = [1, 1]} : vector<16x32xf32> to vector<8x32xf32>
    %192 = vector.extract_strided_slice %185 {offsets = [0, 0], sizes = [8, 32], strides = [1, 1]} : vector<16x32xf32> to vector<8x32xf32>
    %193 = vector.extract_strided_slice %191 {offsets = [0, 0], sizes = [8, 8], strides = [1, 1]} : vector<8x32xf32> to vector<8x8xf32>
    %194 = vector.extract_strided_slice %192 {offsets = [0, 0], sizes = [8, 8], strides = [1, 1]} : vector<8x32xf32> to vector<8x8xf32>
    %cst_96 = arith.constant dense<0.000000e+00> : vector<8x8xf32>
    %195 = tpu.matmul %193, %194, %cst_96 {dimension_numbers = #tpu.dot_dimension_numbers<[1], [1], [0], [0], [0, 0, 1, 0], [], []>} : vector<8x8xf32>, vector<8x8xf32>, vector<8x8xf32> -> vector<8x8xf32>
    %cst_97 = arith.constant 0.353553385 : f32
    %196 = vector.broadcast %cst_97 : f32 to vector<8x8xf32>
    %197 = arith.mulf %195, %196 : vector<8x8xf32>
    %198 = arith.addf %197, %175 : vector<8x8xf32>
    %199 = vector.extract_strided_slice %191 {offsets = [0, 8], sizes = [8, 8], strides = [1, 1]} : vector<8x32xf32> to vector<8x8xf32>
    %200 = vector.extract_strided_slice %192 {offsets = [0, 8], sizes = [8, 8], strides = [1, 1]} : vector<8x32xf32> to vector<8x8xf32>
    %cst_98 = arith.constant dense<0.000000e+00> : vector<8x8xf32>
    %201 = tpu.matmul %199, %200, %cst_98 {dimension_numbers = #tpu.dot_dimension_numbers<[1], [1], [0], [0], [0, 0, 1, 0], [], []>} : vector<8x8xf32>, vector<8x8xf32>, vector<8x8xf32> -> vector<8x8xf32>
    %cst_99 = arith.constant 0.353553385 : f32
    %202 = vector.broadcast %cst_99 : f32 to vector<8x8xf32>
    %203 = arith.mulf %201, %202 : vector<8x8xf32>
    %204 = arith.addf %203, %175 : vector<8x8xf32>
    %205 = vector.extract_strided_slice %191 {offsets = [0, 16], sizes = [8, 8], strides = [1, 1]} : vector<8x32xf32> to vector<8x8xf32>
    %206 = vector.extract_strided_slice %192 {offsets = [0, 16], sizes = [8, 8], strides = [1, 1]} : vector<8x32xf32> to vector<8x8xf32>
    %cst_100 = arith.constant dense<0.000000e+00> : vector<8x8xf32>
    %207 = tpu.matmul %205, %206, %cst_100 {dimension_numbers = #tpu.dot_dimension_numbers<[1], [1], [0], [0], [0, 0, 1, 0], [], []>} : vector<8x8xf32>, vector<8x8xf32>, vector<8x8xf32> -> vector<8x8xf32>
    %cst_101 = arith.constant 0.353553385 : f32
    %208 = vector.broadcast %cst_101 : f32 to vector<8x8xf32>
    %209 = arith.mulf %207, %208 : vector<8x8xf32>
    %210 = arith.addf %209, %175 : vector<8x8xf32>
    %211 = vector.extract_strided_slice %191 {offsets = [0, 24], sizes = [8, 8], strides = [1, 1]} : vector<8x32xf32> to vector<8x8xf32>
    %212 = vector.extract_strided_slice %192 {offsets = [0, 24], sizes = [8, 8], strides = [1, 1]} : vector<8x32xf32> to vector<8x8xf32>
    %cst_102 = arith.constant dense<0.000000e+00> : vector<8x8xf32>
    %213 = tpu.matmul %211, %212, %cst_102 {dimension_numbers = #tpu.dot_dimension_numbers<[1], [1], [0], [0], [0, 0, 1, 0], [], []>} : vector<8x8xf32>, vector<8x8xf32>, vector<8x8xf32> -> vector<8x8xf32>
    %cst_103 = arith.constant 0.353553385 : f32
    %214 = vector.broadcast %cst_103 : f32 to vector<8x8xf32>
    %215 = arith.mulf %213, %214 : vector<8x8xf32>
    %216 = arith.addf %215, %175 : vector<8x8xf32>
    %217 = vector.extract_strided_slice %180 {offsets = [8, 0], sizes = [8, 32], strides = [1, 1]} : vector<16x32xf32> to vector<8x32xf32>
    %218 = vector.extract_strided_slice %185 {offsets = [8, 0], sizes = [8, 32], strides = [1, 1]} : vector<16x32xf32> to vector<8x32xf32>
    %219 = vector.extract_strided_slice %217 {offsets = [0, 0], sizes = [8, 8], strides = [1, 1]} : vector<8x32xf32> to vector<8x8xf32>
    %220 = vector.extract_strided_slice %218 {offsets = [0, 0], sizes = [8, 8], strides = [1, 1]} : vector<8x32xf32> to vector<8x8xf32>
    %cst_104 = arith.constant dense<0.000000e+00> : vector<8x8xf32>
    %221 = tpu.matmul %219, %220, %cst_104 {dimension_numbers = #tpu.dot_dimension_numbers<[1], [1], [0], [0], [0, 0, 1, 0], [], []>} : vector<8x8xf32>, vector<8x8xf32>, vector<8x8xf32> -> vector<8x8xf32>
    %cst_105 = arith.constant 0.353553385 : f32
    %222 = vector.broadcast %cst_105 : f32 to vector<8x8xf32>
    %223 = arith.mulf %221, %222 : vector<8x8xf32>
    %224 = arith.addf %223, %175 : vector<8x8xf32>
    %225 = vector.extract_strided_slice %217 {offsets = [0, 8], sizes = [8, 8], strides = [1, 1]} : vector<8x32xf32> to vector<8x8xf32>
    %226 = vector.extract_strided_slice %218 {offsets = [0, 8], sizes = [8, 8], strides = [1, 1]} : vector<8x32xf32> to vector<8x8xf32>
    %cst_106 = arith.constant dense<0.000000e+00> : vector<8x8xf32>
    %227 = tpu.matmul %225, %226, %cst_106 {dimension_numbers = #tpu.dot_dimension_numbers<[1], [1], [0], [0], [0, 0, 1, 0], [], []>} : vector<8x8xf32>, vector<8x8xf32>, vector<8x8xf32> -> vector<8x8xf32>
    %cst_107 = arith.constant 0.353553385 : f32
    %228 = vector.broadcast %cst_107 : f32 to vector<8x8xf32>
    %229 = arith.mulf %227, %228 : vector<8x8xf32>
    %230 = arith.addf %229, %175 : vector<8x8xf32>
    %231 = vector.extract_strided_slice %217 {offsets = [0, 16], sizes = [8, 8], strides = [1, 1]} : vector<8x32xf32> to vector<8x8xf32>
    %232 = vector.extract_strided_slice %218 {offsets = [0, 16], sizes = [8, 8], strides = [1, 1]} : vector<8x32xf32> to vector<8x8xf32>
    %cst_108 = arith.constant dense<0.000000e+00> : vector<8x8xf32>
    %233 = tpu.matmul %231, %232, %cst_108 {dimension_numbers = #tpu.dot_dimension_numbers<[1], [1], [0], [0], [0, 0, 1, 0], [], []>} : vector<8x8xf32>, vector<8x8xf32>, vector<8x8xf32> -> vector<8x8xf32>
    %cst_109 = arith.constant 0.353553385 : f32
    %234 = vector.broadcast %cst_109 : f32 to vector<8x8xf32>
    %235 = arith.mulf %233, %234 : vector<8x8xf32>
    %236 = arith.addf %235, %175 : vector<8x8xf32>
    %237 = vector.extract_strided_slice %217 {offsets = [0, 24], sizes = [8, 8], strides = [1, 1]} : vector<8x32xf32> to vector<8x8xf32>
    %238 = vector.extract_strided_slice %218 {offsets = [0, 24], sizes = [8, 8], strides = [1, 1]} : vector<8x32xf32> to vector<8x8xf32>
    %cst_110 = arith.constant dense<0.000000e+00> : vector<8x8xf32>
    %239 = tpu.matmul %237, %238, %cst_110 {dimension_numbers = #tpu.dot_dimension_numbers<[1], [1], [0], [0], [0, 0, 1, 0], [], []>} : vector<8x8xf32>, vector<8x8xf32>, vector<8x8xf32> -> vector<8x8xf32>
    %cst_111 = arith.constant 0.353553385 : f32
    %240 = vector.broadcast %cst_111 : f32 to vector<8x8xf32>
    %241 = arith.mulf %239, %240 : vector<8x8xf32>
    %242 = arith.addf %241, %175 : vector<8x8xf32>
    %243 = tpu.concatenate %198, %204, %210, %216, %224, %230, %236, %242 in 0 : vector<8x8xf32>, vector<8x8xf32>, vector<8x8xf32>, vector<8x8xf32>, vector<8x8xf32>, vector<8x8xf32>, vector<8x8xf32>, vector<8x8xf32> -> vector<64x8xf32>
    %cst_112 = arith.constant dense<0xFF800000> : vector<64xf32>
    %244 = vector.multi_reduction <maximumf>, %243, %cst_112 [1] : vector<64x8xf32> to vector<64xf32>
    %245 = vector.shape_cast %244 : vector<64xf32> to vector<64x1xf32>
    %246 = vector.broadcast %245 : vector<64x1xf32> to vector<64x8xf32>
    %247 = arith.subf %243, %246 : vector<64x8xf32>
    %248 = math.exp %247 : vector<64x8xf32>
    %cst_113 = arith.constant dense<0.000000e+00> : vector<64xf32>
    %249 = vector.multi_reduction <add>, %248, %cst_113 [1] : vector<64x8xf32> to vector<64xf32>
    %250 = vector.shape_cast %249 : vector<64xf32> to vector<64x1xf32>
    %251 = tpu.reciprocal %250 {approx = true} : vector<64x1xf32> -> vector<64x1xf32>
    %252 = vector.broadcast %251 : vector<64x1xf32> to vector<64x8xf32>
    %253 = arith.mulf %248, %252 : vector<64x8xf32>
    %254 = vector.extract_strided_slice %190 {offsets = [0, 0], sizes = [8, 32], strides = [1, 1]} : vector<16x32xf32> to vector<8x32xf32>
    %255 = vector.extract_strided_slice %253 {offsets = [0, 0], sizes = [8, 8], strides = [1, 1]} : vector<64x8xf32> to vector<8x8xf32>
    %256 = vector.extract_strided_slice %254 {offsets = [0, 0], sizes = [8, 8], strides = [1, 1]} : vector<8x32xf32> to vector<8x8xf32>
    %cst_114 = arith.constant dense<0.000000e+00> : vector<8x8xf32>
    %257 = tpu.matmul %255, %256, %cst_114 {dimension_numbers = #tpu.dot_dimension_numbers<[1], [0], [0], [1], [0, 0, 1, 1], [], []>} : vector<8x8xf32>, vector<8x8xf32>, vector<8x8xf32> -> vector<8x8xf32>
    %258 = vector.extract_strided_slice %253 {offsets = [8, 0], sizes = [8, 8], strides = [1, 1]} : vector<64x8xf32> to vector<8x8xf32>
    %259 = vector.extract_strided_slice %254 {offsets = [0, 8], sizes = [8, 8], strides = [1, 1]} : vector<8x32xf32> to vector<8x8xf32>
    %cst_115 = arith.constant dense<0.000000e+00> : vector<8x8xf32>
    %260 = tpu.matmul %258, %259, %cst_115 {dimension_numbers = #tpu.dot_dimension_numbers<[1], [0], [0], [1], [0, 0, 1, 1], [], []>} : vector<8x8xf32>, vector<8x8xf32>, vector<8x8xf32> -> vector<8x8xf32>
    %261 = vector.extract_strided_slice %253 {offsets = [16, 0], sizes = [8, 8], strides = [1, 1]} : vector<64x8xf32> to vector<8x8xf32>
    %262 = vector.extract_strided_slice %254 {offsets = [0, 16], sizes = [8, 8], strides = [1, 1]} : vector<8x32xf32> to vector<8x8xf32>
    %cst_116 = arith.constant dense<0.000000e+00> : vector<8x8xf32>
    %263 = tpu.matmul %261, %262, %cst_116 {dimension_numbers = #tpu.dot_dimension_numbers<[1], [0], [0], [1], [0, 0, 1, 1], [], []>} : vector<8x8xf32>, vector<8x8xf32>, vector<8x8xf32> -> vector<8x8xf32>
    %264 = vector.extract_strided_slice %253 {offsets = [24, 0], sizes = [8, 8], strides = [1, 1]} : vector<64x8xf32> to vector<8x8xf32>
    %265 = vector.extract_strided_slice %254 {offsets = [0, 24], sizes = [8, 8], strides = [1, 1]} : vector<8x32xf32> to vector<8x8xf32>
    %cst_117 = arith.constant dense<0.000000e+00> : vector<8x8xf32>
    %266 = tpu.matmul %264, %265, %cst_117 {dimension_numbers = #tpu.dot_dimension_numbers<[1], [0], [0], [1], [0, 0, 1, 1], [], []>} : vector<8x8xf32>, vector<8x8xf32>, vector<8x8xf32> -> vector<8x8xf32>
    %267 = tpu.concatenate %257, %260, %263, %266 in 1 : vector<8x8xf32>, vector<8x8xf32>, vector<8x8xf32>, vector<8x8xf32> -> vector<8x32xf32>
    %268 = vector.extract_strided_slice %190 {offsets = [8, 0], sizes = [8, 32], strides = [1, 1]} : vector<16x32xf32> to vector<8x32xf32>
    %269 = vector.extract_strided_slice %253 {offsets = [32, 0], sizes = [8, 8], strides = [1, 1]} : vector<64x8xf32> to vector<8x8xf32>
    %270 = vector.extract_strided_slice %268 {offsets = [0, 0], sizes = [8, 8], strides = [1, 1]} : vector<8x32xf32> to vector<8x8xf32>
    %cst_118 = arith.constant dense<0.000000e+00> : vector<8x8xf32>
    %271 = tpu.matmul %269, %270, %cst_118 {dimension_numbers = #tpu.dot_dimension_numbers<[1], [0], [0], [1], [0, 0, 1, 1], [], []>} : vector<8x8xf32>, vector<8x8xf32>, vector<8x8xf32> -> vector<8x8xf32>
    %272 = vector.extract_strided_slice %253 {offsets = [40, 0], sizes = [8, 8], strides = [1, 1]} : vector<64x8xf32> to vector<8x8xf32>
    %273 = vector.extract_strided_slice %268 {offsets = [0, 8], sizes = [8, 8], strides = [1, 1]} : vector<8x32xf32> to vector<8x8xf32>
    %cst_119 = arith.constant dense<0.000000e+00> : vector<8x8xf32>
    %274 = tpu.matmul %272, %273, %cst_119 {dimension_numbers = #tpu.dot_dimension_numbers<[1], [0], [0], [1], [0, 0, 1, 1], [], []>} : vector<8x8xf32>, vector<8x8xf32>, vector<8x8xf32> -> vector<8x8xf32>
    %275 = vector.extract_strided_slice %253 {offsets = [48, 0], sizes = [8, 8], strides = [1, 1]} : vector<64x8xf32> to vector<8x8xf32>
    %276 = vector.extract_strided_slice %268 {offsets = [0, 16], sizes = [8, 8], strides = [1, 1]} : vector<8x32xf32> to vector<8x8xf32>
    %cst_120 = arith.constant dense<0.000000e+00> : vector<8x8xf32>
    %277 = tpu.matmul %275, %276, %cst_120 {dimension_numbers = #tpu.dot_dimension_numbers<[1], [0], [0], [1], [0, 0, 1, 1], [], []>} : vector<8x8xf32>, vector<8x8xf32>, vector<8x8xf32> -> vector<8x8xf32>
    %278 = vector.extract_strided_slice %253 {offsets = [56, 0], sizes = [8, 8], strides = [1, 1]} : vector<64x8xf32> to vector<8x8xf32>
    %279 = vector.extract_strided_slice %268 {offsets = [0, 24], sizes = [8, 8], strides = [1, 1]} : vector<8x32xf32> to vector<8x8xf32>
    %cst_121 = arith.constant dense<0.000000e+00> : vector<8x8xf32>
    %280 = tpu.matmul %278, %279, %cst_121 {dimension_numbers = #tpu.dot_dimension_numbers<[1], [0], [0], [1], [0, 0, 1, 1], [], []>} : vector<8x8xf32>, vector<8x8xf32>, vector<8x8xf32> -> vector<8x8xf32>
    %281 = tpu.concatenate %271, %274, %277, %280 in 1 : vector<8x8xf32>, vector<8x8xf32>, vector<8x8xf32>, vector<8x8xf32> -> vector<8x32xf32>
    %282 = tpu.concatenate %267, %281 in 0 : vector<8x32xf32>, vector<8x32xf32> -> vector<16x32xf32>
    %c0_122 = arith.constant 0 : index
    %c0_123 = arith.constant 0 : index
    %283 = vector.load %arg24[%c0_122, %c0_123] : memref<32x32xf32, #tpu.memory_space<vmem>>, vector<32x32xf32>
    %cst_124 = arith.constant dense<0.000000e+00> : vector<16x32xf32>
    %284 = tpu.matmul %282, %283, %cst_124 {dimension_numbers = #tpu.dot_dimension_numbers<[1], [0], [0], [1], [0, 0, 1, 1], [], []>} : vector<16x32xf32>, vector<32x32xf32>, vector<16x32xf32> -> vector<16x32xf32>
    %c0_125 = arith.constant 0 : index
    %c0_126 = arith.constant 0 : index
    %285 = vector.load %arg25[%c0_125, %c0_126] : memref<1x32xf32, #tpu.memory_space<vmem>>, vector<1x32xf32>
    %286 = vector.broadcast %285 : vector<1x32xf32> to vector<16x32xf32>
    %287 = arith.addf %284, %286 : vector<16x32xf32>
    %288 = arith.addf %3, %287 : vector<16x32xf32>
    %cst_127 = arith.constant dense<0.000000e+00> : vector<16xf32>
    %289 = vector.multi_reduction <add>, %288, %cst_127 [1] : vector<16x32xf32> to vector<16xf32>
    %290 = vector.shape_cast %289 : vector<16xf32> to vector<16x1xf32>
    %cst_128 = arith.constant 3.200000e+01 : f32
    %291 = vector.broadcast %cst_128 : f32 to vector<16x1xf32>
    %292 = arith.divf %290, %291 : vector<16x1xf32>
    %293 = vector.broadcast %292 : vector<16x1xf32> to vector<16x32xf32>
    %294 = arith.subf %288, %293 : vector<16x32xf32>
    %295 = arith.mulf %294, %294 : vector<16x32xf32>
    %cst_129 = arith.constant dense<0.000000e+00> : vector<16xf32>
    %296 = vector.multi_reduction <add>, %295, %cst_129 [1] : vector<16x32xf32> to vector<16xf32>
    %297 = vector.shape_cast %296 : vector<16xf32> to vector<16x1xf32>
    %cst_130 = arith.constant 3.200000e+01 : f32
    %298 = vector.broadcast %cst_130 : f32 to vector<16x1xf32>
    %299 = arith.divf %297, %298 : vector<16x1xf32>
    %300 = vector.broadcast %292 : vector<16x1xf32> to vector<16x32xf32>
    %301 = arith.subf %288, %300 : vector<16x32xf32>
    %cst_131 = arith.constant 9.99999974E-6 : f32
    %302 = vector.broadcast %cst_131 : f32 to vector<16x1xf32>
    %303 = arith.addf %299, %302 : vector<16x1xf32>
    %304 = math.rsqrt %303 : vector<16x1xf32>
    %305 = vector.broadcast %304 : vector<16x1xf32> to vector<16x32xf32>
    %306 = arith.mulf %301, %305 : vector<16x32xf32>
    %c0_132 = arith.constant 0 : index
    %c0_133 = arith.constant 0 : index
    %307 = vector.load %arg26[%c0_132, %c0_133] : memref<1x32xf32, #tpu.memory_space<vmem>>, vector<1x32xf32>
    %308 = vector.broadcast %307 : vector<1x32xf32> to vector<16x32xf32>
    %309 = arith.mulf %306, %308 : vector<16x32xf32>
    %c0_134 = arith.constant 0 : index
    %c0_135 = arith.constant 0 : index
    %310 = vector.load %arg27[%c0_134, %c0_135] : memref<1x32xf32, #tpu.memory_space<vmem>>, vector<1x32xf32>
    %311 = vector.broadcast %310 : vector<1x32xf32> to vector<16x32xf32>
    %312 = arith.addf %309, %311 : vector<16x32xf32>
    %c0_136 = arith.constant 0 : index
    %c0_137 = arith.constant 0 : index
    %313 = vector.load %arg28[%c0_136, %c0_137] : memref<32x32xf32, #tpu.memory_space<vmem>>, vector<32x32xf32>
    %cst_138 = arith.constant dense<0.000000e+00> : vector<16x32xf32>
    %314 = tpu.matmul %312, %313, %cst_138 {dimension_numbers = #tpu.dot_dimension_numbers<[1], [0], [0], [1], [0, 0, 1, 1], [], []>} : vector<16x32xf32>, vector<32x32xf32>, vector<16x32xf32> -> vector<16x32xf32>
    %c0_139 = arith.constant 0 : index
    %c0_140 = arith.constant 0 : index
    %315 = vector.load %arg29[%c0_139, %c0_140] : memref<1x32xf32, #tpu.memory_space<vmem>>, vector<1x32xf32>
    %316 = vector.broadcast %315 : vector<1x32xf32> to vector<16x32xf32>
    %317 = arith.addf %314, %316 : vector<16x32xf32>
    %c0_141 = arith.constant 0 : index
    %c0_142 = arith.constant 0 : index
    %318 = vector.load %arg30[%c0_141, %c0_142] : memref<32x32xf32, #tpu.memory_space<vmem>>, vector<32x32xf32>
    %cst_143 = arith.constant dense<0.000000e+00> : vector<16x32xf32>
    %319 = tpu.matmul %169, %318, %cst_143 {dimension_numbers = #tpu.dot_dimension_numbers<[1], [0], [0], [1], [0, 0, 1, 1], [], []>} : vector<16x32xf32>, vector<32x32xf32>, vector<16x32xf32> -> vector<16x32xf32>
    %c0_144 = arith.constant 0 : index
    %c0_145 = arith.constant 0 : index
    %320 = vector.load %arg31[%c0_144, %c0_145] : memref<1x32xf32, #tpu.memory_space<vmem>>, vector<1x32xf32>
    %321 = vector.broadcast %320 : vector<1x32xf32> to vector<16x32xf32>
    %322 = arith.addf %319, %321 : vector<16x32xf32>
    %c0_146 = arith.constant 0 : index
    %c0_147 = arith.constant 0 : index
    %323 = vector.load %arg32[%c0_146, %c0_147] : memref<32x32xf32, #tpu.memory_space<vmem>>, vector<32x32xf32>
    %cst_148 = arith.constant dense<0.000000e+00> : vector<16x32xf32>
    %324 = tpu.matmul %169, %323, %cst_148 {dimension_numbers = #tpu.dot_dimension_numbers<[1], [0], [0], [1], [0, 0, 1, 1], [], []>} : vector<16x32xf32>, vector<32x32xf32>, vector<16x32xf32> -> vector<16x32xf32>
    %c0_149 = arith.constant 0 : index
    %c0_150 = arith.constant 0 : index
    %325 = vector.load %arg33[%c0_149, %c0_150] : memref<1x32xf32, #tpu.memory_space<vmem>>, vector<1x32xf32>
    %326 = vector.broadcast %325 : vector<1x32xf32> to vector<16x32xf32>
    %327 = arith.addf %324, %326 : vector<16x32xf32>
    %328 = vector.extract_strided_slice %317 {offsets = [0, 0], sizes = [8, 32], strides = [1, 1]} : vector<16x32xf32> to vector<8x32xf32>
    %329 = vector.extract_strided_slice %322 {offsets = [0, 0], sizes = [8, 32], strides = [1, 1]} : vector<16x32xf32> to vector<8x32xf32>
    %330 = vector.extract_strided_slice %328 {offsets = [0, 0], sizes = [8, 8], strides = [1, 1]} : vector<8x32xf32> to vector<8x8xf32>
    %331 = vector.extract_strided_slice %329 {offsets = [0, 0], sizes = [8, 8], strides = [1, 1]} : vector<8x32xf32> to vector<8x8xf32>
    %cst_151 = arith.constant dense<0.000000e+00> : vector<8x8xf32>
    %332 = tpu.matmul %330, %331, %cst_151 {dimension_numbers = #tpu.dot_dimension_numbers<[1], [1], [0], [0], [0, 0, 1, 0], [], []>} : vector<8x8xf32>, vector<8x8xf32>, vector<8x8xf32> -> vector<8x8xf32>
    %cst_152 = arith.constant 0.353553385 : f32
    %333 = vector.broadcast %cst_152 : f32 to vector<8x8xf32>
    %334 = arith.mulf %332, %333 : vector<8x8xf32>
    %335 = vector.extract_strided_slice %328 {offsets = [0, 8], sizes = [8, 8], strides = [1, 1]} : vector<8x32xf32> to vector<8x8xf32>
    %336 = vector.extract_strided_slice %329 {offsets = [0, 8], sizes = [8, 8], strides = [1, 1]} : vector<8x32xf32> to vector<8x8xf32>
    %cst_153 = arith.constant dense<0.000000e+00> : vector<8x8xf32>
    %337 = tpu.matmul %335, %336, %cst_153 {dimension_numbers = #tpu.dot_dimension_numbers<[1], [1], [0], [0], [0, 0, 1, 0], [], []>} : vector<8x8xf32>, vector<8x8xf32>, vector<8x8xf32> -> vector<8x8xf32>
    %cst_154 = arith.constant 0.353553385 : f32
    %338 = vector.broadcast %cst_154 : f32 to vector<8x8xf32>
    %339 = arith.mulf %337, %338 : vector<8x8xf32>
    %340 = vector.extract_strided_slice %328 {offsets = [0, 16], sizes = [8, 8], strides = [1, 1]} : vector<8x32xf32> to vector<8x8xf32>
    %341 = vector.extract_strided_slice %329 {offsets = [0, 16], sizes = [8, 8], strides = [1, 1]} : vector<8x32xf32> to vector<8x8xf32>
    %cst_155 = arith.constant dense<0.000000e+00> : vector<8x8xf32>
    %342 = tpu.matmul %340, %341, %cst_155 {dimension_numbers = #tpu.dot_dimension_numbers<[1], [1], [0], [0], [0, 0, 1, 0], [], []>} : vector<8x8xf32>, vector<8x8xf32>, vector<8x8xf32> -> vector<8x8xf32>
    %cst_156 = arith.constant 0.353553385 : f32
    %343 = vector.broadcast %cst_156 : f32 to vector<8x8xf32>
    %344 = arith.mulf %342, %343 : vector<8x8xf32>
    %345 = vector.extract_strided_slice %328 {offsets = [0, 24], sizes = [8, 8], strides = [1, 1]} : vector<8x32xf32> to vector<8x8xf32>
    %346 = vector.extract_strided_slice %329 {offsets = [0, 24], sizes = [8, 8], strides = [1, 1]} : vector<8x32xf32> to vector<8x8xf32>
    %cst_157 = arith.constant dense<0.000000e+00> : vector<8x8xf32>
    %347 = tpu.matmul %345, %346, %cst_157 {dimension_numbers = #tpu.dot_dimension_numbers<[1], [1], [0], [0], [0, 0, 1, 0], [], []>} : vector<8x8xf32>, vector<8x8xf32>, vector<8x8xf32> -> vector<8x8xf32>
    %cst_158 = arith.constant 0.353553385 : f32
    %348 = vector.broadcast %cst_158 : f32 to vector<8x8xf32>
    %349 = arith.mulf %347, %348 : vector<8x8xf32>
    %350 = vector.extract_strided_slice %317 {offsets = [8, 0], sizes = [8, 32], strides = [1, 1]} : vector<16x32xf32> to vector<8x32xf32>
    %351 = vector.extract_strided_slice %322 {offsets = [8, 0], sizes = [8, 32], strides = [1, 1]} : vector<16x32xf32> to vector<8x32xf32>
    %352 = vector.extract_strided_slice %350 {offsets = [0, 0], sizes = [8, 8], strides = [1, 1]} : vector<8x32xf32> to vector<8x8xf32>
    %353 = vector.extract_strided_slice %351 {offsets = [0, 0], sizes = [8, 8], strides = [1, 1]} : vector<8x32xf32> to vector<8x8xf32>
    %cst_159 = arith.constant dense<0.000000e+00> : vector<8x8xf32>
    %354 = tpu.matmul %352, %353, %cst_159 {dimension_numbers = #tpu.dot_dimension_numbers<[1], [1], [0], [0], [0, 0, 1, 0], [], []>} : vector<8x8xf32>, vector<8x8xf32>, vector<8x8xf32> -> vector<8x8xf32>
    %cst_160 = arith.constant 0.353553385 : f32
    %355 = vector.broadcast %cst_160 : f32 to vector<8x8xf32>
    %356 = arith.mulf %354, %355 : vector<8x8xf32>
    %357 = vector.extract_strided_slice %350 {offsets = [0, 8], sizes = [8, 8], strides = [1, 1]} : vector<8x32xf32> to vector<8x8xf32>
    %358 = vector.extract_strided_slice %351 {offsets = [0, 8], sizes = [8, 8], strides = [1, 1]} : vector<8x32xf32> to vector<8x8xf32>
    %cst_161 = arith.constant dense<0.000000e+00> : vector<8x8xf32>
    %359 = tpu.matmul %357, %358, %cst_161 {dimension_numbers = #tpu.dot_dimension_numbers<[1], [1], [0], [0], [0, 0, 1, 0], [], []>} : vector<8x8xf32>, vector<8x8xf32>, vector<8x8xf32> -> vector<8x8xf32>
    %cst_162 = arith.constant 0.353553385 : f32
    %360 = vector.broadcast %cst_162 : f32 to vector<8x8xf32>
    %361 = arith.mulf %359, %360 : vector<8x8xf32>
    %362 = vector.extract_strided_slice %350 {offsets = [0, 16], sizes = [8, 8], strides = [1, 1]} : vector<8x32xf32> to vector<8x8xf32>
    %363 = vector.extract_strided_slice %351 {offsets = [0, 16], sizes = [8, 8], strides = [1, 1]} : vector<8x32xf32> to vector<8x8xf32>
    %cst_163 = arith.constant dense<0.000000e+00> : vector<8x8xf32>
    %364 = tpu.matmul %362, %363, %cst_163 {dimension_numbers = #tpu.dot_dimension_numbers<[1], [1], [0], [0], [0, 0, 1, 0], [], []>} : vector<8x8xf32>, vector<8x8xf32>, vector<8x8xf32> -> vector<8x8xf32>
    %cst_164 = arith.constant 0.353553385 : f32
    %365 = vector.broadcast %cst_164 : f32 to vector<8x8xf32>
    %366 = arith.mulf %364, %365 : vector<8x8xf32>
    %367 = vector.extract_strided_slice %350 {offsets = [0, 24], sizes = [8, 8], strides = [1, 1]} : vector<8x32xf32> to vector<8x8xf32>
    %368 = vector.extract_strided_slice %351 {offsets = [0, 24], sizes = [8, 8], strides = [1, 1]} : vector<8x32xf32> to vector<8x8xf32>
    %cst_165 = arith.constant dense<0.000000e+00> : vector<8x8xf32>
    %369 = tpu.matmul %367, %368, %cst_165 {dimension_numbers = #tpu.dot_dimension_numbers<[1], [1], [0], [0], [0, 0, 1, 0], [], []>} : vector<8x8xf32>, vector<8x8xf32>, vector<8x8xf32> -> vector<8x8xf32>
    %cst_166 = arith.constant 0.353553385 : f32
    %370 = vector.broadcast %cst_166 : f32 to vector<8x8xf32>
    %371 = arith.mulf %369, %370 : vector<8x8xf32>
    %372 = tpu.concatenate %334, %339, %344, %349, %356, %361, %366, %371 in 0 : vector<8x8xf32>, vector<8x8xf32>, vector<8x8xf32>, vector<8x8xf32>, vector<8x8xf32>, vector<8x8xf32>, vector<8x8xf32>, vector<8x8xf32> -> vector<64x8xf32>
    %cst_167 = arith.constant dense<0xFF800000> : vector<64xf32>
    %373 = vector.multi_reduction <maximumf>, %372, %cst_167 [1] : vector<64x8xf32> to vector<64xf32>
    %374 = vector.shape_cast %373 : vector<64xf32> to vector<64x1xf32>
    %375 = vector.broadcast %374 : vector<64x1xf32> to vector<64x8xf32>
    %376 = arith.subf %372, %375 : vector<64x8xf32>
    %377 = math.exp %376 : vector<64x8xf32>
    %cst_168 = arith.constant dense<0.000000e+00> : vector<64xf32>
    %378 = vector.multi_reduction <add>, %377, %cst_168 [1] : vector<64x8xf32> to vector<64xf32>
    %379 = vector.shape_cast %378 : vector<64xf32> to vector<64x1xf32>
    %380 = tpu.reciprocal %379 {approx = true} : vector<64x1xf32> -> vector<64x1xf32>
    %381 = vector.broadcast %380 : vector<64x1xf32> to vector<64x8xf32>
    %382 = arith.mulf %377, %381 : vector<64x8xf32>
    %383 = vector.extract_strided_slice %327 {offsets = [0, 0], sizes = [8, 32], strides = [1, 1]} : vector<16x32xf32> to vector<8x32xf32>
    %384 = vector.extract_strided_slice %382 {offsets = [0, 0], sizes = [8, 8], strides = [1, 1]} : vector<64x8xf32> to vector<8x8xf32>
    %385 = vector.extract_strided_slice %383 {offsets = [0, 0], sizes = [8, 8], strides = [1, 1]} : vector<8x32xf32> to vector<8x8xf32>
    %cst_169 = arith.constant dense<0.000000e+00> : vector<8x8xf32>
    %386 = tpu.matmul %384, %385, %cst_169 {dimension_numbers = #tpu.dot_dimension_numbers<[1], [0], [0], [1], [0, 0, 1, 1], [], []>} : vector<8x8xf32>, vector<8x8xf32>, vector<8x8xf32> -> vector<8x8xf32>
    %387 = vector.extract_strided_slice %382 {offsets = [8, 0], sizes = [8, 8], strides = [1, 1]} : vector<64x8xf32> to vector<8x8xf32>
    %388 = vector.extract_strided_slice %383 {offsets = [0, 8], sizes = [8, 8], strides = [1, 1]} : vector<8x32xf32> to vector<8x8xf32>
    %cst_170 = arith.constant dense<0.000000e+00> : vector<8x8xf32>
    %389 = tpu.matmul %387, %388, %cst_170 {dimension_numbers = #tpu.dot_dimension_numbers<[1], [0], [0], [1], [0, 0, 1, 1], [], []>} : vector<8x8xf32>, vector<8x8xf32>, vector<8x8xf32> -> vector<8x8xf32>
    %390 = vector.extract_strided_slice %382 {offsets = [16, 0], sizes = [8, 8], strides = [1, 1]} : vector<64x8xf32> to vector<8x8xf32>
    %391 = vector.extract_strided_slice %383 {offsets = [0, 16], sizes = [8, 8], strides = [1, 1]} : vector<8x32xf32> to vector<8x8xf32>
    %cst_171 = arith.constant dense<0.000000e+00> : vector<8x8xf32>
    %392 = tpu.matmul %390, %391, %cst_171 {dimension_numbers = #tpu.dot_dimension_numbers<[1], [0], [0], [1], [0, 0, 1, 1], [], []>} : vector<8x8xf32>, vector<8x8xf32>, vector<8x8xf32> -> vector<8x8xf32>
    %393 = vector.extract_strided_slice %382 {offsets = [24, 0], sizes = [8, 8], strides = [1, 1]} : vector<64x8xf32> to vector<8x8xf32>
    %394 = vector.extract_strided_slice %383 {offsets = [0, 24], sizes = [8, 8], strides = [1, 1]} : vector<8x32xf32> to vector<8x8xf32>
    %cst_172 = arith.constant dense<0.000000e+00> : vector<8x8xf32>
    %395 = tpu.matmul %393, %394, %cst_172 {dimension_numbers = #tpu.dot_dimension_numbers<[1], [0], [0], [1], [0, 0, 1, 1], [], []>} : vector<8x8xf32>, vector<8x8xf32>, vector<8x8xf32> -> vector<8x8xf32>
    %396 = tpu.concatenate %386, %389, %392, %395 in 1 : vector<8x8xf32>, vector<8x8xf32>, vector<8x8xf32>, vector<8x8xf32> -> vector<8x32xf32>
    %397 = vector.extract_strided_slice %327 {offsets = [8, 0], sizes = [8, 32], strides = [1, 1]} : vector<16x32xf32> to vector<8x32xf32>
    %398 = vector.extract_strided_slice %382 {offsets = [32, 0], sizes = [8, 8], strides = [1, 1]} : vector<64x8xf32> to vector<8x8xf32>
    %399 = vector.extract_strided_slice %397 {offsets = [0, 0], sizes = [8, 8], strides = [1, 1]} : vector<8x32xf32> to vector<8x8xf32>
    %cst_173 = arith.constant dense<0.000000e+00> : vector<8x8xf32>
    %400 = tpu.matmul %398, %399, %cst_173 {dimension_numbers = #tpu.dot_dimension_numbers<[1], [0], [0], [1], [0, 0, 1, 1], [], []>} : vector<8x8xf32>, vector<8x8xf32>, vector<8x8xf32> -> vector<8x8xf32>
    %401 = vector.extract_strided_slice %382 {offsets = [40, 0], sizes = [8, 8], strides = [1, 1]} : vector<64x8xf32> to vector<8x8xf32>
    %402 = vector.extract_strided_slice %397 {offsets = [0, 8], sizes = [8, 8], strides = [1, 1]} : vector<8x32xf32> to vector<8x8xf32>
    %cst_174 = arith.constant dense<0.000000e+00> : vector<8x8xf32>
    %403 = tpu.matmul %401, %402, %cst_174 {dimension_numbers = #tpu.dot_dimension_numbers<[1], [0], [0], [1], [0, 0, 1, 1], [], []>} : vector<8x8xf32>, vector<8x8xf32>, vector<8x8xf32> -> vector<8x8xf32>
    %404 = vector.extract_strided_slice %382 {offsets = [48, 0], sizes = [8, 8], strides = [1, 1]} : vector<64x8xf32> to vector<8x8xf32>
    %405 = vector.extract_strided_slice %397 {offsets = [0, 16], sizes = [8, 8], strides = [1, 1]} : vector<8x32xf32> to vector<8x8xf32>
    %cst_175 = arith.constant dense<0.000000e+00> : vector<8x8xf32>
    %406 = tpu.matmul %404, %405, %cst_175 {dimension_numbers = #tpu.dot_dimension_numbers<[1], [0], [0], [1], [0, 0, 1, 1], [], []>} : vector<8x8xf32>, vector<8x8xf32>, vector<8x8xf32> -> vector<8x8xf32>
    %407 = vector.extract_strided_slice %382 {offsets = [56, 0], sizes = [8, 8], strides = [1, 1]} : vector<64x8xf32> to vector<8x8xf32>
    %408 = vector.extract_strided_slice %397 {offsets = [0, 24], sizes = [8, 8], strides = [1, 1]} : vector<8x32xf32> to vector<8x8xf32>
    %cst_176 = arith.constant dense<0.000000e+00> : vector<8x8xf32>
    %409 = tpu.matmul %407, %408, %cst_176 {dimension_numbers = #tpu.dot_dimension_numbers<[1], [0], [0], [1], [0, 0, 1, 1], [], []>} : vector<8x8xf32>, vector<8x8xf32>, vector<8x8xf32> -> vector<8x8xf32>
    %410 = tpu.concatenate %400, %403, %406, %409 in 1 : vector<8x8xf32>, vector<8x8xf32>, vector<8x8xf32>, vector<8x8xf32> -> vector<8x32xf32>
    %411 = tpu.concatenate %396, %410 in 0 : vector<8x32xf32>, vector<8x32xf32> -> vector<16x32xf32>
    %c0_177 = arith.constant 0 : index
    %c0_178 = arith.constant 0 : index
    %412 = vector.load %arg34[%c0_177, %c0_178] : memref<32x32xf32, #tpu.memory_space<vmem>>, vector<32x32xf32>
    %cst_179 = arith.constant dense<0.000000e+00> : vector<16x32xf32>
    %413 = tpu.matmul %411, %412, %cst_179 {dimension_numbers = #tpu.dot_dimension_numbers<[1], [0], [0], [1], [0, 0, 1, 1], [], []>} : vector<16x32xf32>, vector<32x32xf32>, vector<16x32xf32> -> vector<16x32xf32>
    %c0_180 = arith.constant 0 : index
    %c0_181 = arith.constant 0 : index
    %414 = vector.load %arg35[%c0_180, %c0_181] : memref<1x32xf32, #tpu.memory_space<vmem>>, vector<1x32xf32>
    %415 = vector.broadcast %414 : vector<1x32xf32> to vector<16x32xf32>
    %416 = arith.addf %413, %415 : vector<16x32xf32>
    %417 = arith.addf %312, %416 : vector<16x32xf32>
    %cst_182 = arith.constant dense<0.000000e+00> : vector<16xf32>
    %418 = vector.multi_reduction <add>, %417, %cst_182 [1] : vector<16x32xf32> to vector<16xf32>
    %419 = vector.shape_cast %418 : vector<16xf32> to vector<16x1xf32>
    %cst_183 = arith.constant 3.200000e+01 : f32
    %420 = vector.broadcast %cst_183 : f32 to vector<16x1xf32>
    %421 = arith.divf %419, %420 : vector<16x1xf32>
    %422 = vector.broadcast %421 : vector<16x1xf32> to vector<16x32xf32>
    %423 = arith.subf %417, %422 : vector<16x32xf32>
    %424 = arith.mulf %423, %423 : vector<16x32xf32>
    %cst_184 = arith.constant dense<0.000000e+00> : vector<16xf32>
    %425 = vector.multi_reduction <add>, %424, %cst_184 [1] : vector<16x32xf32> to vector<16xf32>
    %426 = vector.shape_cast %425 : vector<16xf32> to vector<16x1xf32>
    %cst_185 = arith.constant 3.200000e+01 : f32
    %427 = vector.broadcast %cst_185 : f32 to vector<16x1xf32>
    %428 = arith.divf %426, %427 : vector<16x1xf32>
    %429 = vector.broadcast %421 : vector<16x1xf32> to vector<16x32xf32>
    %430 = arith.subf %417, %429 : vector<16x32xf32>
    %cst_186 = arith.constant 9.99999974E-6 : f32
    %431 = vector.broadcast %cst_186 : f32 to vector<16x1xf32>
    %432 = arith.addf %428, %431 : vector<16x1xf32>
    %433 = math.rsqrt %432 : vector<16x1xf32>
    %434 = vector.broadcast %433 : vector<16x1xf32> to vector<16x32xf32>
    %435 = arith.mulf %430, %434 : vector<16x32xf32>
    %c0_187 = arith.constant 0 : index
    %c0_188 = arith.constant 0 : index
    %436 = vector.load %arg36[%c0_187, %c0_188] : memref<1x32xf32, #tpu.memory_space<vmem>>, vector<1x32xf32>
    %437 = vector.broadcast %436 : vector<1x32xf32> to vector<16x32xf32>
    %438 = arith.mulf %435, %437 : vector<16x32xf32>
    %c0_189 = arith.constant 0 : index
    %c0_190 = arith.constant 0 : index
    %439 = vector.load %arg37[%c0_189, %c0_190] : memref<1x32xf32, #tpu.memory_space<vmem>>, vector<1x32xf32>
    %440 = vector.broadcast %439 : vector<1x32xf32> to vector<16x32xf32>
    %441 = arith.addf %438, %440 : vector<16x32xf32>
    %c0_191 = arith.constant 0 : index
    %c0_192 = arith.constant 0 : index
    %442 = vector.load %arg38[%c0_191, %c0_192] : memref<32x1024xf32, #tpu.memory_space<vmem>>, vector<32x1024xf32>
    %cst_193 = arith.constant dense<0.000000e+00> : vector<16x1024xf32>
    %443 = tpu.matmul %441, %442, %cst_193 {dimension_numbers = #tpu.dot_dimension_numbers<[1], [0], [0], [1], [0, 0, 1, 1], [], []>} : vector<16x32xf32>, vector<32x1024xf32>, vector<16x1024xf32> -> vector<16x1024xf32>
    %c0_194 = arith.constant 0 : index
    %c0_195 = arith.constant 0 : index
    %444 = vector.load %arg39[%c0_194, %c0_195] : memref<1x1024xf32, #tpu.memory_space<vmem>>, vector<1x1024xf32>
    %445 = vector.broadcast %444 : vector<1x1024xf32> to vector<16x1024xf32>
    %446 = arith.addf %443, %445 : vector<16x1024xf32>
    %cst_196 = arith.constant 0.000000e+00 : f32
    %447 = vector.broadcast %cst_196 : f32 to vector<16x1024xf32>
    %448 = arith.maximumf %446, %447 : vector<16x1024xf32>
    %c0_197 = arith.constant 0 : index
    %c0_198 = arith.constant 0 : index
    %449 = vector.load %arg40[%c0_197, %c0_198] : memref<1024x32xf32, #tpu.memory_space<vmem>>, vector<1024x32xf32>
    %cst_199 = arith.constant dense<0.000000e+00> : vector<16x32xf32>
    %450 = tpu.matmul %448, %449, %cst_199 {dimension_numbers = #tpu.dot_dimension_numbers<[1], [0], [0], [1], [0, 0, 1, 1], [], []>} : vector<16x1024xf32>, vector<1024x32xf32>, vector<16x32xf32> -> vector<16x32xf32>
    %c0_200 = arith.constant 0 : index
    %c0_201 = arith.constant 0 : index
    %451 = vector.load %arg41[%c0_200, %c0_201] : memref<1x32xf32, #tpu.memory_space<vmem>>, vector<1x32xf32>
    %452 = vector.broadcast %451 : vector<1x32xf32> to vector<16x32xf32>
    %453 = arith.addf %450, %452 : vector<16x32xf32>
    %454 = arith.addf %441, %453 : vector<16x32xf32>
    %cst_202 = arith.constant dense<0.000000e+00> : vector<16xf32>
    %455 = vector.multi_reduction <add>, %454, %cst_202 [1] : vector<16x32xf32> to vector<16xf32>
    %456 = vector.shape_cast %455 : vector<16xf32> to vector<16x1xf32>
    %cst_203 = arith.constant 3.200000e+01 : f32
    %457 = vector.broadcast %cst_203 : f32 to vector<16x1xf32>
    %458 = arith.divf %456, %457 : vector<16x1xf32>
    %459 = vector.broadcast %458 : vector<16x1xf32> to vector<16x32xf32>
    %460 = arith.subf %454, %459 : vector<16x32xf32>
    %461 = arith.mulf %460, %460 : vector<16x32xf32>
    %cst_204 = arith.constant dense<0.000000e+00> : vector<16xf32>
    %462 = vector.multi_reduction <add>, %461, %cst_204 [1] : vector<16x32xf32> to vector<16xf32>
    %463 = vector.shape_cast %462 : vector<16xf32> to vector<16x1xf32>
    %cst_205 = arith.constant 3.200000e+01 : f32
    %464 = vector.broadcast %cst_205 : f32 to vector<16x1xf32>
    %465 = arith.divf %463, %464 : vector<16x1xf32>
    %466 = vector.broadcast %458 : vector<16x1xf32> to vector<16x32xf32>
    %467 = arith.subf %454, %466 : vector<16x32xf32>
    %cst_206 = arith.constant 9.99999974E-6 : f32
    %468 = vector.broadcast %cst_206 : f32 to vector<16x1xf32>
    %469 = arith.addf %465, %468 : vector<16x1xf32>
    %470 = math.rsqrt %469 : vector<16x1xf32>
    %471 = vector.broadcast %470 : vector<16x1xf32> to vector<16x32xf32>
    %472 = arith.mulf %467, %471 : vector<16x32xf32>
    %c0_207 = arith.constant 0 : index
    %c0_208 = arith.constant 0 : index
    %473 = vector.load %arg42[%c0_207, %c0_208] : memref<1x32xf32, #tpu.memory_space<vmem>>, vector<1x32xf32>
    %474 = vector.broadcast %473 : vector<1x32xf32> to vector<16x32xf32>
    %475 = arith.mulf %472, %474 : vector<16x32xf32>
    %c0_209 = arith.constant 0 : index
    %c0_210 = arith.constant 0 : index
    %476 = vector.load %arg43[%c0_209, %c0_210] : memref<1x32xf32, #tpu.memory_space<vmem>>, vector<1x32xf32>
    %477 = vector.broadcast %476 : vector<1x32xf32> to vector<16x32xf32>
    %478 = arith.addf %475, %477 : vector<16x32xf32>
    %c0_211 = arith.constant 0 : index
    %c0_212 = arith.constant 0 : index
    %479 = vector.load %arg44[%c0_211, %c0_212] : memref<32x128xf32, #tpu.memory_space<vmem>>, vector<32x128xf32>
    %cst_213 = arith.constant dense<0.000000e+00> : vector<16x128xf32>
    %480 = tpu.matmul %478, %479, %cst_213 {dimension_numbers = #tpu.dot_dimension_numbers<[1], [0], [0], [1], [0, 0, 1, 1], [], []>} : vector<16x32xf32>, vector<32x128xf32>, vector<16x128xf32> -> vector<16x128xf32>
    %c0_214 = arith.constant 0 : index
    %c0_215 = arith.constant 0 : index
    %481 = vector.load %arg45[%c0_214, %c0_215] : memref<1x128xf32, #tpu.memory_space<vmem>>, vector<1x128xf32>
    %482 = vector.broadcast %481 : vector<1x128xf32> to vector<16x128xf32>
    %483 = arith.addf %480, %482 : vector<16x128xf32>
    %484 = vector.shape_cast %483 : vector<16x128xf32> to vector<2x8x128xf32>
    %c0_216 = arith.constant 0 : index
    %c0_217 = arith.constant 0 : index
    %c0_218 = arith.constant 0 : index
    %485 = vector.load %arg46[%c0_216, %c0_217, %c0_218] : memref<2x8x128xf32, #tpu.memory_space<vmem>>, vector<2x8x128xf32>
    tpu.vector_store %arg46[%c0_216, %c0_217, %c0_218], %484 {strides = array<i32>} : memref<2x8x128xf32, #tpu.memory_space<vmem>>, vector<2x8x128xf32>,
    return
  }
}

</mosaic_0001>

<bundles_post_ra>
// kernel: transformer_forward.1
= control target key start
LH: loop header
LB: loop body
LE: loop exit
PB: predicated region body
PF: predicated region fallthrough
CT: control target
= control target key end

     0   :  { %s8631_s6 = smov 1   ;;  %s8632_s10 = smov 2   ;;  %s9955_s0 = inlined_call_operand.smem [shape: u32[47], index: -1, kind: input, shape index: {}] }
   0x1   :  { %s8695_s5 = sld [smem:[%s9955_s0]]   ;;  %s8633_s14 = smov 3  }
   0x2   :  { %s8700_s9 = sld [smem:[%s9955_s0 + %s8631_s6]]   ;;  %s8634_s18 = smov 4  }
   0x3   :  { %s8705_s13 = sld [smem:[%s9955_s0 + %s8632_s10]]   ;;  %s8635_s22 = smov 5  }
   0x4   :  { %s8710_s17 = sld [smem:[%s9955_s0 + %s8633_s14]]   ;;  %s8636_s26 = smov 6  }
   0x5   :  { %s8715_s21 = sld [smem:[%s9955_s0 + %s8634_s18]]   ;;  %s8637_s30 = smov 7  }
   0x6   :  { %s8720_s25 = sld [smem:[%s9955_s0 + %s8635_s22]]   ;;  %s8638_s4 = smov 8  }
   0x7   :  { %s8725_s29 = sld [smem:[%s9955_s0 + %s8636_s26]]   ;;  %s8639_s10 = smov 9  }
   0x8   :  { %9967 = sst [smem:[#allocation8_spill]] %s8700_s9  ;;  %s8640_s15 = smov 10  }
   0x9   :  { %s8730_s3 = sld [smem:[%s9955_s0 + %s8637_s30]]   ;;  %s8641_s20 = smov 11  }
   0xa   :  { %s8735_s8 = sld [smem:[%s9955_s0 + %s8638_s4]]   ;;  %s8642_s26 = smov 12  }
   0xb   :  { %s8740_s14 = sld [smem:[%s9955_s0 + %s8639_s10]]   ;;  %s8643_s1 = smov 13  }
   0xc   :  { %s8745_s19 = sld [smem:[%s9955_s0 + %s8640_s15]]   ;;  %s8644_s7 = smov 14  }
   0xd   :  { %s8750_s24 = sld [smem:[%s9955_s0 + %s8641_s20]]   ;;  %s8645_s15 = smov 15  }
   0xe   :  { %s8755_s30 = sld [smem:[%s9955_s0 + %s8642_s26]]   ;;  %s8646_s22 = smov 16  }
   0xf   :  { %s8760_s6 = sld [smem:[%s9955_s0 + %s8643_s1]]   ;;  %s8647_s28 = smov 17  }
  0x10   :  { %s8765_s12 = sld [smem:[%s9955_s0 + %s8644_s7]]   ;;  %s8648_s7 = smov 18  }
  0x11   :  { %s8770_s20 = sld [smem:[%s9955_s0 + %s8645_s15]]   ;;  %s8649_s15 = smov 19  }
  0x12   :  { %s8775_s27 = sld [smem:[%s9955_s0 + %s8646_s22]]   ;;  %s8650_s22 = smov 20  }
  0x13   :  { %s8780_s4 = sld [smem:[%s9955_s0 + %s8647_s28]]   ;;  %s8651_s28 = smov 21  }
  0x14   :  { %s8785_s9 = sld [smem:[%s9955_s0 + %s8648_s7]]   ;;  %s8652_s7 = smov 22  }
  0x15   :  { %9968 = sst [smem:[#allocation9_spill]] %s8760_s6  ;;  %s8673_s16 = smov 43  }
  0x16   :  { %s8674_s23 = smov 44   ;;  %s8675_s1 = smov 45  }
  0x17   :  { %9969 = sst [smem:[#allocation10_spill]] %s8770_s20  ;;  %s8676_s10 = smov 46  }
  0x18   :  { %9970 = sst [smem:[#allocation11_spill]] %s8775_s27 }
  0x19   :  { %9971 = sst [smem:[#allocation12_spill]] %s8780_s4 }
  0x1a   :  { %9972 = sst [smem:[#allocation13_spill]] %s8785_s9 }
  0x1b   :  { %s8790_s20 = sld [smem:[%s9955_s0 + %s8649_s15]]   ;;  %s8653_s15 = smov 23  }
  0x1c   :  { %s8795_s27 = sld [smem:[%s9955_s0 + %s8650_s22]]   ;;  %s8654_s22 = smov 24  }
  0x1d   :  { %s8800_s4 = sld [smem:[%s9955_s0 + %s8651_s28]]   ;;  %s8655_s28 = smov 25  }
  0x1e   :  { %s8805_s9 = sld [smem:[%s9955_s0 + %s8652_s7]]   ;;  %s8656_s7 = smov 26  }
  0x1f   :  { %s8923_s6 = sld [smem:[%s9955_s0 + %s8676_s10]]  }
  0x21   :  { %9973 = sst [smem:[#allocation14_spill]] %s8790_s20 }
  0x22   :  { %9974 = sst [smem:[#allocation15_spill]] %s8795_s27 }
  0x23   :  { %9975 = sst [smem:[#allocation16_spill]] %s8800_s4 }
  0x24   :  { %9976 = sst [smem:[#allocation17_spill]] %s8805_s9 }
  0x25   :  { %s8810_s20 = sld [smem:[%s9955_s0 + %s8653_s15]]   ;;  %s8657_s15 = smov 27  }
  0x26   :  { %s8815_s27 = sld [smem:[%s9955_s0 + %s8654_s22]]   ;;  %s8658_s22 = smov 28  }
  0x27   :  { %s8820_s4 = sld [smem:[%s9955_s0 + %s8655_s28]]   ;;  %s8659_s28 = smov 29  }
  0x28   :  { %s8825_s9 = sld [smem:[%s9955_s0 + %s8656_s7]]   ;;  %s8660_s7 = smov 30  }
  0x2b   :  { %9977 = sst [smem:[#allocation18_spill]] %s8810_s20 }
  0x2c   :  { %9978 = sst [smem:[#allocation19_spill]] %s8815_s27 }
  0x2d   :  { %9979 = sst [smem:[#allocation20_spill]] %s8820_s4 }
  0x2e   :  { %9980 = sst [smem:[#allocation21_spill]] %s8825_s9 }
  0x2f   :  { %s8830_s20 = sld [smem:[%s9955_s0 + %s8657_s15]]   ;;  %s8661_s15 = smov 31  }
  0x30   :  { %s8835_s27 = sld [smem:[%s9955_s0 + %s8658_s22]]   ;;  %s8662_s22 = smov 32  }
  0x31   :  { %s8840_s4 = sld [smem:[%s9955_s0 + %s8659_s28]]   ;;  %s8663_s28 = smov 33  }
  0x32   :  { %s8845_s9 = sld [smem:[%s9955_s0 + %s8660_s7]]   ;;  %s8664_s7 = smov 34  }
  0x35   :  { %9981 = sst [smem:[#allocation22_spill]] %s8830_s20 }
  0x36   :  { %9982 = sst [smem:[#allocation23_spill]] %s8835_s27 }
  0x37   :  { %9983 = sst [smem:[#allocation24_spill]] %s8840_s4 }
  0x38   :  { %9984 = sst [smem:[#allocation25_spill]] %s8845_s9 }
  0x39   :  { %s8850_s20 = sld [smem:[%s9955_s0 + %s8661_s15]]   ;;  %s8665_s15 = smov 35  }
  0x3a   :  { %s8855_s27 = sld [smem:[%s9955_s0 + %s8662_s22]]   ;;  %s8666_s22 = smov 36  }
  0x3b   :  { %s8860_s4 = sld [smem:[%s9955_s0 + %s8663_s28]]   ;;  %s8667_s28 = smov 37  }
  0x3c   :  { %s8865_s9 = sld [smem:[%s9955_s0 + %s8664_s7]]   ;;  %s8668_s7 = smov 38  }
  0x3f   :  { %9985 = sst [smem:[#allocation26_spill]] %s8850_s20 }
  0x40   :  { %9986 = sst [smem:[#allocation27_spill]] %s8855_s27 }
  0x41   :  { %9987 = sst [smem:[#allocation28_spill]] %s8860_s4 }
  0x42   :  { %9988 = sst [smem:[#allocation29_spill]] %s8865_s9 }
  0x43   :  { %s8870_s20 = sld [smem:[%s9955_s0 + %s8665_s15]]   ;;  %s8669_s15 = smov 39  }
  0x44   :  { %s8875_s27 = sld [smem:[%s9955_s0 + %s8666_s22]]   ;;  %s8670_s22 = smov 40  }
  0x45   :  { %s8880_s4 = sld [smem:[%s9955_s0 + %s8667_s28]]   ;;  %s8671_s28 = smov 41  }
  0x46   :  { %s8885_s9 = sld [smem:[%s9955_s0 + %s8668_s7]]   ;;  %s8672_s7 = smov 42  }
  0x49   :  { %9989 = sst [smem:[#allocation30_spill]] %s8870_s20 }
  0x4a   :  { %9990 = sst [smem:[#allocation31_spill]] %s8875_s27 }
  0x4b   :  { %9991 = sst [smem:[#allocation32_spill]] %s8880_s4 }
  0x4c   :  { %9992 = sst [smem:[#allocation33_spill]] %s8885_s9 }
  0x4d   :  { %s8890_s20 = sld [smem:[%s9955_s0 + %s8669_s15]]  }
  0x4e   :  { %s8895_s27 = sld [smem:[%s9955_s0 + %s8670_s22]]  }
  0x4f   :  { %s8900_s4 = sld [smem:[%s9955_s0 + %s8671_s28]]  }
  0x50   :  { %s7410_s9 = sld [smem:[%s9955_s0 + %s8672_s7]]  }
  0x53   :  { %9993 = sst [smem:[#allocation34_spill]] %s8890_s20 }
  0x54   :  { %9994 = sst [smem:[#allocation35_spill]] %s8895_s27 }
  0x55   :  { %9995 = sst [smem:[#allocation36_spill]] %s8900_s4 }
  0x56   :  { %s8908_s20 = sld [smem:[%s9955_s0 + %s8673_s16]]  }
  0x57   :  { %s8913_s27 = sld [smem:[%s9955_s0 + %s8674_s23]]  }
  0x58   :  { %s8918_s4 = sld [smem:[%s9955_s0 + %s8675_s1]]  }
  0x59   :  { %98 = vsyncpa [#allocation3], 0 }
  0x5a   :  { %99 = vsyncpa [#allocation5], 0  ;;  %s8677_s16 = smov [#allocation2]   ;;  %s8678_s18 = smov [#allocation4]  }
  0x5b   :  { %s190_s15 = sshll.u32 %s8677_s16, 4  ;;  %s200_s22 = sshll.u32 %s8678_s18, 4  ;;  %s191_s15 = int_to_ptr.vmem [resolvable:$true] %s190_s15  ;;  %s201_s22 = int_to_ptr.vmem [resolvable:$true] %s200_s22 }
  0x5c   :  { %s8595_s23 = scalar_lea.vmem %s191_s15, 16  ;;  %s8599_s26 = scalar_lea.vmem %s191_s15, 32 }
  0x5d   :  { %p8596_p0 = scmp.ne.s32.totalorder %s191_s15, %s8595_s23  ;;  %p8600_p1 = scmp.lt.s32.totalorder %s191_s15, %s191_s15 }
  0x5e   :  { %p8601_p2 = scmp.lt.s32.totalorder %s8599_s26, %s8595_s23 }
  0x60   :  { %p8602_p3 = por %p8601_p2, %p8600_p1 }
  0x62   :  { %p8603_p4 = pnand %p8602_p3, %p8596_p0 }
  0x64   :  { %8606 = shalt.err (!%p8603_p4)
}
  0x65   :  { %193 = dma.hbm_to_vmem [thread:$0]  %s7410_s9, 16, %s191_s15, [#allocation3]  }
  0x66   :  { %s8615_s1 = scalar_lea.vmem %s201_s22, 16  ;;  %s8619_s0 = scalar_lea.vmem %s201_s22, 32 }
  0x67   :  { %p8616_p5 = scmp.ne.s32.totalorder %s201_s22, %s8615_s1  ;;  %p8620_p6 = scmp.lt.s32.totalorder %s201_s22, %s201_s22 }
  0x68   :  { %p8621_p7 = scmp.lt.s32.totalorder %s8619_s0, %s8615_s1 }
  0x6a   :  { %p8622_p8 = por %p8621_p7, %p8620_p6 }
  0x6c   :  { %p8623_p9 = pnand %p8622_p8, %p8616_p5 }
  0x6e   :  { %8626 = shalt.err (!%p8623_p9)
}
  0x6f   :  { %203 = dma.hbm_to_vmem [thread:$0]  %s8908_s20, 16, %s201_s22, [#allocation5]  }
  0x70   :  { %8627 = dma.done.wait [#allocation3], 16  }
  0x71   :  { %8628 = vsyncadd [#allocation3], 4294967280 }
  0x72   :  { %8629 = dma.done.wait [#allocation5], 16  }
  0x73   :  { %8630 = vsyncadd [#allocation5], 4294967280  ;;  %v221_v0 = vld [vmem:[%s8705_s13 + $0x18] sm:$0xff]  ;;  %v220_v2 = vld [vmem:[%s8705_s13 + $0x10] sm:$0xff]  ;;  %vm229_vm0 = vcmask 261120   ;;  %v8679_v10 = vmov 0.0  }
  0x74   :  { %v314_v1 = vld [vmem:[%s8715_s21 + $0x18] sm:$0xff]  ;;  %8032 = vmatprep.subr.mxu0 %v221_v0  ;;  %v313_v3 = vld [vmem:[%s8715_s21 + $0x10] sm:$0xff]  ;;  %v219_v4 = vld [vmem:[%s8705_s13 + $0x8] sm:$0xff]  ;;  %vm8680_vm1 = vmmov 0   ;;  %vm483_vm2 = vcmask 64512   ;;  %s8682_s9 = smov 112  }
  0x75   :  { %8043 = vmatprep.subr.mxu1 %v314_v1  ;;  %8033 = vmatpush3.msra.mxu0 %v221_v0  ;;  %v312_v5 = vld [vmem:[%s8715_s21 + $0x8] sm:$0xff]  ;;  %v218_v6 = vld [vmem:[%s8705_s13] sm:$0xff]  ;;  %v400_v11 = vld [vmem:[%s8725_s29 + $0x18] sm:$0xff]  ;;  %s8683_s13 = smov 104   ;;  %vm1515_vm3 = vcmask 130048   ;;  %vm1517_vm4 = vcmask 195584  }
  0x76   :  { %8044 = vmatpush3.msra.mxu1 %v314_v1  ;;  %8034 = vmatprep.subr.mxu0 %v220_v2  ;;  %v311_v7 = vld [vmem:[%s8715_s21] sm:$0xff]  ;;  %v8938_v9 = vld [vmem:[%s8695_s5 + $0x8] sm:$0xff]  ;;  %v399_v12 = vld [vmem:[%s8725_s29 + $0x10] sm:$0xff]  ;;  %s8685_s21 = smov 16   ;;  %s10004_s20 = sld [smem:[#allocation18_spill]] }
  0x77   :  { %8045 = vmatprep.subr.mxu1 %v313_v3  ;;  %8035 = vmatpush3.msra.mxu0 %v220_v2  ;;  %v8935_v8 = vld [vmem:[%s8695_s5] sm:$0xff]  ;;  %v398_v13 = vld [vmem:[%s8725_s29 + $0x8] sm:$0xff]  ;;  %s8681_s5 = smov 120   ;;  %s10005_s28 = sld [smem:[#allocation19_spill]] }
  0x78   :  { %8046 = vmatpush3.msra.mxu1 %v313_v3  ;;  %8036 = vmatprep.subr.mxu0 %v219_v4  ;;  %v397_v14 = vld [vmem:[%s8725_s29] sm:$0xff]  ;;  %s9996_s29 = sld [smem:[#allocation9_spill]] }
  0x79   :  { %8047 = vmatprep.subr.mxu1 %v312_v5  ;;  %8037 = vmatpush3.msra.mxu0 %v219_v4  ;;  %v7415_v15 = vld [vmem:[%s8710_s17] ss:$0 sm:$0xff]  ;;  %s8684_s17 = smov 8   ;;  %s10006_s2 = sld [smem:[#allocation20_spill]] }
  0x7a   :  { %8048 = vmatpush3.msra.mxu1 %v312_v5  ;;  %8038 = vmatprep.subr.mxu0 %v218_v6  ;;  %v7418_v16 = vld [vmem:[%s8720_s25] ss:$0 sm:$0xff]  ;;  %s8686_s25 = smov 24   ;;  %s10007_s10 = sld [smem:[#allocation11_spill]] }
  0x7b   :  { %8049 = vmatprep.subr.mxu1 %v311_v7  ;;  %8039 = vmatpush3.msra.mxu0 %v218_v6  ;;  %v7421_v37 = vld [vmem:[%s8730_s3] ss:$0 sm:$0xff]  ;;  %s9997_s3 = sld [smem:[#allocation13_spill]] }
  0x7c   :  { %8040 = vmatprep.mubr.msk.f32.mxu0 %vm229_vm0, %v8935_v8  ;;  %8050 = vmatpush3.msra.mxu1 %v311_v7  ;;  %s10008_s7 = sld [smem:[#allocation12_spill]] }
  0x7d   :  { %8051 = vmatprep.mubr.msk.f32.mxu1 %vm229_vm0, %v8935_v8  ;;  %8041 = vmatmul.mubr.msk.f32.vlgmr.msra.gmra.mxu0 %vm229_vm0, %v8938_v9  ;;  %s10009_s11 = sld [smem:[#allocation25_spill]] }
  0x7e   :  { %8052 = vmatmul.mubr.msk.f32.vlgmr.msra.gmra.mxu1 %vm229_vm0, %v8938_v9  ;;  %8062 = vmatprep.mubr.msk.f32.mxu0 %vm229_vm0, %v8935_v8  ;;  %s10010_s16 = sld [smem:[#allocation23_spill]] }
  0x7f   :  { %8065 = vmatprep.subr.mxu1 %v8679_v10  ;;  %8067 = vmatprep.mubr.msk.f32.mxu1 %vm8680_vm1, %v8679_v10  ;;  %s10011_s15 = sld [smem:[#allocation27_spill]] }
  0x80   :  { %8054 = vmatprep.subr.mxu0 %v400_v11  ;;  %s10012_s18 = sld [smem:[#allocation21_spill]] }
  0x81   :  { %8055 = vmatpush3.msra.mxu0 %v400_v11  ;;  %s10013_s22 = sld [smem:[#allocation22_spill]] }
  0x82   :  { %8056 = vmatprep.subr.mxu0 %v399_v12  ;;  %s10014_s23 = sld [smem:[#allocation26_spill]] }
  0x83   :  { %8057 = vmatpush3.msra.mxu0 %v399_v12  ;;  %s10015_s26 = sld [smem:[#allocation24_spill]] }
  0x84   :  { %8058 = vmatprep.subr.mxu0 %v398_v13  ;;  %s10016_s1 = sld [smem:[#allocation28_spill]] }
  0x85   :  { %8059 = vmatpush3.msra.mxu0 %v398_v13  ;;  %s10017_s0 = sld [smem:[#allocation29_spill]] }
  0x86   :  { %8060 = vmatprep.subr.mxu0 %v397_v14 }
  0x87   :  { %8061 = vmatpush3.msra.mxu0 %v397_v14 }
  0x88   :  { %8075 = vmatprep.subr.mxu0 %v8679_v10  ;;  %8063 = vmatmul.mubr.msk.f32.vlgmr.msra.gmra.mxu0 %vm229_vm0, %v8938_v9 }
  0x89   :  { %8077 = vmatprep.mubr.msk.f32.mxu0 %vm8680_vm1, %v8679_v10 }
 0x13d   :  { %v8042_v17 = vpop.f32.mrf.mxu0 }
 0x13e   :  { %v8053_v18 = vpop.f32.mrf.mxu1  ;;  %v308_v19 = vadd.f32 %v8042_v17, %v7415_v15 }
 0x13f   :  { %v394_v20 = vadd.f32 %v8053_v18, %v7418_v16  ;;  %v302_v22 = vpop.f32.mrf.mxu0 }
 0x140   :  { %v388_v21 = vpop.f32.mrf.mxu1  ;;  %875 = vrot.lane.b32.xlu1 %v308_v19, %s8681_s5  ;;  %v303_v24 = vadd.f32 %v7415_v15, %v302_v22 }
 0x141   :  { %v389_v23 = vadd.f32 %v7418_v16, %v388_v21  ;;  %877 = vrot.lane.b32.xlu0 %v394_v20, %s8681_s5 }
 0x143   :  { %8066 = vmatpush3.xpose.msk.msra.mxu1 %vm483_vm2, %v389_v23 }
 0x144   :  { %8070 = vmatprep.subr.mxu1 %v8679_v10  ;;  %642 = vrot.lane.b32.xlu1 %v389_v23, %s8682_s9 }
 0x145   :  { %563 = vrot.lane.b32.xlu0 %v389_v23, %s8681_s5 }
 0x146   :  { %8068 = vmatmul.mubr.msk.f32.vlgmr.msra.gmra.mxu1 %vm483_vm2, %v303_v24 }
 0x147   :  { %8072 = vmatprep.mubr.msk.f32.mxu1 %vm8680_vm1, %v8679_v10 }
 0x148   :  { %721 = vrot.lane.b32.xlu1 %v389_v23, %s8683_s13  ;;  %v8064_v38 = vpop.f32.mrf.mxu0 }
 0x149   :  { %561 = vrot.lane.b32.xlu0 %v303_v24, %s8681_s5  ;;  %v9017_v39 = vadd.f32 %v8064_v38, %v7421_v37 }
 0x14a   :  { %v474_v40 = vpop.f32.mrf.mxu0 }
 0x14b   :  { %v475_v41 = vadd.f32 %v7421_v37, %v474_v40 }
 0x14c   :  { %719 = vrot.lane.b32.xlu1 %v303_v24, %s8683_s13 }
 0x14d   :  { %640 = vrot.lane.b32.xlu0 %v303_v24, %s8682_s9 }
 0x150   :  { %1035 = vrot.lane.b32.xlu1 %v394_v20, %s8683_s13 }
 0x151   :  { %956 = vrot.lane.b32.xlu0 %v394_v20, %s8682_s9 }
 0x154   :  { %1033 = vrot.lane.b32.xlu1 %v308_v19, %s8683_s13 }
 0x155   :  { %954 = vrot.lane.b32.xlu0 %v308_v19, %s8682_s9 }
 0x1b2   :  { %v876_v26 = vpop.permute.xlu1 %875 }
 0x1b3   :  { %v878_v25 = vpop.permute.xlu0 %877 }
 0x1b6   :  { %v643_v28 = vpop.permute.xlu1 %642 }
 0x1b7   :  { %v564_v27 = vpop.permute.xlu0 %563  ;;  %8076 = vmatpush3.xpose.msk.msra.mxu0 %vm483_vm2, %v643_v28 }
 0x1b8   :  { %8071 = vmatpush3.xpose.msk.msra.mxu1 %vm483_vm2, %v564_v27  ;;  %8085 = vmatprep.subr.mxu0 %v8679_v10 }
 0x1b9   :  { %8080 = vmatprep.subr.mxu1 %v8679_v10 }
 0x1ba   :  { %v722_v29 = vpop.permute.xlu1 %721 }
 0x1bb   :  { %v562_v30 = vpop.permute.xlu0 %561 }
 0x1bc   :  { %8073 = vmatmul.mubr.msk.f32.vlgmr.msra.gmra.mxu1 %vm483_vm2, %v562_v30 }
 0x1bd   :  { %8081 = vmatpush3.xpose.msk.msra.mxu1 %vm483_vm2, %v722_v29  ;;  %8082 = vmatprep.mubr.msk.f32.mxu1 %vm8680_vm1, %v8679_v10 }
 0x1be   :  { %8090 = vmatprep.subr.mxu1 %v8679_v10  ;;  %v720_v31 = vpop.permute.xlu1 %719 }
 0x1bf   :  { %v641_v32 = vpop.permute.xlu0 %640 }
 0x1c0   :  { %8078 = vmatmul.mubr.msk.f32.vlgmr.msra.gmra.mxu0 %vm483_vm2, %v641_v32  ;;  %8083 = vmatmul.mubr.msk.f32.vlgmr.msra.gmra.mxu1 %vm483_vm2, %v720_v31 }
 0x1c1   :  { %8086 = vmatpush3.xpose.msk.msra.mxu0 %vm483_vm2, %v394_v20  ;;  %8091 = vmatpush3.xpose.msk.msra.mxu1 %vm483_vm2, %v878_v25 }
 0x1c2   :  { %8087 = vmatprep.mubr.msk.f32.mxu0 %vm8680_vm1, %v8679_v10  ;;  %8095 = vmatprep.subr.mxu0 %v8679_v10  ;;  %v1036_v33 = vpop.permute.xlu1 %1035 }
 0x1c3   :  { %v957_v34 = vpop.permute.xlu0 %956  ;;  %8092 = vmatprep.mubr.msk.f32.mxu1 %vm8680_vm1, %v8679_v10  ;;  %8100 = vmatprep.subr.mxu1 %v8679_v10 }
 0x1c4   :  { %8088 = vmatmul.mubr.msk.f32.vlgmr.msra.gmra.mxu0 %vm483_vm2, %v308_v19  ;;  %8093 = vmatmul.mubr.msk.f32.vlgmr.msra.gmra.mxu1 %vm483_vm2, %v876_v26 }
 0x1c5   :  { %8096 = vmatpush3.xpose.msk.msra.mxu0 %vm483_vm2, %v957_v34  ;;  %8101 = vmatpush3.xpose.msk.msra.mxu1 %vm483_vm2, %v1036_v33 }
 0x1c6   :  { %8097 = vmatprep.mubr.msk.f32.mxu0 %vm8680_vm1, %v8679_v10  ;;  %8102 = vmatprep.mubr.msk.f32.mxu1 %vm8680_vm1, %v8679_v10  ;;  %v1034_v35 = vpop.permute.xlu1 %1033 }
 0x1c7   :  { %v955_v36 = vpop.permute.xlu0 %954  ;;  %8105 = vmatprep.subr.mxu0 %v8679_v10  ;;  %8110 = vmatprep.subr.mxu1 %v8679_v10 }
 0x1c8   :  { %8098 = vmatmul.mubr.msk.f32.vlgmr.msra.gmra.mxu0 %vm483_vm2, %v955_v36  ;;  %8103 = vmatmul.mubr.msk.f32.vlgmr.msra.gmra.mxu1 %vm483_vm2, %v1034_v35 }
 0x1c9   :  { %8107 = vmatprep.mubr.msk.f32.mxu0 %vm8680_vm1, %v8679_v10  ;;  %8112 = vmatprep.mubr.msk.f32.mxu1 %vm8680_vm1, %v8679_v10 }
 0x1ca   :  { %8106 = vmatpush3.msra.mxu0 %v475_v41 }
 0x1cb   :  { %8115 = vmatprep.subr.mxu0 %v8679_v10 }
 0x206   :  { %v556_v42 = vpop.f32.mrf.mxu1 }
 0x207   :  { %v560_v43 = vmul.f32 0.35355338, %v556_v42 }
 0x208   :  { %v8069_v44 = vpop.f32.mrf.mxu1 }
 0x209   :  { %v1112_v45 = vsel %vm483_vm2, %v560_v43, -inf }
 0x20a   :  { %1113 = vmax.xlane.f32.xlu0 %v1112_v45 }
 0x27c   :  { %v635_v46 = vpop.f32.mrf.mxu1 }
 0x27d   :  { %v639_v47 = vmul.f32 0.35355338, %v635_v46 }
 0x27e   :  { %v8074_v48 = vpop.f32.mrf.mxu1 }
 0x27f   :  { %v1115_v49 = vsel %vm483_vm2, %v639_v47, -inf }
 0x280   :  { %v714_v50 = vpop.f32.mrf.mxu0  ;;  %1116 = vmax.xlane.f32.xlu1 %v1115_v49  ;;  %v793_v51 = vpop.f32.mrf.mxu1 }
 0x281   :  { %v718_v52 = vmul.f32 0.35355338, %v714_v50  ;;  %v797_v55 = vmul.f32 0.35355338, %v793_v51 }
 0x282   :  { %v8079_v53 = vpop.f32.mrf.mxu0  ;;  %v8084_v54 = vpop.f32.mrf.mxu1 }
 0x283   :  { %v1118_v56 = vsel %vm483_vm2, %v718_v52, -inf  ;;  %v1121_v0 = vsel %vm483_vm2, %v797_v55, -inf }
 0x284   :  { %v870_v57 = vpop.f32.mrf.mxu0  ;;  %1119 = vmax.xlane.f32.xlu0 %v1118_v56  ;;  %v949_v58 = vpop.f32.mrf.mxu1 }
 0x285   :  { %v874_v59 = vmul.f32 0.35355338, %v870_v57  ;;  %v953_v62 = vmul.f32 0.35355338, %v949_v58 }
 0x286   :  { %v8089_v60 = vpop.f32.mrf.mxu0  ;;  %v8094_v61 = vpop.f32.mrf.mxu1 }
 0x287   :  { %v1124_v63 = vsel %vm483_vm2, %v874_v59, -inf  ;;  %v1127_v11 = vsel %vm483_vm2, %v953_v62, -inf }
 0x288   :  { %v1028_v1 = vpop.f32.mrf.mxu0  ;;  %1125 = vmax.xlane.f32.xlu1 %v1124_v63  ;;  %1122 = vmax.xlane.f32.xlu0 %v1121_v0  ;;  %v1107_v2 = vpop.f32.mrf.mxu1 }
 0x289   :  { %v1032_v3 = vmul.f32 0.35355338, %v1028_v1  ;;  %v1111_v6 = vmul.f32 0.35355338, %v1107_v2 }
 0x28a   :  { %v8099_v4 = vpop.f32.mrf.mxu0  ;;  %v8104_v5 = vpop.f32.mrf.mxu1 }
 0x28b   :  { %v1130_v7 = vsel %vm483_vm2, %v1032_v3, -inf  ;;  %v1133_v12 = vsel %vm483_vm2, %v1111_v6, -inf }
 0x28c   :  { %1131 = vmax.xlane.f32.xlu1 %v1130_v7  ;;  %1128 = vmax.xlane.f32.xlu0 %v1127_v11 }
 0x290   :  { %1134 = vmax.xlane.f32.xlu0 %v1133_v12 }
 0x293   :  { %v1114_v13 = vpop.xlane.xlu0 %1113 }
 0x294   :  { %v1136_v14 = vsub.f32 %v560_v43, %v1114_v13 }
 0x296   :  { %v1144_v15 = vmul.f32 1.442695, %v1136_v14 }
 0x298   :  { %8471 = vpow2.f32 %v1144_v15 }
 0x29d   :  { %1274 = vrot.lane.b32.xlu1 %v475_v41, %s8681_s5 }
 0x2a1   :  { %1426 = vrot.lane.b32.xlu1 %v475_v41, %s8683_s13 }
 0x2a5   :  { %1593 = vrot.lane.b32.xlu1 %v9017_v39, %s8681_s5  ;;  %v8472_v16 = vpop.eup %8471 }
 0x2a6   :  { %1350 = vrot.lane.b32.xlu0 %v475_v41, %s8682_s9  ;;  %v1160_v17 = vsel %vm483_vm2, %v8472_v16, 0.0 }
 0x2c9   :  { %1161 = vadd.xlane.f32.xlu1 %v1160_v17 }
 0x309   :  { %v1117_v18 = vpop.xlane.xlu1 %1116 }
 0x30a   :  { %v1137_v19 = vsub.f32 %v639_v47, %v1117_v18 }
 0x30c   :  { %v1146_v20 = vmul.f32 1.442695, %v1137_v19 }
 0x30d   :  { %v1120_v21 = vpop.xlane.xlu0 %1119 }
 0x30e   :  { %8473 = vpow2.f32 %v1146_v20  ;;  %v1138_v22 = vsub.f32 %v718_v52, %v1120_v21 }
 0x310   :  { %v1148_v23 = vmul.f32 1.442695, %v1138_v22 }
 0x311   :  { %v1126_v24 = vpop.xlane.xlu1 %1125  ;;  %v1123_v25 = vpop.xlane.xlu0 %1122 }
 0x312   :  { %8475 = vpow2.f32 %v1148_v23  ;;  %v1140_v26 = vsub.f32 %v874_v59, %v1126_v24  ;;  %v1139_v27 = vsub.f32 %v797_v55, %v1123_v25  ;;  %v1839_v24 = vld [vmem:[%s8735_s8 + $0x18] sm:$0xff] }
 0x314   :  { %v1152_v28 = vmul.f32 1.442695, %v1140_v26  ;;  %v1150_v29 = vmul.f32 1.442695, %v1139_v27  ;;  %v1838_v26 = vld [vmem:[%s8735_s8 + $0x10] sm:$0xff]  ;;  %v1837_v27 = vld [vmem:[%s8735_s8 + $0x8] sm:$0xff] }
 0x315   :  { %v1132_v30 = vpop.xlane.xlu1 %1131  ;;  %v1129_v31 = vpop.xlane.xlu0 %1128 }
 0x316   :  { %8477 = vpow2.f32 %v1152_v28  ;;  %v1142_v32 = vsub.f32 %v1032_v3, %v1132_v30  ;;  %v1141_v33 = vsub.f32 %v953_v62, %v1129_v31  ;;  %v1836_v30 = vld [vmem:[%s8735_s8] sm:$0xff]  ;;  %s9998_s8 = sld [smem:[#allocation15_spill]] }
 0x317   :  { %8479 = vpow2.f32 %v1150_v29 }
 0x318   :  { %v1156_v34 = vmul.f32 1.442695, %v1142_v32  ;;  %v1154_v35 = vmul.f32 1.442695, %v1141_v33 }
 0x319   :  { %v1275_v36 = vpop.permute.xlu1 %1274  ;;  %v1135_v37 = vpop.xlane.xlu0 %1134 }
 0x31a   :  { %8481 = vpow2.f32 %v1156_v34  ;;  %v1143_v38 = vsub.f32 %v1111_v6, %v1135_v37  ;;  %8111 = vmatpush3.msra.mxu1 %v1275_v36 }
 0x31b   :  { %v8474_v40 = vpop.eup %8473  ;;  %8483 = vpow2.f32 %v1154_v35  ;;  %8120 = vmatprep.subr.mxu1 %v8679_v10 }
 0x31c   :  { %v1158_v41 = vmul.f32 1.442695, %v1143_v38  ;;  %v1163_v42 = vsel %vm483_vm2, %v8474_v40, 0.0 }
 0x31d   :  { %1164 = vadd.xlane.f32.xlu0 %v1163_v42  ;;  %v1427_v55 = vpop.permute.xlu1 %1426  ;;  %v1351_v60 = vpop.permute.xlu0 %1350 }
 0x31e   :  { %8485 = vpow2.f32 %v1158_v41 }
 0x31f   :  { %v8476_v43 = vpop.eup %8475 }
 0x320   :  { %v1166_v44 = vsel %vm483_vm2, %v8476_v43, 0.0 }
 0x321   :  { %1167 = vadd.xlane.f32.xlu1 %v1166_v44  ;;  %v1594_v56 = vpop.permute.xlu1 %1593 }
 0x323   :  { %v8478_v45 = vpop.eup %8477 }
 0x324   :  { %v8480_v46 = vpop.eup %8479  ;;  %v1172_v47 = vsel %vm483_vm2, %v8478_v45, 0.0 }
 0x325   :  { %1173 = vadd.xlane.f32.xlu1 %v1172_v47  ;;  %v1169_v48 = vsel %vm483_vm2, %v8480_v46, 0.0 }
 0x326   :  { %1170 = vadd.xlane.f32.xlu0 %v1169_v48 }
 0x327   :  { %v8482_v49 = vpop.eup %8481 }
 0x328   :  { %v8484_v50 = vpop.eup %8483  ;;  %v1178_v51 = vsel %vm483_vm2, %v8482_v49, 0.0 }
 0x329   :  { %1179 = vadd.xlane.f32.xlu1 %v1178_v51  ;;  %v1175_v52 = vsel %vm483_vm2, %v8484_v50, 0.0 }
 0x32a   :  { %1176 = vadd.xlane.f32.xlu0 %v1175_v52 }
 0x32b   :  { %v9041_v53 = vpop.eup %8485 }
 0x32c   :  { %v1181_v54 = vsel %vm483_vm2, %v9041_v53, 0.0 }
 0x32e   :  { %1182 = vadd.xlane.f32.xlu0 %v1181_v54 }
 0x33a   :  { %1745 = vrot.lane.b32.xlu1 %v9017_v39, %s8683_s13 }
 0x344   :  { %1669 = vrot.lane.b32.xlu0 %v9017_v39, %s8682_s9 }
 0x352   :  { %v1162_v57 = vpop.xlane.xlu1 %1161 }
 0x353   :  { %8487 = vrcp.f32 %v1162_v57 }
 0x360   :  { %v8488_v58 = vpop.eup %8487 }
 0x361   :  { %v1192_v59 = vmul.f32 %v8488_v58, %v8472_v16 }
 0x363   :  { %8108 = vmatmul.mubr.msk.f32.vlgmr.msra.gmra.mxu0 %vm483_vm2, %v1192_v59 }
 0x364   :  { %8116 = vmatpush3.msra.mxu0 %v1351_v60  ;;  %8117 = vmatprep.mubr.msk.f32.mxu0 %vm8680_vm1, %v8679_v10 }
 0x365   :  { %8125 = vmatprep.subr.mxu0 %v8679_v10 }
 0x3a6   :  { %v1165_v61 = vpop.xlane.xlu0 %1164 }
 0x3a7   :  { %8489 = vrcp.f32 %v1165_v61 }
 0x3aa   :  { %v1168_v62 = vpop.xlane.xlu1 %1167 }
 0x3ab   :  { %8491 = vrcp.f32 %v1168_v62 }
 0x3ae   :  { %v1174_v63 = vpop.xlane.xlu1 %1173 }
 0x3af   :  { %8493 = vrcp.f32 %v1174_v63  ;;  %v1171_v0 = vpop.xlane.xlu0 %1170 }
 0x3b0   :  { %8495 = vrcp.f32 %v1171_v0 }
 0x3b2   :  { %v1180_v1 = vpop.xlane.xlu1 %1179 }
 0x3b3   :  { %8497 = vrcp.f32 %v1180_v1  ;;  %v1177_v2 = vpop.xlane.xlu0 %1176 }
 0x3b4   :  { %v8490_v3 = vpop.eup %8489  ;;  %8499 = vrcp.f32 %v1177_v2 }
 0x3b5   :  { %v1193_v4 = vmul.f32 %v8490_v3, %v8474_v40 }
 0x3b6   :  { %v1746_v19 = vpop.permute.xlu1 %1745 }
 0x3b7   :  { %v1183_v5 = vpop.xlane.xlu0 %1182  ;;  %8113 = vmatmul.mubr.msk.f32.vlgmr.msra.gmra.mxu1 %vm483_vm2, %v1193_v4 }
 0x3b8   :  { %v8492_v6 = vpop.eup %8491  ;;  %8501 = vrcp.f32 %v1183_v5  ;;  %8121 = vmatpush3.msra.mxu1 %v1427_v55  ;;  %8122 = vmatprep.mubr.msk.f32.mxu1 %vm8680_vm1, %v8679_v10  ;;  %v7448_v55 = vld [vmem:[%s8740_s14] ss:$0 sm:$0xff]  ;;  %s9999_s14 = sld [smem:[#allocation8_spill]] }
 0x3b9   :  { %v1194_v7 = vmul.f32 %v8492_v6, %v8476_v43  ;;  %8130 = vmatprep.subr.mxu1 %v8679_v10 }
 0x3bb   :  { %8118 = vmatmul.mubr.msk.f32.vlgmr.msra.gmra.mxu0 %vm483_vm2, %v1194_v7  ;;  %v1670_v15 = vpop.permute.xlu0 %1669 }
 0x3bc   :  { %v8494_v11 = vpop.eup %8493  ;;  %8126 = vmatpush3.msra.mxu0 %v9017_v39  ;;  %8127 = vmatprep.mubr.msk.f32.mxu0 %vm8680_vm1, %v8679_v10 }
 0x3bd   :  { %v8496_v12 = vpop.eup %8495  ;;  %8135 = vmatprep.subr.mxu0 %v8679_v10  ;;  %v1196_v13 = vmul.f32 %v8494_v11, %v8478_v45  ;;  %v2000_v11 = vld [vmem:[%s8755_s30 + $0xc8] sm:$0xff] }
 0x3be   :  { %v1195_v14 = vmul.f32 %v8496_v12, %v8480_v46  ;;  %v2002_v12 = vld [vmem:[%s8755_s30 + $0xd8] sm:$0xff] }
 0x3bf   :  { %8128 = vmatmul.mubr.msk.f32.vlgmr.msra.gmra.mxu0 %vm483_vm2, %v1196_v13  ;;  %v1999_v13 = vld [vmem:[%s8755_s30 + $0xc0] sm:$0xff] }
 0x3c0   :  { %v8498_v16 = vpop.eup %8497  ;;  %8123 = vmatmul.mubr.msk.f32.vlgmr.msra.gmra.mxu1 %vm483_vm2, %v1195_v14  ;;  %8136 = vmatpush3.msra.mxu0 %v1670_v15  ;;  %v2001_v14 = vld [vmem:[%s8755_s30 + $0xd0] sm:$0xff]  ;;  %v1992_v15 = vld [vmem:[%s8755_s30 + $0x88] sm:$0xff] }
 0x3c1   :  { %v8500_v17 = vpop.eup %8499  ;;  %8131 = vmatpush3.msra.mxu1 %v1594_v56  ;;  %8132 = vmatprep.mubr.msk.f32.mxu1 %vm8680_vm1, %v8679_v10  ;;  %v1198_v39 = vmul.f32 %v8498_v16, %v8482_v49  ;;  %v1994_v16 = vld [vmem:[%s8755_s30 + $0x98] sm:$0xff] }
 0x3c2   :  { %8137 = vmatprep.mubr.msk.f32.mxu0 %vm8680_vm1, %v8679_v10  ;;  %8140 = vmatprep.subr.mxu1 %v8679_v10  ;;  %v1197_v18 = vmul.f32 %v8500_v17, %v8484_v50  ;;  %v1991_v17 = vld [vmem:[%s8755_s30 + $0x80] sm:$0xff] }
 0x3c3   :  { %8138 = vmatmul.mubr.msk.f32.vlgmr.msra.gmra.mxu0 %vm483_vm2, %v1198_v39  ;;  %8145 = vmatprep.subr.mxu0 %v1839_v24  ;;  %v1993_v39 = vld [vmem:[%s8755_s30 + $0x90] sm:$0xff] }
 0x3c4   :  { %8133 = vmatmul.mubr.msk.f32.vlgmr.msra.gmra.mxu1 %vm483_vm2, %v1197_v18  ;;  %8146 = vmatpush3.msra.mxu0 %v1839_v24  ;;  %v1984_v18 = vld [vmem:[%s8755_s30 + $0x48] sm:$0xff]  ;;  %v1975_v24 = vld [vmem:[%s8755_s30] sm:$0xff] }
 0x3c5   :  { %v8502_v20 = vpop.eup %8501  ;;  %8141 = vmatpush3.msra.mxu1 %v1746_v19  ;;  %8142 = vmatprep.mubr.msk.f32.mxu1 %vm8680_vm1, %v8679_v10  ;;  %v1986_v19 = vld [vmem:[%s8755_s30 + $0x58] sm:$0xff] }
 0x3c6   :  { %v1199_v21 = vmul.f32 %v8502_v20, %v9041_v53  ;;  %8147 = vmatprep.subr.mxu0 %v1838_v26  ;;  %2079 = vmatprep.subr.mxu1 %v2000_v11  ;;  %v1983_v20 = vld [vmem:[%s8755_s30 + $0x40] sm:$0xff] }
 0x3c7   :  { %8148 = vmatpush3.msra.mxu0 %v1838_v26  ;;  %v2004_v26 = vld [vmem:[%s8755_s30 + $0xe8] sm:$0xff]  ;;  %v2423_v11 = vld [vmem:[%s8765_s12 + $0x160] sm:$0xff] }
 0x3c8   :  { %8143 = vmatmul.mubr.msk.f32.vlgmr.msra.gmra.mxu1 %vm483_vm2, %v1199_v21  ;;  %8149 = vmatprep.subr.mxu0 %v1837_v27  ;;  %v1985_v21 = vld [vmem:[%s8755_s30 + $0x50] sm:$0xff] }
 0x3c9   :  { %2119 = vmatprep.mubr.f32.mxu1 %v8679_v10  ;;  %8150 = vmatpush3.msra.mxu0 %v1837_v27  ;;  %v2006_v27 = vld [vmem:[%s8755_s30 + $0xf8] sm:$0xff] }
 0x3ca   :  { %8151 = vmatprep.subr.mxu0 %v1836_v30  ;;  %2080 = vmatpush1.msra.mxu1 %v1999_v13  ;;  %v2438_v13 = vld [vmem:[%s8765_s12 + $0x1d8] sm:$0xff] }
 0x3cb   :  { %8152 = vmatpush3.msra.mxu0 %v1836_v30  ;;  %2081 = vmatprep.subr.mxu1 %v1992_v15  ;;  %v2422_v15 = vld [vmem:[%s8765_s12 + $0x158] sm:$0xff] }
 0x3cc   :  { %2156 = vmatprep.subr.mxu0 %v2002_v12  ;;  %2082 = vmatpush1.msra.mxu1 %v1991_v17  ;;  %v2406_v12 = vld [vmem:[%s8765_s12 + $0xd8] sm:$0xff]  ;;  %v2437_v17 = vld [vmem:[%s8765_s12 + $0x1d0] sm:$0xff] }
 0x3cd   :  { %2083 = vmatprep.subr.mxu1 %v1984_v18  ;;  %v2421_v18 = vld [vmem:[%s8765_s12 + $0x150] sm:$0xff] }
 0x3ce   :  { %2084 = vmatpush1.msra.mxu1 %v1983_v20  ;;  %v2436_v20 = vld [vmem:[%s8765_s12 + $0x1c8] sm:$0xff] }
 0x423   :  { %v1269_v22 = vpop.f32.mrf.mxu0 }
 0x425   :  { %v8109_v23 = vpop.f32.mrf.mxu0 }
 0x426   :  { %v1978_v23 = vld [vmem:[%s8755_s30 + $0x18] sm:$0xff] }
 0x477   :  { %v1346_v25 = vpop.f32.mrf.mxu1 }
 0x478   :  { %1503 = vrot.lane.b32.xlu0 %v1346_v25, %s8684_s17  ;;  %v1977_v25 = vld [vmem:[%s8755_s30 + $0x10] sm:$0xff] }
 0x479   :  { %v8114_v28 = vpop.f32.mrf.mxu1 }
 0x47b   :  { %v1422_v29 = vpop.f32.mrf.mxu0 }
 0x47c   :  { %1507 = vrot.lane.b32.xlu1 %v1422_v29, %s8685_s21 }
 0x47d   :  { %v8119_v31 = vpop.f32.mrf.mxu0 }
 0x47f   :  { %v1588_v32 = vpop.f32.mrf.mxu0 }
 0x480   :  { %v1498_v33 = vpop.f32.mrf.mxu1 }
 0x481   :  { %1511 = vrot.lane.b32.xlu1 %v1498_v33, %s8686_s25  ;;  %v8129_v34 = vpop.f32.mrf.mxu0 }
 0x482   :  { %v8124_v35 = vpop.f32.mrf.mxu1 }
 0x483   :  { %v1741_v36 = vpop.f32.mrf.mxu0  ;;  %v7451_v35 = vld [vmem:[%s8745_s19] ss:$0 sm:$0xff]  ;;  %s10000_s19 = sld [smem:[#allocation17_spill]] }
 0x484   :  { %v1665_v37 = vpop.f32.mrf.mxu1 }
 0x485   :  { %1822 = vrot.lane.b32.xlu0 %v1665_v37, %s8684_s17  ;;  %v8139_v38 = vpop.f32.mrf.mxu0  ;;  %v7452_v37 = vld [vmem:[%s8750_s24] ss:$0 sm:$0xff]  ;;  %s10001_s24 = sld [smem:[#allocation10_spill]] }
 0x486   :  { %v8134_v40 = vpop.f32.mrf.mxu1 }
 0x488   :  { %v1817_v41 = vpop.f32.mrf.mxu1 }
 0x489   :  { %1826 = vrot.lane.b32.xlu0 %v1741_v36, %s8685_s21  ;;  %1830 = vrot.lane.b32.xlu1 %v1817_v41, %s8686_s25 }
 0x48a   :  { %v8144_v42 = vpop.f32.mrf.mxu1 }
 0x4ea   :  { %v1504_v44 = vpop.permute.xlu0 %1503 }
 0x4eb   :  { %v1514_v45 = vsel %vm483_vm2, %v1269_v22, %v1504_v44  ;;  %v1976_v22 = vld [vmem:[%s8755_s30 + $0x8] sm:$0xff]  ;;  %v2005_v44 = vld [vmem:[%s8755_s30 + $0xf0] sm:$0xff] }
 0x4ec   :  { %2085 = vmatprep.subr.mxu1 %v1976_v22  ;;  %v2420_v22 = vld [vmem:[%s8765_s12 + $0x148] sm:$0xff] }
 0x4ed   :  { %2086 = vmatpush1.msra.mxu1 %v1975_v24  ;;  %v2435_v24 = vld [vmem:[%s8765_s12 + $0x1c0] sm:$0xff] }
 0x4ee   :  { %v1508_v43 = vpop.permute.xlu1 %1507  ;;  %2233 = vmatprep.subr.mxu1 %v2004_v26  ;;  %v2419_v26 = vld [vmem:[%s8765_s12 + $0x140] sm:$0xff] }
 0x4ef   :  { %v1516_v46 = vsel %vm1515_vm3, %v1514_v45, %v1508_v43  ;;  %v2003_v43 = vld [vmem:[%s8755_s30 + $0xe0] sm:$0xff]  ;;  %v1996_v45 = vld [vmem:[%s8755_s30 + $0xa8] sm:$0xff] }
 0x4f3   :  { %v1512_v47 = vpop.permute.xlu1 %1511 }
 0x4f4   :  { %v1518_v48 = vsel %vm1517_vm4, %v1516_v46, %v1512_v47  ;;  %v1998_v46 = vld [vmem:[%s8755_s30 + $0xb8] sm:$0xff] }
 0x4f5   :  { %8153 = vmatprep.mubr.msk.f32.mxu0 %vm229_vm0, %v1518_v48  ;;  %v1995_v48 = vld [vmem:[%s8755_s30 + $0xa0] sm:$0xff] }
 0x4f7   :  { %v1823_v49 = vpop.permute.xlu0 %1822 }
 0x4f8   :  { %v1833_v50 = vsel %vm483_vm2, %v1588_v32, %v1823_v49  ;;  %v1997_v49 = vld [vmem:[%s8755_s30 + $0xb0] sm:$0xff] }
 0x4fb   :  { %v1827_v51 = vpop.permute.xlu0 %1826  ;;  %v1831_v52 = vpop.permute.xlu1 %1830 }
 0x4fc   :  { %v1834_v53 = vsel %vm1515_vm3, %v1833_v50, %v1827_v51  ;;  %v1988_v51 = vld [vmem:[%s8755_s30 + $0x68] sm:$0xff] }
 0x4fd   :  { %v1835_v54 = vsel %vm1517_vm4, %v1834_v53, %v1831_v52  ;;  %v1990_v52 = vld [vmem:[%s8755_s30 + $0x78] sm:$0xff]  ;;  %v1987_v53 = vld [vmem:[%s8755_s30 + $0x60] sm:$0xff] }
 0x4fe   :  { %8154 = vmatmul.mubr.msk.f32.vlgmr.msra.gmra.mxu0 %vm229_vm0, %v1835_v54  ;;  %v1989_v54 = vld [vmem:[%s8755_s30 + $0x70] sm:$0xff] }
 0x4ff   :  { %2196 = vmatprep.mubr.f32.mxu0 %v8679_v10  ;;  %2157 = vmatpush1.msra.mxu0 %v2001_v14  ;;  %v2390_v14 = vld [vmem:[%s8765_s12 + $0x58] sm:$0xff] }
 0x500   :  { %2158 = vmatprep.subr.mxu0 %v1994_v16  ;;  %v2405_v16 = vld [vmem:[%s8765_s12 + $0xd0] sm:$0xff] }
 0x501   :  { %2159 = vmatpush1.msra.mxu0 %v1993_v39  ;;  %v2389_v39 = vld [vmem:[%s8765_s12 + $0x50] sm:$0xff] }
 0x502   :  { %2160 = vmatprep.subr.mxu0 %v1986_v19  ;;  %v2404_v19 = vld [vmem:[%s8765_s12 + $0xc8] sm:$0xff] }
 0x503   :  { %2161 = vmatpush1.msra.mxu0 %v1985_v21  ;;  %v2388_v21 = vld [vmem:[%s8765_s12 + $0x48] sm:$0xff] }
 0x504   :  { %2162 = vmatprep.subr.mxu0 %v1978_v23  ;;  %v2403_v23 = vld [vmem:[%s8765_s12 + $0xc0] sm:$0xff] }
 0x505   :  { %2163 = vmatpush1.msra.mxu0 %v1977_v25  ;;  %v2387_v25 = vld [vmem:[%s8765_s12 + $0x40] sm:$0xff] }
 0x506   :  { %2310 = vmatprep.subr.mxu0 %v2006_v27  ;;  %v2402_v27 = vld [vmem:[%s8765_s12 + $0xb8] sm:$0xff] }
 0x5be   :  { %v8155_v56 = vpop.f32.mrf.mxu0 }
 0x5bf   :  { %v1925_v57 = vadd.f32 %v8155_v56, %v7448_v55  ;;  %v1982_v56 = vld [vmem:[%s8755_s30 + $0x38] sm:$0xff] }
 0x5c0   :  { %v1919_v58 = vpop.f32.mrf.mxu0 }
 0x5c1   :  { %v1920_v59 = vadd.f32 %v7448_v55, %v1919_v58  ;;  %v1929_v60 = vadd.f32 %v1925_v57, %v8938_v9  ;;  %v1980_v55 = vld [vmem:[%s8755_s30 + $0x28] sm:$0xff]  ;;  %v1979_v57 = vld [vmem:[%s8755_s30 + $0x20] sm:$0xff]  ;;  %v1981_v58 = vld [vmem:[%s8755_s30 + $0x30] sm:$0xff]  ;;  %s10002_s30 = sld [smem:[#allocation14_spill]] }
 0x5c3   :  { %v1933_v61 = vsel %vm229_vm0, %v1929_v60, 0.0  ;;  %v1928_v62 = vadd.f32 %v1920_v59, %v8935_v8  ;;  %v2410_v59 = vld [vmem:[%s8765_s12 + $0xf8] sm:$0xff] }
 0x5c4   :  { %1934 = vadd.xlane.f32.xlu1 %v1933_v61  ;;  %v2394_v61 = vld [vmem:[%s8765_s12 + $0x78] sm:$0xff] }
 0x5c5   :  { %v1930_v63 = vsel %vm229_vm0, %v1928_v62, 0.0 }
 0x5c6   :  { %1931 = vadd.xlane.f32.xlu0 %v1930_v63  ;;  %v2409_v63 = vld [vmem:[%s8765_s12 + $0xf0] sm:$0xff] }
 0x64d   :  { %v1935_v0 = vpop.xlane.xlu1 %1934 }
 0x64e   :  { %v1938_v1 = vmul.f32 0.03125, %v1935_v0  ;;  %v2441_v0 = vld [vmem:[%s8765_s12 + $0x1f0] sm:$0xff] }
 0x64f   :  { %v1932_v2 = vpop.xlane.xlu0 %1931 }
 0x650   :  { %v1937_v3 = vmul.f32 0.03125, %v1932_v2  ;;  %v1940_v4 = vsub.f32 %v1929_v60, %v1938_v1  ;;  %v2442_v60 = vld [vmem:[%s8765_s12 + $0x1f8] sm:$0xff]  ;;  %v2393_v1 = vld [vmem:[%s8765_s12 + $0x70] sm:$0xff] }
 0x651   :  { %v2425_v2 = vld [vmem:[%s8765_s12 + $0x170] sm:$0xff] }
 0x652   :  { %v1939_v5 = vsub.f32 %v1928_v62, %v1937_v3  ;;  %v1942_v8 = vmul.f32 %v1940_v4, %v1940_v4  ;;  %v2426_v62 = vld [vmem:[%s8765_s12 + $0x178] sm:$0xff]  ;;  %v2408_v3 = vld [vmem:[%s8765_s12 + $0xe8] sm:$0xff] }
 0x654   :  { %v1941_v9 = vmul.f32 %v1939_v5, %v1939_v5  ;;  %v1946_v7 = vsel %vm229_vm0, %v1942_v8, 0.0  ;;  %v2439_v8 = vld [vmem:[%s8765_s12 + $0x1e0] sm:$0xff] }
 0x656   :  { %v1943_v6 = vsel %vm229_vm0, %v1941_v9, 0.0  ;;  %v2424_v9 = vld [vmem:[%s8765_s12 + $0x168] sm:$0xff] }
 0x657   :  { %1944 = vadd.xlane.f32.xlu0 %v1943_v6  ;;  %v2407_v6 = vld [vmem:[%s8765_s12 + $0xe0] sm:$0xff] }
 0x65b   :  { %1947 = vadd.xlane.f32.xlu0 %v1946_v7  ;;  %v2391_v7 = vld [vmem:[%s8765_s12 + $0x60] sm:$0xff] }
 0x6e0   :  { %v1945_v28 = vpop.xlane.xlu0 %1944 }
 0x6e1   :  { %v1949_v29 = vmul.f32 0.03125, %v1945_v28  ;;  %v2434_v28 = vld [vmem:[%s8765_s12 + $0x1b8] sm:$0xff] }
 0x6e3   :  { %v1951_v30 = vadd.f32 1e-05, %v1949_v29  ;;  %v2386_v29 = vld [vmem:[%s8765_s12 + $0x38] sm:$0xff] }
 0x6e4   :  { %v1948_v31 = vpop.xlane.xlu0 %1947 }
 0x6e5   :  { %8503 = vrsqrt.f32 %v1951_v30  ;;  %v1950_v32 = vmul.f32 0.03125, %v1948_v31  ;;  %v2418_v30 = vld [vmem:[%s8765_s12 + $0x138] sm:$0xff]  ;;  %v2401_v31 = vld [vmem:[%s8765_s12 + $0xb0] sm:$0xff] }
 0x6e7   :  { %v1952_v33 = vadd.f32 1e-05, %v1950_v32  ;;  %v2433_v32 = vld [vmem:[%s8765_s12 + $0x1b0] sm:$0xff] }
 0x6e9   :  { %8505 = vrsqrt.f32 %v1952_v33  ;;  %v2385_v33 = vld [vmem:[%s8765_s12 + $0x30] sm:$0xff] }
 0x6f2   :  { %v8504_v34 = vpop.eup %8503 }
 0x6f3   :  { %v1955_v36 = vmul.f32 %v8504_v34, %v1939_v5  ;;  %v2392_v5 = vld [vmem:[%s8765_s12 + $0x68] sm:$0xff]  ;;  %v2417_v34 = vld [vmem:[%s8765_s12 + $0x130] sm:$0xff] }
 0x6f5   :  { %v1964_v38 = vmul.f32 %v7451_v35, %v1955_v36  ;;  %v2432_v36 = vld [vmem:[%s8765_s12 + $0x1a8] sm:$0xff] }
 0x6f6   :  { %v8506_v40 = vpop.eup %8505 }
 0x6f7   :  { %v1956_v41 = vmul.f32 %v8506_v40, %v1940_v4  ;;  %v9122_v42 = vadd.f32 %v7452_v37, %v1964_v38  ;;  %v2440_v4 = vld [vmem:[%s8765_s12 + $0x1e8] sm:$0xff]  ;;  %v2399_v40 = vld [vmem:[%s8765_s12 + $0xa0] sm:$0xff] }
 0x6f8   :  { %v2416_v38 = vld [vmem:[%s8765_s12 + $0x128] sm:$0xff] }
 0x6f9   :  { %7453 = vmatmul.mubr.msk.f32.vlgmr.msra.gmra.mxu1 %vm229_vm0, %v9122_v42  ;;  %7455 = vmatmul.mubr.msk.f32.vlgmr.msra.gmra.mxu0 %vm229_vm0, %v9122_v42  ;;  %v1965_v47 = vmul.f32 %v7451_v35, %v1956_v41  ;;  %v2400_v35 = vld [vmem:[%s8765_s12 + $0xa8] sm:$0xff]  ;;  %v2431_v41 = vld [vmem:[%s8765_s12 + $0x1a0] sm:$0xff] }
 0x6fa   :  { %2234 = vmatpush1.msra.mxu1 %v2003_v43  ;;  %2311 = vmatpush1.msra.mxu0 %v2005_v44  ;;  %v2383_v43 = vld [vmem:[%s8765_s12 + $0x20] sm:$0xff] }
 0x6fb   :  { %2235 = vmatprep.subr.mxu1 %v1996_v45  ;;  %2312 = vmatprep.subr.mxu0 %v1998_v46  ;;  %v9134_v50 = vadd.f32 %v7452_v37, %v1965_v47  ;;  %v2384_v37 = vld [vmem:[%s8765_s12 + $0x28] sm:$0xff]  ;;  %v2415_v44 = vld [vmem:[%s8765_s12 + $0x120] sm:$0xff]  ;;  %v2398_v45 = vld [vmem:[%s8765_s12 + $0x98] sm:$0xff] }
 0x6fc   :  { %2125 = vmatprep.mubr.f32.mxu1 %v8679_v10  ;;  %2202 = vmatprep.mubr.f32.mxu0 %v8679_v10  ;;  %v2430_v46 = vld [vmem:[%s8765_s12 + $0x198] sm:$0xff] }
 0x6fd   :  { %2236 = vmatpush1.msra.mxu1 %v1995_v48  ;;  %2313 = vmatpush1.msra.mxu0 %v1997_v49  ;;  %v2382_v47 = vld [vmem:[%s8765_s12 + $0x18] sm:$0xff]  ;;  %v2397_v49 = vld [vmem:[%s8765_s12 + $0x90] sm:$0xff] }
 0x6fe   :  { %7454 = vmatmul.mubr.msk.f32.gmra.mxu1 %vm229_vm0, %v9134_v50  ;;  %7456 = vmatmul.mubr.msk.f32.gmra.mxu0 %vm229_vm0, %v9134_v50  ;;  %v2414_v48 = vld [vmem:[%s8765_s12 + $0x118] sm:$0xff] }
 0x6ff   :  { %2237 = vmatprep.subr.mxu1 %v1988_v51  ;;  %2314 = vmatprep.subr.mxu0 %v1990_v52  ;;  %v2429_v51 = vld [vmem:[%s8765_s12 + $0x190] sm:$0xff] }
 0x700   :  { %2238 = vmatpush1.msra.mxu1 %v1987_v53  ;;  %2315 = vmatpush1.msra.mxu0 %v1989_v54  ;;  %v2381_v52 = vld [vmem:[%s8765_s12 + $0x10] sm:$0xff]  ;;  %v2396_v54 = vld [vmem:[%s8765_s12 + $0x88] sm:$0xff] }
 0x701   :  { %2239 = vmatprep.subr.mxu1 %v1980_v55  ;;  %2316 = vmatprep.subr.mxu0 %v1982_v56  ;;  %v2413_v53 = vld [vmem:[%s8765_s12 + $0x110] sm:$0xff]  ;;  %v2428_v55 = vld [vmem:[%s8765_s12 + $0x188] sm:$0xff] }
 0x702   :  { %2240 = vmatpush1.msra.mxu1 %v1979_v57  ;;  %2273 = vmatprep.mubr.f32.mxu1 %v8679_v10  ;;  %v2380_v56 = vld [vmem:[%s8765_s12 + $0x8] sm:$0xff] }
 0x703   :  { %2317 = vmatpush1.msra.mxu0 %v1981_v58  ;;  %2350 = vmatprep.mubr.f32.mxu0 %v8679_v10  ;;  %v2412_v57 = vld [vmem:[%s8765_s12 + $0x108] sm:$0xff]  ;;  %v2395_v58 = vld [vmem:[%s8765_s12 + $0x80] sm:$0xff] }
 0x704   :  { %7457 = vmatmul.mubr.msk.f32.vlgmr.msra.gmra.mxu1 %vm229_vm0, %v9122_v42  ;;  %7459 = vmatmul.mubr.msk.f32.vlgmr.msra.gmra.mxu0 %vm229_vm0, %v9122_v42 }
 0x705   :  { %2279 = vmatprep.mubr.f32.mxu1 %v8679_v10  ;;  %2356 = vmatprep.mubr.f32.mxu0 %v8679_v10 }
 0x706   :  { %7610 = vmatprep.subr.mxu1 %v2410_v59  ;;  %7648 = vmatprep.subr.mxu0 %v2442_v60  ;;  %v2427_v59 = vld [vmem:[%s8765_s12 + $0x180] sm:$0xff] }
 0x707   :  { %7611 = vmatpush3.msra.mxu1 %v2394_v61  ;;  %7649 = vmatpush3.msra.mxu0 %v2426_v62  ;;  %v2379_v60 = vld [vmem:[%s8765_s12] sm:$0xff]  ;;  %v2474_v62 = vld [vmem:[%s8765_s12 + $0x2f8] sm:$0xff] }
 0x708   :  { %7458 = vmatmul.mubr.msk.f32.gmra.mxu1 %vm229_vm0, %v9134_v50  ;;  %7460 = vmatmul.mubr.msk.f32.gmra.mxu0 %vm229_vm0, %v9134_v50  ;;  %v2411_v61 = vld [vmem:[%s8765_s12 + $0x100] sm:$0xff] }
 0x709   :  { %7612 = vmatprep.subr.mxu1 %v2409_v63  ;;  %7650 = vmatprep.subr.mxu0 %v2441_v0  ;;  %v2506_v63 = vld [vmem:[%s8765_s12 + $0x3f8] sm:$0xff]  ;;  %v2009_v0 = vlaneseq }
 0x70a   :  { %7613 = vmatpush3.msra.mxu1 %v2393_v1  ;;  %7651 = vmatpush3.msra.mxu0 %v2425_v2 }
 0x70b   :  { %7614 = vmatprep.subr.mxu1 %v2408_v3  ;;  %7652 = vmatprep.subr.mxu0 %v2440_v4  ;;  %v9229_v1 = vshrl.u32 %v2009_v0, 7  ;;  %v9234_v4 = vld [vmem:[%s9996_s29] sm:$0xff]  ;;  %s10024_s29 = sld [smem:[#allocation36_spill]] }
 0x70c   :  { %7615 = vmatpush3.msra.mxu1 %v2392_v5  ;;  %7653 = vmatpush3.msra.mxu0 %v2424_v9 }
 0x70d   :  { %7616 = vmatprep.subr.mxu1 %v2407_v6  ;;  %7654 = vmatprep.subr.mxu0 %v2439_v8  ;;  %v2011_v2 = vsub.s32 0, %v9229_v1  ;;  %v2019_v3 = vsub.s32 2, %v9229_v1  ;;  %v2015_v5 = vsub.s32 1, %v9229_v1  ;;  %v2023_v9 = vsub.s32 3, %v9229_v1 }
 0x70e   :  { %7617 = vmatpush3.msra.mxu1 %v2391_v7  ;;  %7655 = vmatpush3.msra.mxu0 %v2423_v11 }
 0x70f   :  { %7618 = vmatprep.subr.mxu1 %v2406_v12  ;;  %7656 = vmatprep.subr.mxu0 %v2438_v13  ;;  %v2012_v6 = vrot.slane %v9234_v4, %v2011_v2  ;;  %v2020_v8 = vrot.slane %v9234_v4, %v2019_v3  ;;  %v2016_v7 = vrot.slane %v9234_v4, %v2015_v5 }
 0x710   :  { %7619 = vmatpush3.msra.mxu1 %v2390_v14  ;;  %7657 = vmatpush3.msra.mxu0 %v2422_v15  ;;  %v2024_v11 = vrot.slane %v9234_v4, %v2023_v9 }
 0x711   :  { %7620 = vmatprep.subr.mxu1 %v2405_v16  ;;  %7658 = vmatprep.subr.mxu0 %v2437_v17 }
 0x712   :  { %7621 = vmatpush3.msra.mxu1 %v2389_v39  ;;  %7659 = vmatpush3.msra.mxu0 %v2421_v18 }
 0x713   :  { %7622 = vmatprep.subr.mxu1 %v2404_v19  ;;  %7660 = vmatprep.subr.mxu0 %v2436_v20 }
 0x714   :  { %7623 = vmatpush3.msra.mxu1 %v2388_v21  ;;  %7661 = vmatpush3.msra.mxu0 %v2420_v22 }
 0x715   :  { %7624 = vmatprep.subr.mxu1 %v2403_v23  ;;  %7662 = vmatprep.subr.mxu0 %v2435_v24 }
 0x716   :  { %7625 = vmatpush3.msra.mxu1 %v2387_v25  ;;  %7663 = vmatpush3.msra.mxu0 %v2419_v26  ;;  %v2458_v25 = vld [vmem:[%s8765_s12 + $0x278] sm:$0xff] }
 0x717   :  { %7626 = vmatprep.subr.mxu1 %v2402_v27  ;;  %7664 = vmatprep.subr.mxu0 %v2434_v28  ;;  %v2490_v26 = vld [vmem:[%s8765_s12 + $0x378] sm:$0xff]  ;;  %v2031_v27 = vsub.s32 5, %v9229_v1  ;;  %v2039_v28 = vsub.s32 7, %v9229_v1 }
 0x718   :  { %7627 = vmatpush3.msra.mxu1 %v2386_v29  ;;  %7665 = vmatpush3.msra.mxu0 %v2418_v30 }
 0x719   :  { %7628 = vmatprep.subr.mxu1 %v2401_v31  ;;  %7666 = vmatprep.subr.mxu0 %v2433_v32  ;;  %v2473_v32 = vld [vmem:[%s8765_s12 + $0x2f0] sm:$0xff] }
 0x71a   :  { %7629 = vmatpush3.msra.mxu1 %v2385_v33  ;;  %7667 = vmatpush3.msra.mxu0 %v2417_v34  ;;  %v2505_v33 = vld [vmem:[%s8765_s12 + $0x3f0] sm:$0xff] }
 0x71b   :  { %7630 = vmatprep.subr.mxu1 %v2400_v35  ;;  %7668 = vmatprep.subr.mxu0 %v2432_v36 }
 0x71c   :  { %7631 = vmatpush3.msra.mxu1 %v2384_v37  ;;  %7669 = vmatpush3.msra.mxu0 %v2416_v38  ;;  %v2457_v37 = vld [vmem:[%s8765_s12 + $0x270] sm:$0xff] }
 0x71d   :  { %7632 = vmatprep.subr.mxu1 %v2399_v40  ;;  %7670 = vmatprep.subr.mxu0 %v2431_v41  ;;  %v2489_v38 = vld [vmem:[%s8765_s12 + $0x370] sm:$0xff] }
 0x71e   :  { %7633 = vmatpush3.msra.mxu1 %v2383_v43  ;;  %7671 = vmatpush3.msra.mxu0 %v2415_v44  ;;  %v9261_v43 = vrot.slane %v9234_v4, %v2031_v27  ;;  %v9266_v44 = vrot.slane %v9234_v4, %v2039_v28 }
 0x71f   :  { %7634 = vmatprep.subr.mxu1 %v2398_v45  ;;  %7672 = vmatprep.subr.mxu0 %v2430_v46  ;;  %v2472_v45 = vld [vmem:[%s8765_s12 + $0x2e8] sm:$0xff] }
 0x720   :  { %7635 = vmatpush3.msra.mxu1 %v2382_v47  ;;  %7673 = vmatpush3.msra.mxu0 %v2414_v48  ;;  %v2504_v46 = vld [vmem:[%s8765_s12 + $0x3e8] sm:$0xff] }
 0x721   :  { %7636 = vmatprep.subr.mxu1 %v2397_v49  ;;  %7674 = vmatprep.subr.mxu0 %v2429_v51 }
 0x722   :  { %7637 = vmatpush3.msra.mxu1 %v2381_v52  ;;  %7675 = vmatpush3.msra.mxu0 %v2413_v53  ;;  %v2456_v52 = vld [vmem:[%s8765_s12 + $0x268] sm:$0xff] }
 0x723   :  { %7638 = vmatprep.subr.mxu1 %v2396_v54  ;;  %7676 = vmatprep.subr.mxu0 %v2428_v55  ;;  %v2488_v53 = vld [vmem:[%s8765_s12 + $0x368] sm:$0xff] }
 0x724   :  { %7639 = vmatpush3.msra.mxu1 %v2380_v56  ;;  %7677 = vmatpush3.msra.mxu0 %v2412_v57  ;;  %v2471_v56 = vld [vmem:[%s8765_s12 + $0x2e0] sm:$0xff] }
 0x725   :  { %7640 = vmatprep.subr.mxu1 %v2395_v58  ;;  %7678 = vmatprep.subr.mxu0 %v2427_v59  ;;  %v2503_v57 = vld [vmem:[%s8765_s12 + $0x3e0] sm:$0xff] }
 0x726   :  { %7641 = vmatpush3.msra.mxu1 %v2379_v60  ;;  %7679 = vmatpush3.msra.mxu0 %v2411_v61  ;;  %v2455_v60 = vld [vmem:[%s8765_s12 + $0x260] sm:$0xff] }
 0x727   :  { %7686 = vmatprep.subr.mxu1 %v2474_v62  ;;  %7724 = vmatprep.subr.mxu0 %v2506_v63  ;;  %v2487_v61 = vld [vmem:[%s8765_s12 + $0x360] sm:$0xff]  ;;  %v2470_v62 = vld [vmem:[%s8765_s12 + $0x2d8] sm:$0xff] }
 0x7b9   :  { %v2121_v12 = vpop.f32.mrf.mxu1  ;;  %v2198_v13 = vpop.f32.mrf.mxu0 }
 0x7ba   :  { %v2122_v14 = vadd.f32 %v2121_v12, %v2012_v6  ;;  %v2199_v15 = vadd.f32 %v2198_v13, %v2020_v8  ;;  %v2469_v12 = vld [vmem:[%s8765_s12 + $0x2d0] sm:$0xff] }
 0x7bb   :  { %v2123_v16 = vpop.f32.mrf.mxu1  ;;  %v2200_v17 = vpop.f32.mrf.mxu0  ;;  %v2501_v13 = vld [vmem:[%s8765_s12 + $0x3d0] sm:$0xff] }
 0x7bc   :  { %v2124_v39 = vadd.f32 %v2123_v16, %v2016_v7  ;;  %v2201_v18 = vadd.f32 %v2200_v17, %v2024_v11  ;;  %v2363_v23 = vmax.f32 %v2122_v14, 0.0  ;;  %v2365_v24 = vmax.f32 %v2199_v15, 0.0  ;;  %v2453_v14 = vld [vmem:[%s8765_s12 + $0x250] sm:$0xff]  ;;  %v2468_v16 = vld [vmem:[%s8765_s12 + $0x2c8] sm:$0xff] }
 0x7bd   :  { %v2485_v15 = vld [vmem:[%s8765_s12 + $0x350] sm:$0xff]  ;;  %v2500_v17 = vld [vmem:[%s8765_s12 + $0x3c8] sm:$0xff] }
 0x7be   :  { %v2364_v19 = vmax.f32 %v2124_v39, 0.0  ;;  %v2366_v20 = vmax.f32 %v2201_v18, 0.0  ;;  %v2127_v21 = vpop.f32.mrf.mxu1  ;;  %v2204_v22 = vpop.f32.mrf.mxu0  ;;  %v2452_v39 = vld [vmem:[%s8765_s12 + $0x248] sm:$0xff] }
 0x7bf   :  { %v2128_v29 = vadd.f32 %v2127_v21, %v2012_v6  ;;  %v2205_v34 = vadd.f32 %v2204_v22, %v2020_v8  ;;  %v2502_v8 = vld [vmem:[%s8765_s12 + $0x3d8] sm:$0xff]  ;;  %v2484_v18 = vld [vmem:[%s8765_s12 + $0x348] sm:$0xff]  ;;  %v2451_v21 = vld [vmem:[%s8765_s12 + $0x240] sm:$0xff] }
 0x7c0   :  { %v2129_v30 = vpop.f32.mrf.mxu1  ;;  %v2206_v31 = vpop.f32.mrf.mxu0  ;;  %2578 = vmatprep.mubr.f32.mxu1 %v2364_v19  ;;  %2653 = vmatprep.mubr.f32.mxu0 %v2366_v20  ;;  %v2467_v19 = vld [vmem:[%s8765_s12 + $0x2c0] sm:$0xff] }
 0x7c1   :  { %v2130_v35 = vadd.f32 %v2129_v30, %v2016_v7  ;;  %v2207_v36 = vadd.f32 %v2206_v31, %v2024_v11  ;;  %2579 = vmatmul.mubr.f32.vlgmr.msra.gmra.mxu1 %v2363_v23  ;;  %2654 = vmatmul.mubr.f32.vlgmr.msra.gmra.mxu0 %v2365_v24  ;;  %v2371_v49 = vmax.f32 %v2128_v29, 0.0  ;;  %v2373_v51 = vmax.f32 %v2205_v34, 0.0  ;;  %v2454_v7 = vld [vmem:[%s8765_s12 + $0x258] sm:$0xff]  ;;  %v2499_v20 = vld [vmem:[%s8765_s12 + $0x3c0] sm:$0xff]  ;;  %v2465_v29 = vld [vmem:[%s8765_s12 + $0x2b0] sm:$0xff] }
 0x7c2   :  { %7687 = vmatpush3.msra.mxu1 %v2458_v25  ;;  %7725 = vmatpush3.msra.mxu0 %v2490_v26  ;;  %v2486_v11 = vld [vmem:[%s8765_s12 + $0x358] sm:$0xff]  ;;  %v2483_v22 = vld [vmem:[%s8765_s12 + $0x340] sm:$0xff]  ;;  %v2497_v30 = vld [vmem:[%s8765_s12 + $0x3b0] sm:$0xff] }
 0x7c3   :  { %v2372_v40 = vmax.f32 %v2130_v35, 0.0  ;;  %v2374_v41 = vmax.f32 %v2207_v36, 0.0  ;;  %7688 = vmatprep.subr.mxu1 %v2473_v32  ;;  %7726 = vmatprep.subr.mxu0 %v2505_v33  ;;  %v2466_v23 = vld [vmem:[%s8765_s12 + $0x2b8] sm:$0xff]  ;;  %v2449_v31 = vld [vmem:[%s8765_s12 + $0x230] sm:$0xff]  ;;  %v2464_v33 = vld [vmem:[%s8765_s12 + $0x2a8] sm:$0xff]  ;;  %v2027_v35 = vsub.s32 4, %v9229_v1 }
 0x7c4   :  { %v9270_v47 = vpop.f32.mrf.mxu1  ;;  %v9272_v48 = vpop.f32.mrf.mxu0  ;;  %7689 = vmatpush3.msra.mxu1 %v2457_v37  ;;  %7727 = vmatpush3.msra.mxu0 %v2489_v38  ;;  %v2498_v24 = vld [vmem:[%s8765_s12 + $0x3b8] sm:$0xff]  ;;  %v2481_v32 = vld [vmem:[%s8765_s12 + $0x330] sm:$0xff]  ;;  %v2496_v34 = vld [vmem:[%s8765_s12 + $0x3a8] sm:$0xff]  ;;  %v2035_v36 = vsub.s32 6, %v9229_v1 }
 0x7c5   :  { %2583 = vmatprep.mubr.f32.mxu1 %v2372_v40  ;;  %2658 = vmatprep.mubr.f32.mxu0 %v2374_v41  ;;  %v2450_v25 = vld [vmem:[%s8765_s12 + $0x238] sm:$0xff]  ;;  %v2448_v37 = vld [vmem:[%s8765_s12 + $0x228] sm:$0xff]  ;;  %v2463_v40 = vld [vmem:[%s8765_s12 + $0x2a0] sm:$0xff] }
 0x7c6   :  { %v2277_v54 = vpop.f32.mrf.mxu1  ;;  %v2354_v55 = vpop.f32.mrf.mxu0  ;;  %7690 = vmatprep.subr.mxu1 %v2472_v45  ;;  %7728 = vmatprep.subr.mxu0 %v2504_v46  ;;  %v2482_v26 = vld [vmem:[%s8765_s12 + $0x338] sm:$0xff]  ;;  %v2480_v38 = vld [vmem:[%s8765_s12 + $0x328] sm:$0xff]  ;;  %v2495_v41 = vld [vmem:[%s8765_s12 + $0x3a0] sm:$0xff] }
 0x7c7   :  { %v2278_v58 = vadd.f32 %v2277_v54, %v9261_v43  ;;  %v2355_v59 = vadd.f32 %v2354_v55, %v9266_v44  ;;  %2584 = vmatmul.mubr.f32.gmra.mxu1 %v2371_v49  ;;  %2659 = vmatmul.mubr.f32.gmra.mxu0 %v2373_v51  ;;  %v2447_v45 = vld [vmem:[%s8765_s12 + $0x220] sm:$0xff]  ;;  %v2028_v54 = vrot.slane %v9234_v4, %v2027_v35 }
 0x7c8   :  { %7691 = vmatpush3.msra.mxu1 %v2456_v52  ;;  %7729 = vmatpush3.msra.mxu0 %v2488_v53  ;;  %v2479_v46 = vld [vmem:[%s8765_s12 + $0x320] sm:$0xff]  ;;  %v2281_v49 = vpop.f32.mrf.mxu1  ;;  %v2358_v51 = vpop.f32.mrf.mxu0  ;;  %v2462_v52 = vld [vmem:[%s8765_s12 + $0x298] sm:$0xff]  ;;  %v2036_v55 = vrot.slane %v9234_v4, %v2035_v36 }
 0x7c9   :  { %v2368_v63 = vmax.f32 %v2278_v58, 0.0  ;;  %v2370_v6 = vmax.f32 %v2355_v59, 0.0  ;;  %7692 = vmatprep.subr.mxu1 %v2471_v56  ;;  %7730 = vmatprep.subr.mxu0 %v2503_v57  ;;  %v2494_v53 = vld [vmem:[%s8765_s12 + $0x398] sm:$0xff]  ;;  %v2461_v58 = vld [vmem:[%s8765_s12 + $0x290] sm:$0xff] }
 0x7ca   :  { %7693 = vmatpush3.msra.mxu1 %v2455_v60  ;;  %7731 = vmatpush3.msra.mxu0 %v2487_v61  ;;  %v2446_v56 = vld [vmem:[%s8765_s12 + $0x218] sm:$0xff]  ;;  %v2493_v59 = vld [vmem:[%s8765_s12 + $0x390] sm:$0xff]  ;;  %v2360_v4 = vpop.f32.mrf.mxu0 }
 0x7cb   :  { %7694 = vmatprep.subr.mxu1 %v2470_v62  ;;  %2728 = vmatprep.mubr.f32.mxu1 %v2368_v63  ;;  %v2478_v57 = vld [vmem:[%s8765_s12 + $0x318] sm:$0xff]  ;;  %v2445_v60 = vld [vmem:[%s8765_s12 + $0x210] sm:$0xff]  ;;  %v2283_v62 = vpop.f32.mrf.mxu1  ;;  %v2460_v63 = vld [vmem:[%s8765_s12 + $0x288] sm:$0xff] }
 0x7cc   :  { %7732 = vmatprep.subr.mxu0 %v2502_v8  ;;  %2803 = vmatprep.mubr.f32.mxu0 %v2370_v6  ;;  %v2477_v61 = vld [vmem:[%s8765_s12 + $0x310] sm:$0xff]  ;;  %v2492_v6 = vld [vmem:[%s8765_s12 + $0x388] sm:$0xff]  ;;  %v2276_v8 = vadd.f32 %v9270_v47, %v2028_v54  ;;  %v2475_v47 = vld [vmem:[%s8765_s12 + $0x300] sm:$0xff] }
 0x7cd   :  { %7695 = vmatpush3.msra.mxu1 %v2454_v7  ;;  %7733 = vmatpush3.msra.mxu0 %v2486_v11  ;;  %v2353_v7 = vadd.f32 %v9272_v48, %v2036_v55  ;;  %v2444_v11 = vld [vmem:[%s8765_s12 + $0x208] sm:$0xff] }
 0x7ce   :  { %7696 = vmatprep.subr.mxu1 %v2469_v12  ;;  %7734 = vmatprep.subr.mxu0 %v2501_v13  ;;  %v2476_v12 = vld [vmem:[%s8765_s12 + $0x308] sm:$0xff]  ;;  %v2459_v13 = vld [vmem:[%s8765_s12 + $0x280] sm:$0xff]  ;;  %v2367_v48 = vmax.f32 %v2276_v8, 0.0 }
 0x7cf   :  { %7697 = vmatpush3.msra.mxu1 %v2453_v14  ;;  %7735 = vmatpush3.msra.mxu0 %v2485_v15  ;;  %v2491_v14 = vld [vmem:[%s8765_s12 + $0x380] sm:$0xff]  ;;  %v2284_v15 = vadd.f32 %v2283_v62, %v9261_v43  ;;  %v2359_v43 = vadd.f32 %v2358_v51, %v2036_v55 }
 0x7d0   :  { %7698 = vmatprep.subr.mxu1 %v2468_v16  ;;  %7736 = vmatprep.subr.mxu0 %v2500_v17  ;;  %v2361_v16 = vadd.f32 %v2360_v4, %v9266_v44  ;;  %v2443_v17 = vld [vmem:[%s8765_s12 + $0x200] sm:$0xff]  ;;  %s10003_s12 = sld [smem:[#allocation16_spill]] }
 0x7d1   :  { %7699 = vmatpush3.msra.mxu1 %v2452_v39  ;;  %7737 = vmatpush3.msra.mxu0 %v2484_v18  ;;  %v2369_v39 = vmax.f32 %v2353_v7, 0.0  ;;  %v2869_v18 = vld [vmem:[%s9997_s3 + $0x18] sm:$0xff] }
 0x7d2   :  { %7700 = vmatprep.subr.mxu1 %v2467_v19  ;;  %7738 = vmatprep.subr.mxu0 %v2499_v20  ;;  %v2961_v19 = vld [vmem:[%s9998_s8 + $0x18] sm:$0xff]  ;;  %v2282_v20 = vadd.f32 %v2281_v49, %v2028_v54  ;;  %v2378_v44 = vmax.f32 %v2361_v16, 0.0 }
 0x7d3   :  { %7701 = vmatpush3.msra.mxu1 %v2451_v21  ;;  %7739 = vmatpush3.msra.mxu0 %v2483_v22  ;;  %v2376_v21 = vmax.f32 %v2284_v15, 0.0  ;;  %v2868_v22 = vld [vmem:[%s9997_s3 + $0x10] sm:$0xff] }
 0x7d4   :  { %7702 = vmatprep.subr.mxu1 %v2466_v23  ;;  %7740 = vmatprep.subr.mxu0 %v2498_v24  ;;  %v2960_v23 = vld [vmem:[%s9998_s8 + $0x10] sm:$0xff]  ;;  %v2375_v24 = vmax.f32 %v2282_v20, 0.0 }
 0x7d5   :  { %7703 = vmatpush3.msra.mxu1 %v2450_v25  ;;  %7741 = vmatpush3.msra.mxu0 %v2482_v26  ;;  %v2377_v25 = vmax.f32 %v2359_v43, 0.0  ;;  %v2867_v26 = vld [vmem:[%s9997_s3 + $0x8] sm:$0xff] }
 0x7d6   :  { %7704 = vmatprep.subr.mxu1 %v2465_v29  ;;  %7742 = vmatprep.subr.mxu0 %v2497_v30  ;;  %v2959_v29 = vld [vmem:[%s9998_s8 + $0x8] sm:$0xff]  ;;  %v2866_v30 = vld [vmem:[%s9997_s3] sm:$0xff] }
 0x7d7   :  { %7705 = vmatpush3.msra.mxu1 %v2449_v31  ;;  %7743 = vmatpush3.msra.mxu0 %v2481_v32  ;;  %v2958_v31 = vld [vmem:[%s9998_s8] sm:$0xff] }
 0x7d8   :  { %7706 = vmatprep.subr.mxu1 %v2464_v33  ;;  %7744 = vmatprep.subr.mxu0 %v2496_v34  ;;  %v9351_v32 = vld [vmem:[%s9999_s14] sm:$0xff]  ;;  %v9354_v33 = vld [vmem:[%s9999_s14 + $0x8] sm:$0xff]  ;;  %v3047_v34 = vld [vmem:[%s10000_s19 + $0x18] sm:$0xff] }
 0x7d9   :  { %7707 = vmatpush3.msra.mxu1 %v2448_v37  ;;  %7745 = vmatpush3.msra.mxu0 %v2480_v38  ;;  %v3046_v37 = vld [vmem:[%s10000_s19 + $0x10] sm:$0xff] }
 0x7da   :  { %7708 = vmatprep.subr.mxu1 %v2463_v40  ;;  %7746 = vmatprep.subr.mxu0 %v2495_v41  ;;  %v7461_v41 = vld [vmem:[%s10001_s24] ss:$0 sm:$0xff] }
 0x7db   :  { %7709 = vmatpush3.msra.mxu1 %v2447_v45  ;;  %7747 = vmatpush3.msra.mxu0 %v2479_v46 }
 0x7dc   :  { %7710 = vmatprep.subr.mxu1 %v2462_v52  ;;  %7748 = vmatprep.subr.mxu0 %v2494_v53 }
 0x7dd   :  { %7711 = vmatpush3.msra.mxu1 %v2446_v56  ;;  %7749 = vmatpush3.msra.mxu0 %v2478_v57 }
 0x7de   :  { %7712 = vmatprep.subr.mxu1 %v2461_v58  ;;  %7750 = vmatprep.subr.mxu0 %v2493_v59 }
 0x7df   :  { %7713 = vmatpush3.msra.mxu1 %v2445_v60  ;;  %7751 = vmatpush3.msra.mxu0 %v2477_v61 }
 0x7e0   :  { %7714 = vmatprep.subr.mxu1 %v2460_v63  ;;  %7752 = vmatprep.subr.mxu0 %v2492_v6  ;;  %v3045_v63 = vld [vmem:[%s10000_s19 + $0x8] sm:$0xff]  ;;  %v3044_v6 = vld [vmem:[%s10000_s19] sm:$0xff] }
 0x7e1   :  { %7715 = vmatpush3.msra.mxu1 %v2444_v11  ;;  %7753 = vmatpush3.msra.mxu0 %v2476_v12 }
 0x7e2   :  { %7716 = vmatprep.subr.mxu1 %v2459_v13  ;;  %7754 = vmatprep.subr.mxu0 %v2491_v14 }
 0x7e3   :  { %7717 = vmatpush3.msra.mxu1 %v2443_v17  ;;  %7755 = vmatpush3.msra.mxu0 %v2475_v47 }
 0x7e4   :  { %2729 = vmatmul.mubr.f32.vlgmr.msra.gmra.mxu1 %v2367_v48  ;;  %2804 = vmatmul.mubr.f32.vlgmr.msra.gmra.mxu0 %v2369_v39 }
 0x7e5   :  { %8156 = vmatprep.subr.mxu1 %v2869_v18  ;;  %8167 = vmatprep.subr.mxu0 %v2961_v19 }
 0x7e6   :  { %2733 = vmatprep.mubr.f32.mxu1 %v2376_v21  ;;  %2808 = vmatprep.mubr.f32.mxu0 %v2378_v44 }
 0x7e7   :  { %8157 = vmatpush3.msra.mxu1 %v2869_v18  ;;  %8168 = vmatpush3.msra.mxu0 %v2961_v19  ;;  %v7464_v18 = vld [vmem:[%s10002_s30] ss:$0 sm:$0xff] }
 0x7e8   :  { %8158 = vmatprep.subr.mxu1 %v2868_v22  ;;  %8169 = vmatprep.subr.mxu0 %v2960_v23  ;;  %v7467_v19 = vld [vmem:[%s10003_s12] ss:$0 sm:$0xff] }
 0x7e9   :  { %8159 = vmatpush3.msra.mxu1 %v2868_v22  ;;  %8170 = vmatpush3.msra.mxu0 %v2960_v23 }
 0x7ea   :  { %2734 = vmatmul.mubr.f32.gmra.mxu1 %v2375_v24  ;;  %2809 = vmatmul.mubr.f32.gmra.mxu0 %v2377_v25 }
 0x7eb   :  { %8160 = vmatprep.subr.mxu1 %v2867_v26  ;;  %8171 = vmatprep.subr.mxu0 %v2959_v29 }
 0x7ec   :  { %8161 = vmatpush3.msra.mxu1 %v2867_v26  ;;  %8172 = vmatpush3.msra.mxu0 %v2959_v29 }
 0x7ed   :  { %8162 = vmatprep.subr.mxu1 %v2866_v30  ;;  %8173 = vmatprep.subr.mxu0 %v2958_v31 }
 0x7ee   :  { %8163 = vmatpush3.msra.mxu1 %v2866_v30  ;;  %8164 = vmatprep.mubr.msk.f32.mxu1 %vm229_vm0, %v9351_v32 }
 0x7ef   :  { %8174 = vmatpush3.msra.mxu0 %v2958_v31  ;;  %8175 = vmatprep.mubr.msk.f32.mxu0 %vm229_vm0, %v9351_v32 }
 0x7f0   :  { %8165 = vmatmul.mubr.msk.f32.vlgmr.msra.gmra.mxu1 %vm229_vm0, %v9354_v33  ;;  %8176 = vmatmul.mubr.msk.f32.vlgmr.msra.gmra.mxu0 %vm229_vm0, %v9354_v33 }
 0x7f1   :  { %8189 = vmatprep.subr.mxu0 %v8679_v10  ;;  %8191 = vmatprep.mubr.msk.f32.mxu0 %vm8680_vm1, %v8679_v10 }
 0x7f2   :  { %8186 = vmatprep.mubr.msk.f32.mxu1 %vm229_vm0, %v9351_v32  ;;  %8178 = vmatprep.subr.mxu1 %v3047_v34 }
 0x7f3   :  { %8179 = vmatpush3.msra.mxu1 %v3047_v34 }
 0x7f4   :  { %8180 = vmatprep.subr.mxu1 %v3046_v37 }
 0x7f5   :  { %8181 = vmatpush3.msra.mxu1 %v3046_v37 }
 0x7f6   :  { %8182 = vmatprep.subr.mxu1 %v3045_v63 }
 0x7f7   :  { %8183 = vmatpush3.msra.mxu1 %v3045_v63 }
 0x7f8   :  { %8184 = vmatprep.subr.mxu1 %v3044_v6 }
 0x7f9   :  { %8185 = vmatpush3.msra.mxu1 %v3044_v6 }
 0x7fa   :  { %8187 = vmatmul.mubr.msk.f32.vlgmr.msra.gmra.mxu1 %vm229_vm0, %v9354_v33  ;;  %8194 = vmatprep.subr.mxu1 %v8679_v10 }
 0x7fb   :  { %8196 = vmatprep.mubr.msk.f32.mxu1 %vm8680_vm1, %v8679_v10 }
 0x881   :  { %v7642_v38 = vpop.f32.mrf.mxu1  ;;  %v7680_v40 = vpop.f32.mrf.mxu0 }
 0x883   :  { %v7643_v45 = vpop.f32.mrf.mxu1  ;;  %v7681_v46 = vpop.f32.mrf.mxu0 }
 0x884   :  { %v7644_v49 = vadd.f32 %v7643_v45, %v7642_v38  ;;  %v7682_v51 = vadd.f32 %v7681_v46, %v7680_v40 }
 0x886   :  { %v2581_v52 = vadd.f32 %v7644_v49, %v7461_v41 }
 0x887   :  { %v7645_v53 = vpop.f32.mrf.mxu1  ;;  %v7683_v54 = vpop.f32.mrf.mxu0 }
 0x888   :  { %v2656_v55 = vadd.f32 %v7682_v51, %v2581_v52 }
 0x889   :  { %v7646_v56 = vpop.f32.mrf.mxu1  ;;  %v7684_v57 = vpop.f32.mrf.mxu0 }
 0x88a   :  { %v7647_v58 = vadd.f32 %v7646_v56, %v7645_v53  ;;  %v7685_v59 = vadd.f32 %v7684_v57, %v7683_v54  ;;  %v7470_v53 = vld [vmem:[%s10004_s20] ss:$0 sm:$0xff] }
 0x88c   :  { %v2586_v60 = vadd.f32 %v7647_v58, %v7461_v41  ;;  %v2863_v58 = vand.u32 127, %v2009_v0 }
 0x88e   :  { %v2661_v61 = vadd.f32 %v7685_v59, %v2586_v60  ;;  %vm2864_vm5 = vcmp.gt.s32.totalorder %v2863_v58, %v9229_v1 }
 0x88f   :  { %v2865_v60 = vsel %vm2864_vm5, -1e+30, %v8679_v10 }
 0x8a4   :  { %v7718_v62 = vpop.f32.mrf.mxu1  ;;  %v7756_v4 = vpop.f32.mrf.mxu0 }
 0x8a6   :  { %v7719_v8 = vpop.f32.mrf.mxu1  ;;  %v7757_v7 = vpop.f32.mrf.mxu0 }
 0x8a7   :  { %v7720_v11 = vadd.f32 %v7719_v8, %v7718_v62  ;;  %v7758_v12 = vadd.f32 %v7757_v7, %v7756_v4 }
 0x8a9   :  { %v2731_v13 = vadd.f32 %v7720_v11, %v2656_v55 }
 0x8aa   :  { %v7721_v14 = vpop.f32.mrf.mxu1  ;;  %v7759_v15 = vpop.f32.mrf.mxu0 }
 0x8ab   :  { %v9379_v16 = vadd.f32 %v7758_v12, %v2731_v13 }
 0x8ac   :  { %v7722_v17 = vpop.f32.mrf.mxu1  ;;  %v7760_v47 = vpop.f32.mrf.mxu0 }
 0x8ad   :  { %v7723_v48 = vadd.f32 %v7722_v17, %v7721_v14  ;;  %v7761_v39 = vadd.f32 %v7760_v47, %v7759_v15 }
 0x8af   :  { %v2736_v20 = vadd.f32 %v7723_v48, %v2661_v61 }
 0x8b0   :  { %v8166_v43 = vpop.f32.mrf.mxu1  ;;  %v8177_v21 = vpop.f32.mrf.mxu0 }
 0x8b1   :  { %v9383_v44 = vadd.f32 %v7761_v39, %v2736_v20  ;;  %v2955_v22 = vadd.f32 %v8166_v43, %v7464_v18  ;;  %v3041_v23 = vadd.f32 %v8177_v21, %v7467_v19 }
 0x8b2   :  { %v2949_v24 = vpop.f32.mrf.mxu1  ;;  %v3035_v25 = vpop.f32.mrf.mxu0 }
 0x8b3   :  { %v3036_v26 = vadd.f32 %v7467_v19, %v3035_v25  ;;  %3528 = vrot.lane.b32.xlu0 %v3041_v23, %s8681_s5  ;;  %3526 = vrot.lane.b32.xlu1 %v2955_v22, %s8681_s5  ;;  %v2950_v29 = vadd.f32 %v7464_v18, %v2949_v24 }
 0x8b5   :  { %8190 = vmatpush3.xpose.msk.msra.mxu0 %vm483_vm2, %v3036_v26 }
 0x8b6   :  { %8199 = vmatprep.subr.mxu0 %v8679_v10 }
 0x8b7   :  { %3210 = vrot.lane.b32.xlu1 %v3036_v26, %s8681_s5  ;;  %3208 = vrot.lane.b32.xlu0 %v2950_v29, %s8681_s5 }
 0x8b8   :  { %8192 = vmatmul.mubr.msk.f32.vlgmr.msra.gmra.mxu0 %vm483_vm2, %v2950_v29 }
 0x8b9   :  { %8201 = vmatprep.mubr.msk.f32.mxu0 %vm8680_vm1, %v8679_v10 }
 0x8ba   :  { %v8188_v54 = vpop.f32.mrf.mxu1 }
 0x8bb   :  { %3290 = vrot.lane.b32.xlu1 %v3036_v26, %s8682_s9  ;;  %3288 = vrot.lane.b32.xlu0 %v2950_v29, %s8682_s9  ;;  %v9438_v55 = vadd.f32 %v8188_v54, %v7470_v53 }
 0x8bc   :  { %v3121_v56 = vpop.f32.mrf.mxu1 }
 0x8bd   :  { %v3122_v57 = vadd.f32 %v7470_v53, %v3121_v56 }
 0x8bf   :  { %3370 = vrot.lane.b32.xlu1 %v3036_v26, %s8683_s13  ;;  %3608 = vrot.lane.b32.xlu0 %v3041_v23, %s8682_s9 }
 0x8c3   :  { %3368 = vrot.lane.b32.xlu1 %v2950_v29, %s8683_s13  ;;  %3606 = vrot.lane.b32.xlu0 %v2955_v22, %s8682_s9 }
 0x8c7   :  { %3688 = vrot.lane.b32.xlu1 %v3041_v23, %s8683_s13 }
 0x8cb   :  { %3686 = vrot.lane.b32.xlu1 %v2955_v22, %s8683_s13 }
 0x925   :  { %v3529_v30 = vpop.permute.xlu0 %3528  ;;  %v3527_v31 = vpop.permute.xlu1 %3526 }
 0x929   :  { %v3211_v34 = vpop.permute.xlu1 %3210  ;;  %v3209_v37 = vpop.permute.xlu0 %3208 }
 0x92a   :  { %8195 = vmatpush3.xpose.msk.msra.mxu1 %vm483_vm2, %v3211_v34 }
 0x92b   :  { %8204 = vmatprep.subr.mxu1 %v8679_v10 }
 0x92d   :  { %v3291_v38 = vpop.permute.xlu1 %3290  ;;  %8197 = vmatmul.mubr.msk.f32.vlgmr.msra.gmra.mxu1 %vm483_vm2, %v3209_v37  ;;  %v3289_v40 = vpop.permute.xlu0 %3288 }
 0x92e   :  { %8200 = vmatpush3.xpose.msk.msra.mxu0 %vm483_vm2, %v3291_v38  ;;  %8206 = vmatprep.mubr.msk.f32.mxu1 %vm8680_vm1, %v8679_v10 }
 0x92f   :  { %8209 = vmatprep.subr.mxu0 %v8679_v10 }
 0x931   :  { %v3371_v41 = vpop.permute.xlu1 %3370  ;;  %8202 = vmatmul.mubr.msk.f32.vlgmr.msra.gmra.mxu0 %vm483_vm2, %v3289_v40  ;;  %v3609_v45 = vpop.permute.xlu0 %3608 }
 0x932   :  { %8205 = vmatpush3.xpose.msk.msra.mxu1 %vm483_vm2, %v3371_v41  ;;  %8210 = vmatpush3.xpose.msk.msra.mxu0 %vm483_vm2, %v3041_v23 }
 0x933   :  { %8211 = vmatprep.mubr.msk.f32.mxu0 %vm8680_vm1, %v8679_v10  ;;  %8214 = vmatprep.subr.mxu1 %v8679_v10 }
 0x934   :  { %8219 = vmatprep.subr.mxu0 %v8679_v10 }
 0x935   :  { %v3369_v46 = vpop.permute.xlu1 %3368  ;;  %8212 = vmatmul.mubr.msk.f32.vlgmr.msra.gmra.mxu0 %vm483_vm2, %v2955_v22  ;;  %v3607_v49 = vpop.permute.xlu0 %3606 }
 0x936   :  { %8207 = vmatmul.mubr.msk.f32.vlgmr.msra.gmra.mxu1 %vm483_vm2, %v3369_v46  ;;  %8220 = vmatpush3.xpose.msk.msra.mxu0 %vm483_vm2, %v3609_v45 }
 0x937   :  { %8215 = vmatpush3.xpose.msk.msra.mxu1 %vm483_vm2, %v3529_v30  ;;  %8221 = vmatprep.mubr.msk.f32.mxu0 %vm8680_vm1, %v8679_v10 }
 0x938   :  { %8216 = vmatprep.mubr.msk.f32.mxu1 %vm8680_vm1, %v8679_v10  ;;  %8224 = vmatprep.subr.mxu1 %v8679_v10 }
 0x939   :  { %v3689_v51 = vpop.permute.xlu1 %3688  ;;  %8222 = vmatmul.mubr.msk.f32.vlgmr.msra.gmra.mxu0 %vm483_vm2, %v3607_v49  ;;  %8229 = vmatprep.subr.mxu0 %v8679_v10 }
 0x93a   :  { %8217 = vmatmul.mubr.msk.f32.vlgmr.msra.gmra.mxu1 %vm483_vm2, %v3527_v31  ;;  %8231 = vmatprep.mubr.msk.f32.mxu0 %vm8680_vm1, %v8679_v10 }
 0x93b   :  { %8225 = vmatpush3.xpose.msk.msra.mxu1 %vm483_vm2, %v3689_v51  ;;  %8226 = vmatprep.mubr.msk.f32.mxu1 %vm8680_vm1, %v8679_v10 }
 0x93c   :  { %8234 = vmatprep.subr.mxu1 %v8679_v10  ;;  %8230 = vmatpush3.msra.mxu0 %v3122_v57 }
 0x93d   :  { %v3687_v52 = vpop.permute.xlu1 %3686  ;;  %8239 = vmatprep.subr.mxu0 %v8679_v10 }
 0x93e   :  { %8227 = vmatmul.mubr.msk.f32.vlgmr.msra.gmra.mxu1 %vm483_vm2, %v3687_v52 }
 0x93f   :  { %8236 = vmatprep.mubr.msk.f32.mxu1 %vm8680_vm1, %v8679_v10 }
 0x978   :  { %v3202_v59 = vpop.f32.mrf.mxu0 }
 0x979   :  { %v3206_v61 = vmul.f32 0.35355338, %v3202_v59 }
 0x97a   :  { %v8193_v62 = vpop.f32.mrf.mxu0 }
 0x97b   :  { %v3207_v4 = vadd.f32 %v3206_v61, %v2865_v60 }
 0x97d   :  { %v3766_v63 = vsel %vm483_vm2, %v3207_v4, -inf }
 0x97e   :  { %3767 = vmax.xlane.f32.xlu0 %v3766_v63 }
 0x9ed   :  { %v3282_v6 = vpop.f32.mrf.mxu1 }
 0x9ee   :  { %v3286_v8 = vmul.f32 0.35355338, %v3282_v6 }
 0x9ef   :  { %v8198_v7 = vpop.f32.mrf.mxu1 }
 0x9f0   :  { %v3287_v11 = vadd.f32 %v3286_v8, %v2865_v60 }
 0x9f1   :  { %v3362_v12 = vpop.f32.mrf.mxu0 }
 0x9f2   :  { %v3366_v13 = vmul.f32 0.35355338, %v3362_v12  ;;  %v3769_v14 = vsel %vm483_vm2, %v3287_v11, -inf }
 0x9f3   :  { %3770 = vmax.xlane.f32.xlu1 %v3769_v14  ;;  %v8203_v0 = vpop.f32.mrf.mxu0 }
 0x9f4   :  { %v3367_v15 = vadd.f32 %v3366_v13, %v2865_v60 }
 0x9f5   :  { %v3520_v17 = vpop.f32.mrf.mxu0 }
 0x9f6   :  { %v3524_v47 = vmul.f32 0.35355338, %v3520_v17  ;;  %v3442_v48 = vpop.f32.mrf.mxu1  ;;  %v3772_v39 = vsel %vm483_vm2, %v3367_v15, -inf }
 0x9f7   :  { %v3446_v18 = vmul.f32 0.35355338, %v3442_v48  ;;  %3773 = vmax.xlane.f32.xlu0 %v3772_v39  ;;  %v8213_v19 = vpop.f32.mrf.mxu0 }
 0x9f8   :  { %v8208_v20 = vpop.f32.mrf.mxu1  ;;  %v3525_v43 = vadd.f32 %v3524_v47, %v2865_v60 }
 0x9f9   :  { %v3680_v21 = vpop.f32.mrf.mxu0  ;;  %v3447_v22 = vadd.f32 %v3446_v18, %v2865_v60 }
 0x9fa   :  { %v3684_v23 = vmul.f32 0.35355338, %v3680_v21  ;;  %v3600_v24 = vpop.f32.mrf.mxu1  ;;  %v3778_v25 = vsel %vm483_vm2, %v3525_v43, -inf }
 0x9fb   :  { %v3604_v26 = vmul.f32 0.35355338, %v3600_v24  ;;  %3779 = vmax.xlane.f32.xlu1 %v3778_v25  ;;  %v8223_v29 = vpop.f32.mrf.mxu0  ;;  %v3775_v30 = vsel %vm483_vm2, %v3447_v22, -inf }
 0x9fc   :  { %v8218_v31 = vpop.f32.mrf.mxu1  ;;  %3776 = vmax.xlane.f32.xlu0 %v3775_v30  ;;  %v3685_v34 = vadd.f32 %v3684_v23, %v2865_v60 }
 0x9fd   :  { %v3605_v37 = vadd.f32 %v3604_v26, %v2865_v60 }
 0x9fe   :  { %v3760_v38 = vpop.f32.mrf.mxu1  ;;  %v3784_v40 = vsel %vm483_vm2, %v3685_v34, -inf }
 0x9ff   :  { %v3764_v41 = vmul.f32 0.35355338, %v3760_v38  ;;  %3785 = vmax.xlane.f32.xlu1 %v3784_v40  ;;  %v3781_v45 = vsel %vm483_vm2, %v3605_v37, -inf }
 0xa00   :  { %v8228_v46 = vpop.f32.mrf.mxu1  ;;  %3782 = vmax.xlane.f32.xlu0 %v3781_v45 }
 0xa01   :  { %v3765_v49 = vadd.f32 %v3764_v41, %v2865_v60 }
 0xa03   :  { %v3787_v51 = vsel %vm483_vm2, %v3765_v49, -inf }
 0xa04   :  { %3788 = vmax.xlane.f32.xlu0 %v3787_v51 }
 0xa07   :  { %v3768_v52 = vpop.xlane.xlu0 %3767 }
 0xa08   :  { %v3790_v53 = vsub.f32 %v3207_v4, %v3768_v52 }
 0xa0a   :  { %v3798_v54 = vmul.f32 1.442695, %v3790_v53 }
 0xa0c   :  { %8507 = vpow2.f32 %v3798_v54 }
 0xa10   :  { %3928 = vrot.lane.b32.xlu1 %v3122_v57, %s8681_s5 }
 0xa14   :  { %4080 = vrot.lane.b32.xlu1 %v3122_v57, %s8683_s13 }
 0xa18   :  { %4245 = vrot.lane.b32.xlu1 %v9438_v55, %s8681_s5 }
 0xa19   :  { %v8508_v56 = vpop.eup %8507 }
 0xa1a   :  { %4004 = vrot.lane.b32.xlu0 %v3122_v57, %s8682_s9  ;;  %v3814_v58 = vsel %vm483_vm2, %v8508_v56, 0.0 }
 0xa3c   :  { %3815 = vadd.xlane.f32.xlu1 %v3814_v58 }
 0xa7c   :  { %v3771_v59 = vpop.xlane.xlu1 %3770 }
 0xa7d   :  { %v3791_v60 = vsub.f32 %v3287_v11, %v3771_v59 }
 0xa7f   :  { %v3800_v61 = vmul.f32 1.442695, %v3791_v60 }
 0xa80   :  { %v3774_v62 = vpop.xlane.xlu0 %3773 }
 0xa81   :  { %8509 = vpow2.f32 %v3800_v61  ;;  %v3792_v63 = vsub.f32 %v3367_v15, %v3774_v62 }
 0xa83   :  { %v3802_v6 = vmul.f32 1.442695, %v3792_v63 }
 0xa84   :  { %v3780_v8 = vpop.xlane.xlu1 %3779 }
 0xa85   :  { %8511 = vpow2.f32 %v3802_v6  ;;  %v3794_v7 = vsub.f32 %v3525_v43, %v3780_v8  ;;  %v3777_v12 = vpop.xlane.xlu0 %3776 }
 0xa86   :  { %v3793_v57 = vsub.f32 %v3447_v22, %v3777_v12 }
 0xa87   :  { %v3806_v13 = vmul.f32 1.442695, %v3794_v7 }
 0xa88   :  { %v3804_v4 = vmul.f32 1.442695, %v3793_v57  ;;  %v3786_v14 = vpop.xlane.xlu1 %3785 }
 0xa89   :  { %8513 = vpow2.f32 %v3806_v13  ;;  %v3796_v0 = vsub.f32 %v3685_v34, %v3786_v14  ;;  %v3783_v17 = vpop.xlane.xlu0 %3782 }
 0xa8a   :  { %8515 = vpow2.f32 %v3804_v4  ;;  %v3795_v47 = vsub.f32 %v3605_v37, %v3783_v17 }
 0xa8b   :  { %v3810_v48 = vmul.f32 1.442695, %v3796_v0 }
 0xa8c   :  { %v3808_v11 = vmul.f32 1.442695, %v3795_v47  ;;  %v3929_v39 = vpop.permute.xlu1 %3928 }
 0xa8d   :  { %8517 = vpow2.f32 %v3810_v48  ;;  %v3789_v18 = vpop.xlane.xlu0 %3788  ;;  %8235 = vmatpush3.msra.mxu1 %v3929_v39 }
 0xa8e   :  { %v8510_v15 = vpop.eup %8509  ;;  %8519 = vpow2.f32 %v3808_v11  ;;  %v3797_v19 = vsub.f32 %v3765_v49, %v3789_v18  ;;  %8244 = vmatprep.subr.mxu1 %v8679_v10  ;;  %v4491_v18 = vld [vmem:[%s10005_s28 + $0x18] sm:$0xff] }
 0xa8f   :  { %v3817_v20 = vsel %vm483_vm2, %v8510_v15, 0.0 }
 0xa90   :  { %v3812_v43 = vmul.f32 1.442695, %v3797_v19  ;;  %3818 = vadd.xlane.f32.xlu0 %v3817_v20  ;;  %v4081_v40 = vpop.permute.xlu1 %4080  ;;  %v4490_v19 = vld [vmem:[%s10005_s28 + $0x10] sm:$0xff]  ;;  %v4489_v20 = vld [vmem:[%s10005_s28 + $0x8] sm:$0xff] }
 0xa91   :  { %v4005_v51 = vpop.permute.xlu0 %4004 }
 0xa92   :  { %v8512_v21 = vpop.eup %8511  ;;  %8521 = vpow2.f32 %v3812_v43 }
 0xa93   :  { %v3820_v22 = vsel %vm483_vm2, %v8512_v21, 0.0 }
 0xa94   :  { %3821 = vadd.xlane.f32.xlu1 %v3820_v22  ;;  %v4246_v41 = vpop.permute.xlu1 %4245  ;;  %v4488_v22 = vld [vmem:[%s10005_s28] sm:$0xff] }
 0xa96   :  { %v8514_v23 = vpop.eup %8513 }
 0xa97   :  { %v8516_v24 = vpop.eup %8515  ;;  %v3826_v25 = vsel %vm483_vm2, %v8514_v23, 0.0 }
 0xa98   :  { %3827 = vadd.xlane.f32.xlu1 %v3826_v25  ;;  %v3823_v26 = vsel %vm483_vm2, %v8516_v24, 0.0 }
 0xa99   :  { %3824 = vadd.xlane.f32.xlu0 %v3823_v26 }
 0xa9a   :  { %v8518_v29 = vpop.eup %8517 }
 0xa9b   :  { %v8520_v30 = vpop.eup %8519  ;;  %v3832_v31 = vsel %vm483_vm2, %v8518_v29, 0.0 }
 0xa9c   :  { %3833 = vadd.xlane.f32.xlu1 %v3832_v31  ;;  %v3829_v34 = vsel %vm483_vm2, %v8520_v30, 0.0 }
 0xa9d   :  { %3830 = vadd.xlane.f32.xlu0 %v3829_v34 }
 0xa9f   :  { %v9465_v37 = vpop.eup %8521 }
 0xaa0   :  { %v3835_v38 = vsel %vm483_vm2, %v9465_v37, 0.0 }
 0xaa1   :  { %3836 = vadd.xlane.f32.xlu0 %v3835_v38 }
 0xaad   :  { %4397 = vrot.lane.b32.xlu1 %v9438_v55, %s8683_s13 }
 0xab7   :  { %4321 = vrot.lane.b32.xlu0 %v9438_v55, %s8682_s9 }
 0xac5   :  { %v3816_v45 = vpop.xlane.xlu1 %3815 }
 0xac6   :  { %8523 = vrcp.f32 %v3816_v45 }
 0xad3   :  { %v8524_v46 = vpop.eup %8523 }
 0xad4   :  { %v3846_v49 = vmul.f32 %v8524_v46, %v8508_v56  ;;  %v2815_v46 = vadd.f32 %v9383_v44, %v9134_v50 }
 0xad6   :  { %8232 = vmatmul.mubr.msk.f32.vlgmr.msra.gmra.mxu0 %vm483_vm2, %v3846_v49  ;;  %v2819_v49 = vsel %vm229_vm0, %v2815_v46, 0.0 }
 0xad7   :  { %8240 = vmatpush3.msra.mxu0 %v4005_v51  ;;  %8241 = vmatprep.mubr.msk.f32.mxu0 %vm8680_vm1, %v8679_v10 }
 0xad8   :  { %8249 = vmatprep.subr.mxu0 %v8679_v10 }
 0xb19   :  { %v3819_v52 = vpop.xlane.xlu0 %3818 }
 0xb1a   :  { %8525 = vrcp.f32 %v3819_v52 }
 0xb1d   :  { %v3822_v53 = vpop.xlane.xlu1 %3821 }
 0xb1e   :  { %8527 = vrcp.f32 %v3822_v53 }
 0xb21   :  { %v3828_v54 = vpop.xlane.xlu1 %3827 }
 0xb22   :  { %8529 = vrcp.f32 %v3828_v54  ;;  %v3825_v58 = vpop.xlane.xlu0 %3824 }
 0xb23   :  { %8531 = vrcp.f32 %v3825_v58 }
 0xb25   :  { %v3834_v59 = vpop.xlane.xlu1 %3833 }
 0xb26   :  { %8533 = vrcp.f32 %v3834_v59  ;;  %v3831_v56 = vpop.xlane.xlu0 %3830 }
 0xb27   :  { %v8526_v60 = vpop.eup %8525  ;;  %8535 = vrcp.f32 %v3831_v56 }
 0xb28   :  { %v3847_v61 = vmul.f32 %v8526_v60, %v8510_v15 }
 0xb29   :  { %v4398_v17 = vpop.permute.xlu1 %4397 }
 0xb2a   :  { %v3837_v62 = vpop.xlane.xlu0 %3836  ;;  %8237 = vmatmul.mubr.msk.f32.vlgmr.msra.gmra.mxu1 %vm483_vm2, %v3847_v61 }
 0xb2b   :  { %v8528_v63 = vpop.eup %8527  ;;  %8537 = vrcp.f32 %v3837_v62  ;;  %8245 = vmatpush3.msra.mxu1 %v4081_v40  ;;  %8246 = vmatprep.mubr.msk.f32.mxu1 %vm8680_vm1, %v8679_v10 }
 0xb2c   :  { %v3848_v6 = vmul.f32 %v8528_v63, %v8512_v21  ;;  %8254 = vmatprep.subr.mxu1 %v8679_v10 }
 0xb2e   :  { %8242 = vmatmul.mubr.msk.f32.vlgmr.msra.gmra.mxu0 %vm483_vm2, %v3848_v6  ;;  %v4322_v13 = vpop.permute.xlu0 %4321 }
 0xb2f   :  { %v8530_v8 = vpop.eup %8529  ;;  %8250 = vmatpush3.msra.mxu0 %v9438_v55  ;;  %8251 = vmatprep.mubr.msk.f32.mxu0 %vm8680_vm1, %v8679_v10 }
 0xb30   :  { %v8532_v7 = vpop.eup %8531  ;;  %8259 = vmatprep.subr.mxu0 %v8679_v10  ;;  %v3850_v12 = vmul.f32 %v8530_v8, %v8514_v23 }
 0xb31   :  { %v3849_v57 = vmul.f32 %v8532_v7, %v8516_v24 }
 0xb32   :  { %8252 = vmatmul.mubr.msk.f32.vlgmr.msra.gmra.mxu0 %vm483_vm2, %v3850_v12 }
 0xb33   :  { %v8534_v4 = vpop.eup %8533  ;;  %8260 = vmatpush3.msra.mxu0 %v4322_v13  ;;  %8247 = vmatmul.mubr.msk.f32.vlgmr.msra.gmra.mxu1 %vm483_vm2, %v3849_v57  ;;  %v7497_v57 = vld [vmem:[%s10006_s2] ss:$0 sm:$0xff] }
 0xb34   :  { %v8536_v14 = vpop.eup %8535  ;;  %8255 = vmatpush3.msra.mxu1 %v4246_v41  ;;  %8261 = vmatprep.mubr.msk.f32.mxu0 %vm8680_vm1, %v8679_v10  ;;  %v3852_v55 = vmul.f32 %v8534_v4, %v8518_v29  ;;  %v2814_v41 = vadd.f32 %v9379_v16, %v9122_v42 }
 0xb35   :  { %8256 = vmatprep.mubr.msk.f32.mxu1 %vm8680_vm1, %v8679_v10  ;;  %8264 = vmatprep.subr.mxu1 %v8679_v10  ;;  %v3851_v0 = vmul.f32 %v8536_v14, %v8520_v30 }
 0xb36   :  { %8262 = vmatmul.mubr.msk.f32.vlgmr.msra.gmra.mxu0 %vm483_vm2, %v3852_v55  ;;  %8269 = vmatprep.subr.mxu0 %v4491_v18  ;;  %v2816_v45 = vsel %vm229_vm0, %v2814_v41, 0.0 }
 0xb37   :  { %8257 = vmatmul.mubr.msk.f32.vlgmr.msra.gmra.mxu1 %vm483_vm2, %v3851_v0  ;;  %8270 = vmatpush3.msra.mxu0 %v4491_v18 }
 0xb38   :  { %v8538_v47 = vpop.eup %8537  ;;  %8265 = vmatpush3.msra.mxu1 %v4398_v17  ;;  %8266 = vmatprep.mubr.msk.f32.mxu1 %vm8680_vm1, %v8679_v10 }
 0xb39   :  { %v3853_v48 = vmul.f32 %v8538_v47, %v9465_v37  ;;  %8271 = vmatprep.subr.mxu0 %v4490_v19 }
 0xb3a   :  { %8272 = vmatpush3.msra.mxu0 %v4490_v19 }
 0xb3b   :  { %8267 = vmatmul.mubr.msk.f32.vlgmr.msra.gmra.mxu1 %vm483_vm2, %v3853_v48  ;;  %8273 = vmatprep.subr.mxu0 %v4489_v20 }
 0xb3c   :  { %8274 = vmatpush3.msra.mxu0 %v4489_v20 }
 0xb3d   :  { %8275 = vmatprep.subr.mxu0 %v4488_v22 }
 0xb3e   :  { %8276 = vmatpush3.msra.mxu0 %v4488_v22  ;;  %v7463_v22 = vld [vmem:[%s10008_s7] ss:$0 sm:$0xff] }
 0xb96   :  { %v3923_v11 = vpop.f32.mrf.mxu0 }
 0xb98   :  { %v8233_v39 = vpop.f32.mrf.mxu0 }
 0xbea   :  { %v4000_v15 = vpop.f32.mrf.mxu1 }
 0xbeb   :  { %4157 = vrot.lane.b32.xlu0 %v4000_v15, %s8684_s17 }
 0xbec   :  { %v8238_v43 = vpop.f32.mrf.mxu1 }
 0xbed   :  { %v7462_v43 = vld [vmem:[%s10007_s10] ss:$0 sm:$0xff] }
 0xbee   :  { %v4076_v21 = vpop.f32.mrf.mxu0 }
 0xbef   :  { %4161 = vrot.lane.b32.xlu1 %v4076_v21, %s8685_s21 }
 0xbf0   :  { %v8243_v23 = vpop.f32.mrf.mxu0 }
 0xbf2   :  { %v4240_v24 = vpop.f32.mrf.mxu0 }
 0xbf3   :  { %v4152_v25 = vpop.f32.mrf.mxu1 }
 0xbf4   :  { %4165 = vrot.lane.b32.xlu1 %v4152_v25, %s8686_s25  ;;  %v8253_v26 = vpop.f32.mrf.mxu0  ;;  %v4720_v25 = vld [vmem:[%s10009_s11 + $0x10] sm:$0xff] }
 0xbf5   :  { %v8248_v29 = vpop.f32.mrf.mxu1  ;;  %v4719_v26 = vld [vmem:[%s10009_s11 + $0x8] sm:$0xff] }
 0xbf6   :  { %v4393_v30 = vpop.f32.mrf.mxu0  ;;  %v4718_v29 = vld [vmem:[%s10009_s11] sm:$0xff] }
 0xbf7   :  { %v4317_v31 = vpop.f32.mrf.mxu1 }
 0xbf8   :  { %4474 = vrot.lane.b32.xlu0 %v4317_v31, %s8684_s17  ;;  %v8263_v34 = vpop.f32.mrf.mxu0 }
 0xbf9   :  { %v8258_v37 = vpop.f32.mrf.mxu1 }
 0xbfb   :  { %v4469_v38 = vpop.f32.mrf.mxu1 }
 0xbfc   :  { %4482 = vrot.lane.b32.xlu1 %v4469_v38, %s8686_s25  ;;  %4478 = vrot.lane.b32.xlu0 %v4393_v30, %s8685_s21 }
 0xbfd   :  { %v8268_v40 = vpop.f32.mrf.mxu1 }
 0xc1b   :  { %2817 = vadd.xlane.f32.xlu0 %v2816_v45 }
 0xc20   :  { %2820 = vadd.xlane.f32.xlu1 %v2819_v49 }
 0xc5d   :  { %v4158_v52 = vpop.permute.xlu0 %4157 }
 0xc5e   :  { %v4168_v53 = vsel %vm483_vm2, %v3923_v11, %v4158_v52 }
 0xc61   :  { %v4162_v51 = vpop.permute.xlu1 %4161 }
 0xc62   :  { %v4169_v54 = vsel %vm1515_vm3, %v4168_v53, %v4162_v51 }
 0xc66   :  { %v4166_v58 = vpop.permute.xlu1 %4165 }
 0xc67   :  { %v4170_v59 = vsel %vm1517_vm4, %v4169_v54, %v4166_v58  ;;  %v4629_v58 = vld [vmem:[%s10010_s16 + $0x18] sm:$0xff] }
 0xc68   :  { %8277 = vmatprep.mubr.msk.f32.mxu0 %vm229_vm0, %v4170_v59  ;;  %v4628_v59 = vld [vmem:[%s10010_s16 + $0x10] sm:$0xff]  ;;  %8280 = vmatprep.subr.mxu1 %v4629_v58 }
 0xc69   :  { %8281 = vmatpush3.msra.mxu1 %v4629_v58 }
 0xc6a   :  { %v4475_v42 = vpop.permute.xlu0 %4474  ;;  %8282 = vmatprep.subr.mxu1 %v4628_v59 }
 0xc6b   :  { %v4485_v16 = vsel %vm483_vm2, %v4240_v24, %v4475_v42  ;;  %8283 = vmatpush3.msra.mxu1 %v4628_v59 }
 0xc6e   :  { %v4483_v56 = vpop.permute.xlu1 %4482  ;;  %v4479_v50 = vpop.permute.xlu0 %4478 }
 0xc6f   :  { %v4486_v44 = vsel %vm1515_vm3, %v4485_v16, %v4479_v50  ;;  %v4627_v16 = vld [vmem:[%s10010_s16 + $0x8] sm:$0xff] }
 0xc70   :  { %v4487_v60 = vsel %vm1517_vm4, %v4486_v44, %v4483_v56  ;;  %8284 = vmatprep.subr.mxu1 %v4627_v16  ;;  %v4626_v44 = vld [vmem:[%s10010_s16] sm:$0xff] }
 0xc71   :  { %8278 = vmatmul.mubr.msk.f32.vlgmr.msra.gmra.mxu0 %vm229_vm0, %v4487_v60  ;;  %8285 = vmatpush3.msra.mxu1 %v4627_v16  ;;  %v4813_v60 = vld [vmem:[%s10011_s15 + $0x18] sm:$0xff] }
 0xc72   :  { %8286 = vmatprep.subr.mxu1 %v4626_v44 }
 0xc73   :  { %8287 = vmatpush3.msra.mxu1 %v4626_v44 }
 0xc74   :  { %8302 = vmatprep.subr.mxu1 %v4813_v60 }
 0xca4   :  { %v2818_v61 = vpop.xlane.xlu0 %2817 }
 0xca5   :  { %v2822_v62 = vmul.f32 0.03125, %v2818_v61 }
 0xca7   :  { %v2824_v63 = vsub.f32 %v2814_v41, %v2822_v62 }
 0xca9   :  { %v2826_v6 = vmul.f32 %v2824_v63, %v2824_v63  ;;  %v2821_v7 = vpop.xlane.xlu1 %2820 }
 0xcaa   :  { %v2823_v4 = vmul.f32 0.03125, %v2821_v7 }
 0xcab   :  { %v2828_v8 = vsel %vm229_vm0, %v2826_v6, 0.0 }
 0xcac   :  { %2829 = vadd.xlane.f32.xlu1 %v2828_v8  ;;  %v2825_v48 = vsub.f32 %v2815_v46, %v2823_v4  ;;  %v7501_v4 = vld [vmem:[%s10013_s22] ss:$0 sm:$0xff] }
 0xcae   :  { %v2827_v19 = vmul.f32 %v2825_v48, %v2825_v48 }
 0xcb0   :  { %v2831_v20 = vsel %vm229_vm0, %v2827_v19, 0.0 }
 0xd31   :  { %v8279_v12 = vpop.f32.mrf.mxu0 }
 0xd32   :  { %v4577_v14 = vadd.f32 %v8279_v12, %v7497_v57 }
 0xd33   :  { %v4571_v13 = vpop.f32.mrf.mxu0 }
 0xd34   :  { %v4572_v55 = vadd.f32 %v7497_v57, %v4571_v13  ;;  %v4581_v18 = vadd.f32 %v4577_v14, %v9354_v33  ;;  %v4721_v33 = vld [vmem:[%s10009_s11 + $0x18] sm:$0xff]  ;;  %v7500_v57 = vld [vmem:[%s10012_s18] ss:$0 sm:$0xff] }
 0xd35   :  { %v2830_v0 = vpop.xlane.xlu1 %2829  ;;  %8291 = vmatprep.subr.mxu0 %v4721_v33 }
 0xd36   :  { %v2834_v17 = vmul.f32 0.03125, %v2830_v0  ;;  %v4580_v47 = vadd.f32 %v4572_v55, %v9351_v32  ;;  %v4585_v15 = vsel %vm229_vm0, %v4581_v18, 0.0  ;;  %8292 = vmatpush3.msra.mxu0 %v4721_v33 }
 0xd37   :  { %8293 = vmatprep.subr.mxu0 %v4720_v25 }
 0xd38   :  { %v2836_v11 = vadd.f32 1e-05, %v2834_v17  ;;  %v4582_v39 = vsel %vm229_vm0, %v4580_v47, 0.0  ;;  %8294 = vmatpush3.msra.mxu0 %v4720_v25 }
 0xd39   :  { %4583 = vadd.xlane.f32.xlu0 %v4582_v39  ;;  %8295 = vmatprep.subr.mxu0 %v4719_v26  ;;  %v4811_v39 = vld [vmem:[%s10011_s15 + $0x8] sm:$0xff] }
 0xd3a   :  { %8539 = vrsqrt.f32 %v2836_v11  ;;  %8296 = vmatpush3.msra.mxu0 %v4719_v26  ;;  %v4812_v11 = vld [vmem:[%s10011_s15 + $0x10] sm:$0xff] }
 0xd3b   :  { %8297 = vmatprep.subr.mxu0 %v4718_v29 }
 0xd3c   :  { %8298 = vmatpush3.msra.mxu0 %v4718_v29  ;;  %v7508_v29 = vld [vmem:[%s10016_s1] ss:$0 sm:$0xff] }
 0xd3d   :  { %4586 = vadd.xlane.f32.xlu0 %v4585_v15  ;;  %8313 = vmatprep.subr.mxu0 %v8679_v10  ;;  %v7505_v15 = vld [vmem:[%s10014_s23] ss:$0 sm:$0xff] }
 0xd41   :  { %2832 = vadd.xlane.f32.xlu0 %v2831_v20 }
 0xd47   :  { %v8540_v32 = vpop.eup %8539 }
 0xd48   :  { %v2840_v21 = vmul.f32 %v8540_v32, %v2824_v63 }
 0xd4a   :  { %v2849_v23 = vmul.f32 %v7462_v43, %v2840_v21 }
 0xd4c   :  { %v9532_v24 = vadd.f32 %v7463_v22, %v2849_v23 }
 0xd4e   :  { %8299 = vmatprep.mubr.msk.f32.mxu0 %vm229_vm0, %v9532_v24 }
 0xdc2   :  { %v4584_v30 = vpop.xlane.xlu0 %4583 }
 0xdc3   :  { %v4588_v31 = vmul.f32 0.03125, %v4584_v30 }
 0xdc5   :  { %v4590_v34 = vsub.f32 %v4580_v47, %v4588_v31 }
 0xdc6   :  { %v4587_v37 = vpop.xlane.xlu0 %4586 }
 0xdc7   :  { %v4589_v38 = vmul.f32 0.03125, %v4587_v37  ;;  %v4592_v40 = vmul.f32 %v4590_v34, %v4590_v34 }
 0xdc9   :  { %v4591_v41 = vsub.f32 %v4581_v18, %v4589_v38  ;;  %v4594_v45 = vsel %vm229_vm0, %v4592_v40, 0.0  ;;  %v4810_v18 = vld [vmem:[%s10011_s15] sm:$0xff] }
 0xdca   :  { %4595 = vadd.xlane.f32.xlu1 %v4594_v45  ;;  %v2833_v46 = vpop.xlane.xlu0 %2832 }
 0xdcb   :  { %v2835_v49 = vmul.f32 0.03125, %v2833_v46  ;;  %v4593_v51 = vmul.f32 %v4591_v41, %v4591_v41 }
 0xdcd   :  { %v2837_v52 = vadd.f32 1e-05, %v2835_v49  ;;  %v4597_v53 = vsel %vm229_vm0, %v4593_v51, 0.0 }
 0xdce   :  { %4598 = vadd.xlane.f32.xlu0 %v4597_v53 }
 0xdcf   :  { %8541 = vrsqrt.f32 %v2837_v52 }
 0xddc   :  { %v8542_v54 = vpop.eup %8541 }
 0xddd   :  { %v2841_v42 = vmul.f32 %v8542_v54, %v2825_v48 }
 0xddf   :  { %v2850_v56 = vmul.f32 %v7462_v43, %v2841_v42 }
 0xde1   :  { %v2859_v50 = vadd.f32 %v7463_v22, %v2850_v56  ;;  %v7502_v22 = vld [vmem:[%s10015_s26] ss:$0 sm:$0xff] }
 0xde3   :  { %8300 = vmatmul.mubr.msk.f32.vlgmr.msra.gmra.mxu0 %vm229_vm0, %v2859_v50 }
 0xde4   :  { %8315 = vmatprep.mubr.msk.f32.mxu0 %vm8680_vm1, %v8679_v10 }
 0xe53   :  { %v4596_v61 = vpop.xlane.xlu1 %4595 }
 0xe54   :  { %v4600_v62 = vmul.f32 0.03125, %v4596_v61 }
 0xe56   :  { %v4602_v63 = vadd.f32 1e-05, %v4600_v62 }
 0xe57   :  { %v4599_v6 = vpop.xlane.xlu0 %4598 }
 0xe58   :  { %8543 = vrsqrt.f32 %v4602_v63  ;;  %v4601_v8 = vmul.f32 0.03125, %v4599_v6 }
 0xe5a   :  { %v4603_v7 = vadd.f32 1e-05, %v4601_v8 }
 0xe5c   :  { %8545 = vrsqrt.f32 %v4603_v7 }
 0xe65   :  { %v8544_v12 = vpop.eup %8543 }
 0xe66   :  { %v4606_v13 = vmul.f32 %v8544_v12, %v4590_v34 }
 0xe68   :  { %v4615_v14 = vmul.f32 %v7500_v57, %v4606_v13 }
 0xe69   :  { %v8546_v55 = vpop.eup %8545 }
 0xe6a   :  { %v4607_v0 = vmul.f32 %v8546_v55, %v4591_v41  ;;  %v9553_v17 = vadd.f32 %v7501_v4, %v4615_v14 }
 0xe6c   :  { %v4616_v47 = vmul.f32 %v7500_v57, %v4607_v0  ;;  %8288 = vmatprep.mubr.msk.f32.mxu1 %vm229_vm0, %v9553_v17 }
 0xe6e   :  { %v9557_v48 = vadd.f32 %v7501_v4, %v4616_v47 }
 0xe70   :  { %8289 = vmatmul.mubr.msk.f32.vlgmr.msra.gmra.mxu1 %vm229_vm0, %v9557_v48 }
 0xe71   :  { %8303 = vmatpush3.msra.mxu1 %v4813_v60  ;;  %8310 = vmatprep.mubr.msk.f32.mxu1 %vm229_vm0, %v9532_v24 }
 0xe72   :  { %8304 = vmatprep.subr.mxu1 %v4812_v11 }
 0xe73   :  { %8305 = vmatpush3.msra.mxu1 %v4812_v11 }
 0xe74   :  { %8306 = vmatprep.subr.mxu1 %v4811_v39 }
 0xe75   :  { %8307 = vmatpush3.msra.mxu1 %v4811_v39 }
 0xe76   :  { %8308 = vmatprep.subr.mxu1 %v4810_v18 }
 0xe77   :  { %8309 = vmatpush3.msra.mxu1 %v4810_v18 }
 0xe78   :  { %8311 = vmatmul.mubr.msk.f32.vlgmr.msra.gmra.mxu1 %vm229_vm0, %v2859_v50  ;;  %8318 = vmatprep.subr.mxu1 %v8679_v10 }
 0xe79   :  { %8320 = vmatprep.mubr.msk.f32.mxu1 %vm8680_vm1, %v8679_v10 }
 0xea3   :  { %v8301_v19 = vpop.f32.mrf.mxu0 }
 0xea4   :  { %v4807_v20 = vadd.f32 %v8301_v19, %v7505_v15 }
 0xea5   :  { %v4801_v32 = vpop.f32.mrf.mxu0 }
 0xea6   :  { %v4802_v43 = vadd.f32 %v7505_v15, %v4801_v32  ;;  %5289 = vrot.lane.b32.xlu0 %v4807_v20, %s8681_s5 }
 0xea8   :  { %4975 = vrot.lane.b32.xlu1 %v4802_v43, %s8681_s5  ;;  %8314 = vmatpush3.xpose.msk.msra.mxu0 %vm483_vm2, %v4802_v43 }
 0xea9   :  { %8323 = vmatprep.subr.mxu0 %v8679_v10 }
 0xeac   :  { %5054 = vrot.lane.b32.xlu1 %v4802_v43, %s8682_s9 }
 0xeb0   :  { %5133 = vrot.lane.b32.xlu1 %v4802_v43, %s8683_s13 }
 0xf18   :  { %v5290_v37 = vpop.permute.xlu0 %5289 }
 0xf1a   :  { %v4976_v21 = vpop.permute.xlu1 %4975 }
 0xf1b   :  { %8319 = vmatpush3.xpose.msk.msra.mxu1 %vm483_vm2, %v4976_v21 }
 0xf1c   :  { %8328 = vmatprep.subr.mxu1 %v8679_v10 }
 0xf1e   :  { %v5055_v26 = vpop.permute.xlu1 %5054 }
 0xf22   :  { %v5134_v34 = vpop.permute.xlu1 %5133 }
 0xf30   :  { %v8290_v23 = vpop.f32.mrf.mxu1 }
 0xf31   :  { %v4715_v24 = vadd.f32 %v8290_v23, %v7502_v22 }
 0xf32   :  { %v4709_v33 = vpop.f32.mrf.mxu1 }
 0xf33   :  { %v4710_v25 = vadd.f32 %v7502_v22, %v4709_v33  ;;  %5287 = vrot.lane.b32.xlu1 %v4715_v24, %s8681_s5 }
 0xf35   :  { %4973 = vrot.lane.b32.xlu0 %v4710_v25, %s8681_s5  ;;  %8316 = vmatmul.mubr.msk.f32.vlgmr.msra.gmra.mxu0 %vm483_vm2, %v4710_v25 }
 0xf36   :  { %8324 = vmatpush3.xpose.msk.msra.mxu0 %vm483_vm2, %v5055_v26  ;;  %8325 = vmatprep.mubr.msk.f32.mxu0 %vm8680_vm1, %v8679_v10 }
 0xf37   :  { %5131 = vrot.lane.b32.xlu1 %v4710_v25, %s8683_s13  ;;  %8333 = vmatprep.subr.mxu0 %v8679_v10 }
 0xf38   :  { %v8312_v30 = vpop.f32.mrf.mxu1 }
 0xf39   :  { %v9589_v31 = vadd.f32 %v8312_v30, %v7508_v29  ;;  %5052 = vrot.lane.b32.xlu0 %v4710_v25, %s8682_s9 }
 0xf3a   :  { %v4887_v51 = vpop.f32.mrf.mxu1 }
 0xf3b   :  { %5447 = vrot.lane.b32.xlu1 %v4807_v20, %s8683_s13  ;;  %v4888_v52 = vadd.f32 %v7508_v29, %v4887_v51 }
 0xf3d   :  { %5368 = vrot.lane.b32.xlu0 %v4807_v20, %s8682_s9 }
 0xf3f   :  { %5445 = vrot.lane.b32.xlu1 %v4715_v24, %s8683_s13 }
 0xf41   :  { %5366 = vrot.lane.b32.xlu0 %v4715_v24, %s8682_s9 }
 0xfa5   :  { %v5288_v38 = vpop.permute.xlu1 %5287 }
 0xfa7   :  { %v4974_v40 = vpop.permute.xlu0 %4973 }
 0xfa8   :  { %8321 = vmatmul.mubr.msk.f32.vlgmr.msra.gmra.mxu1 %vm483_vm2, %v4974_v40 }
 0xfa9   :  { %8329 = vmatpush3.xpose.msk.msra.mxu1 %vm483_vm2, %v5134_v34  ;;  %v5132_v41 = vpop.permute.xlu1 %5131  ;;  %8330 = vmatprep.mubr.msk.f32.mxu1 %vm8680_vm1, %v8679_v10 }
 0xfaa   :  { %8338 = vmatprep.subr.mxu1 %v8679_v10 }
 0xfab   :  { %v5053_v45 = vpop.permute.xlu0 %5052 }
 0xfac   :  { %8326 = vmatmul.mubr.msk.f32.vlgmr.msra.gmra.mxu0 %vm483_vm2, %v5053_v45  ;;  %8331 = vmatmul.mubr.msk.f32.vlgmr.msra.gmra.mxu1 %vm483_vm2, %v5132_v41 }
 0xfad   :  { %8334 = vmatpush3.xpose.msk.msra.mxu0 %vm483_vm2, %v4807_v20  ;;  %8339 = vmatpush3.xpose.msk.msra.mxu1 %vm483_vm2, %v5290_v37  ;;  %v5448_v46 = vpop.permute.xlu1 %5447 }
 0xfae   :  { %8335 = vmatprep.mubr.msk.f32.mxu0 %vm8680_vm1, %v8679_v10  ;;  %8340 = vmatprep.mubr.msk.f32.mxu1 %vm8680_vm1, %v8679_v10 }
 0xfaf   :  { %8343 = vmatprep.subr.mxu0 %v8679_v10  ;;  %8348 = vmatprep.subr.mxu1 %v8679_v10  ;;  %v5369_v49 = vpop.permute.xlu0 %5368 }
 0xfb0   :  { %8336 = vmatmul.mubr.msk.f32.vlgmr.msra.gmra.mxu0 %vm483_vm2, %v4715_v24  ;;  %8341 = vmatmul.mubr.msk.f32.vlgmr.msra.gmra.mxu1 %vm483_vm2, %v5288_v38 }
 0xfb1   :  { %8344 = vmatpush3.xpose.msk.msra.mxu0 %vm483_vm2, %v5369_v49  ;;  %8349 = vmatpush3.xpose.msk.msra.mxu1 %vm483_vm2, %v5448_v46  ;;  %v5446_v53 = vpop.permute.xlu1 %5445 }
 0xfb2   :  { %8345 = vmatprep.mubr.msk.f32.mxu0 %vm8680_vm1, %v8679_v10  ;;  %8350 = vmatprep.mubr.msk.f32.mxu1 %vm8680_vm1, %v8679_v10 }
 0xfb3   :  { %8353 = vmatprep.subr.mxu0 %v8679_v10  ;;  %v5367_v54 = vpop.permute.xlu0 %5366  ;;  %8358 = vmatprep.subr.mxu1 %v8679_v10 }
 0xfb4   :  { %8346 = vmatmul.mubr.msk.f32.vlgmr.msra.gmra.mxu0 %vm483_vm2, %v5367_v54  ;;  %8351 = vmatmul.mubr.msk.f32.vlgmr.msra.gmra.mxu1 %vm483_vm2, %v5446_v53 }
 0xfb5   :  { %8354 = vmatpush3.msra.mxu0 %v4888_v52  ;;  %8355 = vmatprep.mubr.msk.f32.mxu0 %vm8680_vm1, %v8679_v10 }
 0xfb6   :  { %8363 = vmatprep.subr.mxu0 %v8679_v10  ;;  %8360 = vmatprep.mubr.msk.f32.mxu1 %vm8680_vm1, %v8679_v10 }
 0xff5   :  { %v4968_v58 = vpop.f32.mrf.mxu0 }
 0xff6   :  { %v4972_v59 = vmul.f32 0.35355338, %v4968_v58 }
 0xff7   :  { %v8317_v42 = vpop.f32.mrf.mxu0 }
 0xff8   :  { %v5524_v16 = vsel %vm483_vm2, %v4972_v59, -inf }
 0xff9   :  { %5525 = vmax.xlane.f32.xlu0 %v5524_v16 }
0x1068   :  { %v5047_v56 = vpop.f32.mrf.mxu1 }
0x1069   :  { %v5051_v50 = vmul.f32 0.35355338, %v5047_v56 }
0x106a   :  { %v8322_v44 = vpop.f32.mrf.mxu1 }
0x106b   :  { %v5527_v60 = vsel %vm483_vm2, %v5051_v50, -inf }
0x106c   :  { %5528 = vmax.xlane.f32.xlu1 %v5527_v60  ;;  %v5126_v61 = vpop.f32.mrf.mxu0  ;;  %v5205_v62 = vpop.f32.mrf.mxu1 }
0x106d   :  { %v5130_v63 = vmul.f32 0.35355338, %v5126_v61  ;;  %v5209_v7 = vmul.f32 0.35355338, %v5205_v62 }
0x106e   :  { %v8327_v6 = vpop.f32.mrf.mxu0  ;;  %v8332_v8 = vpop.f32.mrf.mxu1 }
0x106f   :  { %v5530_v12 = vsel %vm483_vm2, %v5130_v63, -inf  ;;  %v5533_v47 = vsel %vm483_vm2, %v5209_v7, -inf }
0x1070   :  { %v5361_v57 = vpop.f32.mrf.mxu1  ;;  %5531 = vmax.xlane.f32.xlu0 %v5530_v12  ;;  %v5282_v13 = vpop.f32.mrf.mxu0 }
0x1071   :  { %v5286_v4 = vmul.f32 0.35355338, %v5282_v13  ;;  %v5365_v0 = vmul.f32 0.35355338, %v5361_v57 }
0x1072   :  { %v8337_v14 = vpop.f32.mrf.mxu0  ;;  %v8342_v55 = vpop.f32.mrf.mxu1 }
0x1073   :  { %v5536_v11 = vsel %vm483_vm2, %v5286_v4, -inf  ;;  %v5539_v43 = vsel %vm483_vm2, %v5365_v0, -inf }
0x1074   :  { %v5519_v39 = vpop.f32.mrf.mxu1  ;;  %5534 = vmax.xlane.f32.xlu0 %v5533_v47  ;;  %5537 = vmax.xlane.f32.xlu1 %v5536_v11  ;;  %v5440_v18 = vpop.f32.mrf.mxu0 }
0x1075   :  { %v5444_v15 = vmul.f32 0.35355338, %v5440_v18  ;;  %v5523_v32 = vmul.f32 0.35355338, %v5519_v39 }
0x1076   :  { %v8347_v19 = vpop.f32.mrf.mxu0  ;;  %v8352_v20 = vpop.f32.mrf.mxu1 }
0x1077   :  { %v5542_v21 = vsel %vm483_vm2, %v5444_v15, -inf  ;;  %v5545_v22 = vsel %vm483_vm2, %v5523_v32, -inf }
0x1078   :  { %5540 = vmax.xlane.f32.xlu0 %v5539_v43  ;;  %5543 = vmax.xlane.f32.xlu1 %v5542_v21 }
0x107c   :  { %5546 = vmax.xlane.f32.xlu0 %v5545_v22 }
0x1082   :  { %v5526_v23 = vpop.xlane.xlu0 %5525 }
0x1083   :  { %v5548_v24 = vsub.f32 %v4972_v59, %v5526_v23 }
0x1085   :  { %v5556_v33 = vmul.f32 1.442695, %v5548_v24 }
0x1087   :  { %8547 = vpow2.f32 %v5556_v33 }
0x1089   :  { %5686 = vrot.lane.b32.xlu1 %v4888_v52, %s8681_s5 }
0x108d   :  { %5838 = vrot.lane.b32.xlu1 %v4888_v52, %s8683_s13 }
0x1091   :  { %6003 = vrot.lane.b32.xlu1 %v9589_v31, %s8681_s5  ;;  %s10018_s5 = sld [smem:[#allocation30_spill]] }
0x1092   :  { %5762 = vrot.lane.b32.xlu0 %v4888_v52, %s8682_s9 }
0x1094   :  { %v8548_v25 = vpop.eup %8547 }
0x1095   :  { %v5572_v26 = vsel %vm483_vm2, %v8548_v25, 0.0 }
0x10b5   :  { %5573 = vadd.xlane.f32.xlu1 %v5572_v26 }
0x10f5   :  { %v5529_v29 = vpop.xlane.xlu1 %5528 }
0x10f6   :  { %v5549_v30 = vsub.f32 %v5051_v50, %v5529_v29 }
0x10f8   :  { %v5558_v34 = vmul.f32 1.442695, %v5549_v30 }
0x10f9   :  { %v5532_v37 = vpop.xlane.xlu0 %5531 }
0x10fa   :  { %8549 = vpow2.f32 %v5558_v34  ;;  %v5550_v38 = vsub.f32 %v5130_v63, %v5532_v37 }
0x10fc   :  { %v5560_v40 = vmul.f32 1.442695, %v5550_v38 }
0x10fd   :  { %v5538_v41 = vpop.xlane.xlu1 %5537  ;;  %v5535_v45 = vpop.xlane.xlu0 %5534 }
0x10fe   :  { %8551 = vpow2.f32 %v5560_v40  ;;  %v5552_v46 = vsub.f32 %v5286_v4, %v5538_v41  ;;  %v5551_v49 = vsub.f32 %v5209_v7, %v5535_v45 }
0x1100   :  { %v5564_v51 = vmul.f32 1.442695, %v5552_v46  ;;  %v5562_v52 = vmul.f32 1.442695, %v5551_v49 }
0x1101   :  { %v5544_v53 = vpop.xlane.xlu1 %5543  ;;  %v5541_v54 = vpop.xlane.xlu0 %5540 }
0x1102   :  { %8553 = vpow2.f32 %v5564_v51  ;;  %v5554_v58 = vsub.f32 %v5444_v15, %v5544_v53  ;;  %v5553_v59 = vsub.f32 %v5365_v0, %v5541_v54 }
0x1103   :  { %8555 = vpow2.f32 %v5562_v52 }
0x1104   :  { %v5568_v42 = vmul.f32 1.442695, %v5554_v58  ;;  %v5566_v16 = vmul.f32 1.442695, %v5553_v59  ;;  %v6249_v59 = vld [vmem:[%s10017_s0 + $0x18] sm:$0xff] }
0x1105   :  { %v5687_v56 = vpop.permute.xlu1 %5686  ;;  %v5547_v50 = vpop.xlane.xlu0 %5546 }
0x1106   :  { %8557 = vpow2.f32 %v5568_v42  ;;  %v5555_v44 = vsub.f32 %v5523_v32, %v5547_v50  ;;  %8359 = vmatpush3.msra.mxu1 %v5687_v56  ;;  %v6247_v56 = vld [vmem:[%s10017_s0 + $0x8] sm:$0xff] }
0x1107   :  { %v8550_v60 = vpop.eup %8549  ;;  %8559 = vpow2.f32 %v5566_v16  ;;  %8368 = vmatprep.subr.mxu1 %v8679_v10  ;;  %v6248_v16 = vld [vmem:[%s10017_s0 + $0x10] sm:$0xff] }
0x1108   :  { %v5570_v61 = vmul.f32 1.442695, %v5555_v44  ;;  %v5575_v62 = vsel %vm483_vm2, %v8550_v60, 0.0 }
0x1109   :  { %5576 = vadd.xlane.f32.xlu0 %v5575_v62  ;;  %v5839_v11 = vpop.permute.xlu1 %5838  ;;  %v5763_v20 = vpop.permute.xlu0 %5762 }
0x110a   :  { %8561 = vpow2.f32 %v5570_v61 }
0x110b   :  { %v8552_v63 = vpop.eup %8551 }
0x110c   :  { %v5578_v6 = vsel %vm483_vm2, %v8552_v63, 0.0 }
0x110d   :  { %5579 = vadd.xlane.f32.xlu1 %v5578_v6  ;;  %v6004_v39 = vpop.permute.xlu1 %6003 }
0x110f   :  { %v8554_v8 = vpop.eup %8553 }
0x1110   :  { %v8556_v7 = vpop.eup %8555  ;;  %v5584_v12 = vsel %vm483_vm2, %v8554_v8, 0.0 }
0x1111   :  { %5585 = vadd.xlane.f32.xlu1 %v5584_v12  ;;  %v5581_v57 = vsel %vm483_vm2, %v8556_v7, 0.0 }
0x1112   :  { %5582 = vadd.xlane.f32.xlu0 %v5581_v57 }
0x1113   :  { %v8558_v13 = vpop.eup %8557 }
0x1114   :  { %v8560_v4 = vpop.eup %8559  ;;  %v5590_v14 = vsel %vm483_vm2, %v8558_v13, 0.0 }
0x1115   :  { %5591 = vadd.xlane.f32.xlu1 %v5590_v14  ;;  %v5587_v55 = vsel %vm483_vm2, %v8560_v4, 0.0 }
0x1116   :  { %5588 = vadd.xlane.f32.xlu0 %v5587_v55 }
0x1117   :  { %v9649_v0 = vpop.eup %8561 }
0x1118   :  { %v5593_v47 = vsel %vm483_vm2, %v9649_v0, 0.0 }
0x111a   :  { %5594 = vadd.xlane.f32.xlu0 %v5593_v47 }
0x1126   :  { %6155 = vrot.lane.b32.xlu1 %v9589_v31, %s8683_s13  ;;  %s10020_s13 = sld [smem:[#allocation31_spill]] }
0x1130   :  { %6079 = vrot.lane.b32.xlu0 %v9589_v31, %s8682_s9  ;;  %s10019_s9 = sld [smem:[#allocation33_spill]] }
0x113e   :  { %v5574_v18 = vpop.xlane.xlu1 %5573 }
0x113f   :  { %8563 = vrcp.f32 %v5574_v18 }
0x114c   :  { %v8564_v15 = vpop.eup %8563 }
0x114d   :  { %v5604_v19 = vmul.f32 %v8564_v15, %v8548_v25 }
0x114f   :  { %8356 = vmatmul.mubr.msk.f32.vlgmr.msra.gmra.mxu0 %vm483_vm2, %v5604_v19 }
0x1150   :  { %8364 = vmatpush3.msra.mxu0 %v5763_v20  ;;  %8365 = vmatprep.mubr.msk.f32.mxu0 %vm8680_vm1, %v8679_v10 }
0x1151   :  { %8373 = vmatprep.subr.mxu0 %v8679_v10 }
0x1192   :  { %v5577_v32 = vpop.xlane.xlu0 %5576 }
0x1193   :  { %8565 = vrcp.f32 %v5577_v32 }
0x1196   :  { %v5580_v43 = vpop.xlane.xlu1 %5579 }
0x1197   :  { %8567 = vrcp.f32 %v5580_v43 }
0x119a   :  { %v5586_v21 = vpop.xlane.xlu1 %5585 }
0x119b   :  { %8569 = vrcp.f32 %v5586_v21  ;;  %v5583_v22 = vpop.xlane.xlu0 %5582 }
0x119c   :  { %8571 = vrcp.f32 %v5583_v22  ;;  %v7535_v22 = vld [vmem:[%s10018_s5] ss:$0 sm:$0xff] }
0x119e   :  { %v5592_v23 = vpop.xlane.xlu1 %5591 }
0x119f   :  { %8573 = vrcp.f32 %v5592_v23  ;;  %v5589_v24 = vpop.xlane.xlu0 %5588 }
0x11a0   :  { %v8566_v33 = vpop.eup %8565  ;;  %8575 = vrcp.f32 %v5589_v24 }
0x11a1   :  { %v5605_v25 = vmul.f32 %v8566_v33, %v8550_v60  ;;  %v6246_v60 = vld [vmem:[%s10017_s0] sm:$0xff] }
0x11a2   :  { %v6156_v51 = vpop.permute.xlu1 %6155 }
0x11a3   :  { %v5595_v26 = vpop.xlane.xlu0 %5594  ;;  %8361 = vmatmul.mubr.msk.f32.vlgmr.msra.gmra.mxu1 %vm483_vm2, %v5605_v25 }
0x11a4   :  { %v8568_v29 = vpop.eup %8567  ;;  %8577 = vrcp.f32 %v5595_v26  ;;  %8369 = vmatpush3.msra.mxu1 %v5839_v11  ;;  %8370 = vmatprep.mubr.msk.f32.mxu1 %vm8680_vm1, %v8679_v10 }
0x11a5   :  { %v5606_v30 = vmul.f32 %v8568_v29, %v8552_v63  ;;  %8378 = vmatprep.subr.mxu1 %v8679_v10 }
0x11a7   :  { %8366 = vmatmul.mubr.msk.f32.vlgmr.msra.gmra.mxu0 %vm483_vm2, %v5606_v30  ;;  %v6080_v41 = vpop.permute.xlu0 %6079 }
0x11a8   :  { %v8570_v34 = vpop.eup %8569  ;;  %8374 = vmatpush3.msra.mxu0 %v9589_v31  ;;  %8375 = vmatprep.mubr.msk.f32.mxu0 %vm8680_vm1, %v8679_v10 }
0x11a9   :  { %v8572_v37 = vpop.eup %8571  ;;  %8383 = vmatprep.subr.mxu0 %v8679_v10  ;;  %v5608_v38 = vmul.f32 %v8570_v34, %v8554_v8 }
0x11aa   :  { %v5607_v40 = vmul.f32 %v8572_v37, %v8556_v7 }
0x11ab   :  { %8376 = vmatmul.mubr.msk.f32.vlgmr.msra.gmra.mxu0 %vm483_vm2, %v5608_v38 }
0x11ac   :  { %v8574_v45 = vpop.eup %8573  ;;  %8371 = vmatmul.mubr.msk.f32.vlgmr.msra.gmra.mxu1 %vm483_vm2, %v5607_v40  ;;  %8384 = vmatpush3.msra.mxu0 %v6080_v41 }
0x11ad   :  { %v8576_v46 = vpop.eup %8575  ;;  %8379 = vmatpush3.msra.mxu1 %v6004_v39  ;;  %8380 = vmatprep.mubr.msk.f32.mxu1 %vm8680_vm1, %v8679_v10  ;;  %v5610_v31 = vmul.f32 %v8574_v45, %v8558_v13 }
0x11ae   :  { %8385 = vmatprep.mubr.msk.f32.mxu0 %vm8680_vm1, %v8679_v10  ;;  %8388 = vmatprep.subr.mxu1 %v8679_v10  ;;  %v5609_v49 = vmul.f32 %v8576_v46, %v8560_v4 }
0x11af   :  { %8386 = vmatmul.mubr.msk.f32.vlgmr.msra.gmra.mxu0 %vm483_vm2, %v5610_v31  ;;  %8393 = vmatprep.subr.mxu0 %v6249_v59 }
0x11b0   :  { %8381 = vmatmul.mubr.msk.f32.vlgmr.msra.gmra.mxu1 %vm483_vm2, %v5609_v49  ;;  %8394 = vmatpush3.msra.mxu0 %v6249_v59  ;;  %v6403_v59 = vld [vmem:[%s10019_s9 + $0x98] sm:$0xff] }
0x11b1   :  { %v8578_v52 = vpop.eup %8577  ;;  %8389 = vmatpush3.msra.mxu1 %v6156_v51  ;;  %8390 = vmatprep.mubr.msk.f32.mxu1 %vm8680_vm1, %v8679_v10  ;;  %v6409_v51 = vld [vmem:[%s10019_s9 + $0xc8] sm:$0xff] }
0x11b2   :  { %v5611_v53 = vmul.f32 %v8578_v52, %v9649_v0  ;;  %8395 = vmatprep.subr.mxu0 %v6248_v16  ;;  %v6411_v52 = vld [vmem:[%s10019_s9 + $0xd8] sm:$0xff]  ;;  %6488 = vmatprep.subr.mxu1 %v6409_v51 }
0x11b3   :  { %8396 = vmatpush3.msra.mxu0 %v6248_v16  ;;  %v6402_v16 = vld [vmem:[%s10019_s9 + $0x90] sm:$0xff] }
0x11b4   :  { %8391 = vmatmul.mubr.msk.f32.vlgmr.msra.gmra.mxu1 %vm483_vm2, %v5611_v53  ;;  %8397 = vmatprep.subr.mxu0 %v6247_v56  ;;  %v6408_v53 = vld [vmem:[%s10019_s9 + $0xc0] sm:$0xff] }
0x11b5   :  { %6528 = vmatprep.mubr.f32.mxu1 %v8679_v10  ;;  %8398 = vmatpush3.msra.mxu0 %v6247_v56  ;;  %v6393_v56 = vld [vmem:[%s10019_s9 + $0x48] sm:$0xff] }
0x11b6   :  { %8399 = vmatprep.subr.mxu0 %v6246_v60  ;;  %6489 = vmatpush1.msra.mxu1 %v6408_v53 }
0x11b7   :  { %8400 = vmatpush3.msra.mxu0 %v6246_v60  ;;  %v6394_v60 = vld [vmem:[%s10019_s9 + $0x50] sm:$0xff] }
0x11b8   :  { %6565 = vmatprep.subr.mxu0 %v6411_v52 }
0x120f   :  { %v5681_v54 = vpop.f32.mrf.mxu0 }
0x1211   :  { %v8357_v58 = vpop.f32.mrf.mxu0 }
0x1212   :  { %v6401_v58 = vld [vmem:[%s10019_s9 + $0x88] sm:$0xff] }
0x1213   :  { %6490 = vmatprep.subr.mxu1 %v6401_v58 }
0x1263   :  { %v5758_v42 = vpop.f32.mrf.mxu1 }
0x1264   :  { %5915 = vrot.lane.b32.xlu0 %v5758_v42, %s8684_s17  ;;  %v6400_v42 = vld [vmem:[%s10019_s9 + $0x80] sm:$0xff] }
0x1265   :  { %v8362_v50 = vpop.f32.mrf.mxu1  ;;  %6491 = vmatpush1.msra.mxu1 %v6400_v42 }
0x1266   :  { %v6395_v50 = vld [vmem:[%s10019_s9 + $0x58] sm:$0xff]  ;;  %6492 = vmatprep.subr.mxu1 %v6393_v56 }
0x1267   :  { %v5834_v44 = vpop.f32.mrf.mxu0 }
0x1268   :  { %5919 = vrot.lane.b32.xlu1 %v5834_v44, %s8685_s21  ;;  %v6392_v44 = vld [vmem:[%s10019_s9 + $0x40] sm:$0xff] }
0x1269   :  { %v8367_v61 = vpop.f32.mrf.mxu0  ;;  %6493 = vmatpush1.msra.mxu1 %v6392_v44 }
0x126a   :  { %v6385_v61 = vld [vmem:[%s10019_s9 + $0x8] sm:$0xff] }
0x126b   :  { %v5998_v62 = vpop.f32.mrf.mxu0  ;;  %6494 = vmatprep.subr.mxu1 %v6385_v61 }
0x126c   :  { %v5910_v63 = vpop.f32.mrf.mxu1 }
0x126d   :  { %5923 = vrot.lane.b32.xlu1 %v5910_v63, %s8686_s25  ;;  %v8377_v6 = vpop.f32.mrf.mxu0  ;;  %v6384_v63 = vld [vmem:[%s10019_s9] sm:$0xff] }
0x126e   :  { %v8372_v8 = vpop.f32.mrf.mxu1  ;;  %v6386_v6 = vld [vmem:[%s10019_s9 + $0x10] sm:$0xff]  ;;  %6495 = vmatpush1.msra.mxu1 %v6384_v63 }
0x126f   :  { %v6151_v7 = vpop.f32.mrf.mxu0  ;;  %v6413_v8 = vld [vmem:[%s10019_s9 + $0xe8] sm:$0xff] }
0x1270   :  { %v6075_v12 = vpop.f32.mrf.mxu1  ;;  %6642 = vmatprep.subr.mxu1 %v6413_v8 }
0x1271   :  { %6232 = vrot.lane.b32.xlu0 %v6075_v12, %s8684_s17  ;;  %v8387_v57 = vpop.f32.mrf.mxu0  ;;  %s10021_s17 = sld [smem:[#allocation32_spill]] }
0x1272   :  { %v8382_v13 = vpop.f32.mrf.mxu1 }
0x1274   :  { %v6227_v4 = vpop.f32.mrf.mxu1 }
0x1275   :  { %6240 = vrot.lane.b32.xlu1 %v6227_v4, %s8686_s25  ;;  %6236 = vrot.lane.b32.xlu0 %v6151_v7, %s8685_s21  ;;  %v6415_v7 = vld [vmem:[%s10019_s9 + $0xf8] sm:$0xff]  ;;  %s10022_s21 = sld [smem:[#allocation35_spill]] }
0x1276   :  { %v8392_v14 = vpop.f32.mrf.mxu1  ;;  %s10023_s25 = sld [smem:[#allocation34_spill]] }
0x127b   :  { %v6802_v51 = vld [vmem:[%s10022_s21 + $0x70] sm:$0xff]  ;;  %v6849_v53 = vld [vmem:[%s10022_s21 + $0x1e8] sm:$0xff]  ;;  %v6848_v42 = vld [vmem:[%s10022_s21 + $0x1e0] sm:$0xff] }
0x127c   :  { %v6834_v52 = vld [vmem:[%s10022_s21 + $0x170] sm:$0xff]  ;;  %v6833_v58 = vld [vmem:[%s10022_s21 + $0x168] sm:$0xff]  ;;  %v6832_v56 = vld [vmem:[%s10022_s21 + $0x160] sm:$0xff] }
0x127d   :  { %v6847_v44 = vld [vmem:[%s10022_s21 + $0x1d8] sm:$0xff]  ;;  %v6846_v63 = vld [vmem:[%s10022_s21 + $0x1d0] sm:$0xff] }
0x127e   :  { %v6831_v61 = vld [vmem:[%s10022_s21 + $0x158] sm:$0xff]  ;;  %v6830_v8 = vld [vmem:[%s10022_s21 + $0x150] sm:$0xff] }
0x127f   :  { %v6886_v1 = vld [vmem:[%s10022_s21 + $0x310] sm:$0xff] }
0x12d6   :  { %v5916_v0 = vpop.permute.xlu0 %5915 }
0x12d7   :  { %v5926_v47 = vsel %vm483_vm2, %v5681_v54, %v5916_v0  ;;  %v6410_v54 = vld [vmem:[%s10019_s9 + $0xd0] sm:$0xff] }
0x12da   :  { %v5920_v55 = vpop.permute.xlu1 %5919 }
0x12db   :  { %v5927_v11 = vsel %vm1515_vm3, %v5926_v47, %v5920_v55  ;;  %v7538_v47 = vld [vmem:[%s10020_s13] ss:$0 sm:$0xff] }
0x12df   :  { %v5924_v39 = vpop.permute.xlu1 %5923 }
0x12e0   :  { %v5928_v18 = vsel %vm1517_vm4, %v5927_v11, %v5924_v39  ;;  %v7539_v39 = vld [vmem:[%s10021_s17] ss:$0 sm:$0xff] }
0x12e1   :  { %8401 = vmatprep.mubr.msk.f32.mxu0 %vm229_vm0, %v5928_v18 }
0x12e3   :  { %v6233_v15 = vpop.permute.xlu0 %6232 }
0x12e4   :  { %v6243_v19 = vsel %vm483_vm2, %v5998_v62, %v6233_v15  ;;  %v6387_v62 = vld [vmem:[%s10019_s9 + $0x18] sm:$0xff] }
0x12e7   :  { %v6241_v20 = vpop.permute.xlu1 %6240  ;;  %v6237_v32 = vpop.permute.xlu0 %6236 }
0x12e8   :  { %v6244_v43 = vsel %vm1515_vm3, %v6243_v19, %v6237_v32  ;;  %v6412_v32 = vld [vmem:[%s10019_s9 + $0xe0] sm:$0xff] }
0x12e9   :  { %v6245_v21 = vsel %vm1517_vm4, %v6244_v43, %v6241_v20  ;;  %v6414_v43 = vld [vmem:[%s10019_s9 + $0xf0] sm:$0xff] }
0x12ea   :  { %8402 = vmatmul.mubr.msk.f32.vlgmr.msra.gmra.mxu0 %vm229_vm0, %v6245_v21  ;;  %v6405_v21 = vld [vmem:[%s10019_s9 + $0xa8] sm:$0xff] }
0x12eb   :  { %6605 = vmatprep.mubr.f32.mxu0 %v8679_v10  ;;  %6566 = vmatpush1.msra.mxu0 %v6410_v54  ;;  %v6801_v54 = vld [vmem:[%s10022_s21 + $0x68] sm:$0xff] }
0x12ec   :  { %6567 = vmatprep.subr.mxu0 %v6403_v59  ;;  %v6816_v59 = vld [vmem:[%s10022_s21 + $0xe0] sm:$0xff] }
0x12ed   :  { %6568 = vmatpush1.msra.mxu0 %v6402_v16  ;;  %v6800_v16 = vld [vmem:[%s10022_s21 + $0x60] sm:$0xff] }
0x12ee   :  { %6569 = vmatprep.subr.mxu0 %v6395_v50  ;;  %v6815_v50 = vld [vmem:[%s10022_s21 + $0xd8] sm:$0xff] }
0x12ef   :  { %6570 = vmatpush1.msra.mxu0 %v6394_v60  ;;  %v6799_v60 = vld [vmem:[%s10022_s21 + $0x58] sm:$0xff] }
0x12f0   :  { %6571 = vmatprep.subr.mxu0 %v6387_v62  ;;  %v6814_v62 = vld [vmem:[%s10022_s21 + $0xd0] sm:$0xff] }
0x12f1   :  { %6572 = vmatpush1.msra.mxu0 %v6386_v6  ;;  %v6798_v6 = vld [vmem:[%s10022_s21 + $0x50] sm:$0xff] }
0x12f2   :  { %6719 = vmatprep.subr.mxu0 %v6415_v7  ;;  %v6813_v7 = vld [vmem:[%s10022_s21 + $0xc8] sm:$0xff] }
0x13aa   :  { %v8403_v23 = vpop.f32.mrf.mxu0 }
0x13ab   :  { %v6335_v24 = vadd.f32 %v8403_v23, %v7535_v22 }
0x13ac   :  { %v6329_v33 = vpop.f32.mrf.mxu0 }
0x13ad   :  { %v6339_v25 = vadd.f32 %v6335_v24, %v9557_v48  ;;  %v6330_v26 = vadd.f32 %v7535_v22, %v6329_v33  ;;  %v6407_v22 = vld [vmem:[%s10019_s9 + $0xb8] sm:$0xff]  ;;  %v6404_v24 = vld [vmem:[%s10019_s9 + $0xa0] sm:$0xff]  ;;  %v6406_v33 = vld [vmem:[%s10019_s9 + $0xb0] sm:$0xff] }
0x13af   :  { %v6338_v29 = vadd.f32 %v6330_v26, %v9553_v17  ;;  %v6343_v30 = vsel %vm229_vm0, %v6339_v25, 0.0  ;;  %v6397_v26 = vld [vmem:[%s10019_s9 + $0x68] sm:$0xff] }
0x13b0   :  { %6344 = vadd.xlane.f32.xlu1 %v6343_v30  ;;  %v6396_v30 = vld [vmem:[%s10019_s9 + $0x60] sm:$0xff] }
0x13b1   :  { %v6340_v34 = vsel %vm229_vm0, %v6338_v29, 0.0 }
0x13b2   :  { %6341 = vadd.xlane.f32.xlu0 %v6340_v34  ;;  %v6398_v34 = vld [vmem:[%s10019_s9 + $0x70] sm:$0xff] }
0x1439   :  { %v6345_v37 = vpop.xlane.xlu1 %6344 }
0x143a   :  { %v6347_v38 = vmul.f32 0.03125, %v6345_v37  ;;  %v6389_v37 = vld [vmem:[%s10019_s9 + $0x28] sm:$0xff] }
0x143b   :  { %v6342_v40 = vpop.xlane.xlu0 %6341 }
0x143c   :  { %v6346_v41 = vmul.f32 0.03125, %v6342_v40  ;;  %v6349_v45 = vsub.f32 %v6339_v25, %v6347_v38  ;;  %v6391_v38 = vld [vmem:[%s10019_s9 + $0x38] sm:$0xff]  ;;  %v6388_v40 = vld [vmem:[%s10019_s9 + $0x20] sm:$0xff] }
0x143e   :  { %v6348_v48 = vsub.f32 %v6338_v29, %v6346_v41  ;;  %v6351_v31 = vmul.f32 %v6349_v45, %v6349_v45  ;;  %v6399_v29 = vld [vmem:[%s10019_s9 + $0x78] sm:$0xff]  ;;  %v6390_v41 = vld [vmem:[%s10019_s9 + $0x30] sm:$0xff] }
0x1440   :  { %v6350_v46 = vmul.f32 %v6348_v48, %v6348_v48  ;;  %v6355_v49 = vsel %vm229_vm0, %v6351_v31, 0.0  ;;  %v6818_v31 = vld [vmem:[%s10022_s21 + $0xf0] sm:$0xff] }
0x1442   :  { %v6352_v17 = vsel %vm229_vm0, %v6350_v46, 0.0  ;;  %v6803_v46 = vld [vmem:[%s10022_s21 + $0x78] sm:$0xff] }
0x1443   :  { %6353 = vadd.xlane.f32.xlu0 %v6352_v17  ;;  %v6835_v17 = vld [vmem:[%s10022_s21 + $0x178] sm:$0xff] }
0x1447   :  { %6356 = vadd.xlane.f32.xlu0 %v6355_v49  ;;  %v6850_v49 = vld [vmem:[%s10022_s21 + $0x1f0] sm:$0xff] }
0x14cc   :  { %v6354_v12 = vpop.xlane.xlu0 %6353 }
0x14cd   :  { %v6358_v57 = vmul.f32 0.03125, %v6354_v12  ;;  %v6845_v12 = vld [vmem:[%s10022_s21 + $0x1c8] sm:$0xff] }
0x14cf   :  { %v6360_v13 = vadd.f32 1e-05, %v6358_v57  ;;  %v6797_v57 = vld [vmem:[%s10022_s21 + $0x48] sm:$0xff] }
0x14d0   :  { %v6357_v4 = vpop.xlane.xlu0 %6356 }
0x14d1   :  { %8579 = vrsqrt.f32 %v6360_v13  ;;  %v6359_v14 = vmul.f32 0.03125, %v6357_v4  ;;  %v6829_v13 = vld [vmem:[%s10022_s21 + $0x148] sm:$0xff]  ;;  %v6812_v4 = vld [vmem:[%s10022_s21 + $0xc0] sm:$0xff] }
0x14d3   :  { %v6361_v55 = vadd.f32 1e-05, %v6359_v14  ;;  %v6844_v14 = vld [vmem:[%s10022_s21 + $0x1c0] sm:$0xff] }
0x14d5   :  { %8581 = vrsqrt.f32 %v6361_v55  ;;  %v6796_v55 = vld [vmem:[%s10022_s21 + $0x40] sm:$0xff] }
0x14de   :  { %v8580_v0 = vpop.eup %8579 }
0x14df   :  { %v6364_v11 = vmul.f32 %v8580_v0, %v6348_v48  ;;  %v6851_v48 = vld [vmem:[%s10022_s21 + $0x1f8] sm:$0xff]  ;;  %v6828_v0 = vld [vmem:[%s10022_s21 + $0x140] sm:$0xff] }
0x14e1   :  { %v6373_v18 = vmul.f32 %v7538_v47, %v6364_v11  ;;  %v6843_v11 = vld [vmem:[%s10022_s21 + $0x1b8] sm:$0xff] }
0x14e2   :  { %v8582_v15 = vpop.eup %8581 }
0x14e3   :  { %v6365_v19 = vmul.f32 %v8582_v15, %v6349_v45  ;;  %v9730_v20 = vadd.f32 %v7539_v39, %v6373_v18  ;;  %v6819_v45 = vld [vmem:[%s10022_s21 + $0xf8] sm:$0xff]  ;;  %v6810_v15 = vld [vmem:[%s10022_s21 + $0xb0] sm:$0xff] }
0x14e4   :  { %v6827_v18 = vld [vmem:[%s10022_s21 + $0x138] sm:$0xff] }
0x14e5   :  { %7540 = vmatmul.mubr.msk.f32.vlgmr.msra.gmra.mxu1 %vm229_vm0, %v9730_v20  ;;  %7542 = vmatmul.mubr.msk.f32.vlgmr.msra.gmra.mxu0 %vm229_vm0, %v9730_v20  ;;  %v6374_v23 = vmul.f32 %v7538_v47, %v6365_v19  ;;  %v6811_v47 = vld [vmem:[%s10022_s21 + $0xb8] sm:$0xff]  ;;  %v6842_v19 = vld [vmem:[%s10022_s21 + $0x1b0] sm:$0xff] }
0x14e6   :  { %6643 = vmatpush1.msra.mxu1 %v6412_v32  ;;  %6720 = vmatpush1.msra.mxu0 %v6414_v43  ;;  %v6794_v32 = vld [vmem:[%s10022_s21 + $0x30] sm:$0xff] }
0x14e7   :  { %6644 = vmatprep.subr.mxu1 %v6405_v21  ;;  %6721 = vmatprep.subr.mxu0 %v6407_v22  ;;  %v9742_v25 = vadd.f32 %v7539_v39, %v6374_v23  ;;  %v6795_v39 = vld [vmem:[%s10022_s21 + $0x38] sm:$0xff]  ;;  %v6826_v43 = vld [vmem:[%s10022_s21 + $0x130] sm:$0xff]  ;;  %v6809_v21 = vld [vmem:[%s10022_s21 + $0xa8] sm:$0xff] }
0x14e8   :  { %6534 = vmatprep.mubr.f32.mxu1 %v8679_v10  ;;  %6611 = vmatprep.mubr.f32.mxu0 %v8679_v10  ;;  %v6841_v22 = vld [vmem:[%s10022_s21 + $0x1a8] sm:$0xff] }
0x14e9   :  { %6645 = vmatpush1.msra.mxu1 %v6404_v24  ;;  %6722 = vmatpush1.msra.mxu0 %v6406_v33  ;;  %v6793_v23 = vld [vmem:[%s10022_s21 + $0x28] sm:$0xff]  ;;  %v6808_v33 = vld [vmem:[%s10022_s21 + $0xa0] sm:$0xff] }
0x14ea   :  { %7541 = vmatmul.mubr.msk.f32.gmra.mxu1 %vm229_vm0, %v9742_v25  ;;  %7543 = vmatmul.mubr.msk.f32.gmra.mxu0 %vm229_vm0, %v9742_v25  ;;  %v6825_v24 = vld [vmem:[%s10022_s21 + $0x128] sm:$0xff] }
0x14eb   :  { %6646 = vmatprep.subr.mxu1 %v6397_v26  ;;  %6723 = vmatprep.subr.mxu0 %v6399_v29  ;;  %v6840_v26 = vld [vmem:[%s10022_s21 + $0x1a0] sm:$0xff] }
0x14ec   :  { %6647 = vmatpush1.msra.mxu1 %v6396_v30  ;;  %6724 = vmatpush1.msra.mxu0 %v6398_v34  ;;  %v6792_v29 = vld [vmem:[%s10022_s21 + $0x20] sm:$0xff]  ;;  %v6807_v34 = vld [vmem:[%s10022_s21 + $0x98] sm:$0xff] }
0x14ed   :  { %6648 = vmatprep.subr.mxu1 %v6389_v37  ;;  %6725 = vmatprep.subr.mxu0 %v6391_v38  ;;  %v6824_v30 = vld [vmem:[%s10022_s21 + $0x120] sm:$0xff]  ;;  %v6839_v37 = vld [vmem:[%s10022_s21 + $0x198] sm:$0xff] }
0x14ee   :  { %6649 = vmatpush1.msra.mxu1 %v6388_v40  ;;  %6682 = vmatprep.mubr.f32.mxu1 %v8679_v10  ;;  %v6791_v38 = vld [vmem:[%s10022_s21 + $0x18] sm:$0xff] }
0x14ef   :  { %6726 = vmatpush1.msra.mxu0 %v6390_v41  ;;  %6759 = vmatprep.mubr.f32.mxu0 %v8679_v10  ;;  %v6823_v40 = vld [vmem:[%s10022_s21 + $0x118] sm:$0xff]  ;;  %v6806_v41 = vld [vmem:[%s10022_s21 + $0x90] sm:$0xff] }
0x14f0   :  { %7544 = vmatmul.mubr.msk.f32.vlgmr.msra.gmra.mxu1 %vm229_vm0, %v9730_v20  ;;  %7546 = vmatmul.mubr.msk.f32.vlgmr.msra.gmra.mxu0 %vm229_vm0, %v9730_v20 }
0x14f1   :  { %6688 = vmatprep.mubr.f32.mxu1 %v8679_v10  ;;  %6765 = vmatprep.mubr.f32.mxu0 %v8679_v10  ;;  %v6817_v10 = vld [vmem:[%s10022_s21 + $0xe8] sm:$0xff] }
0x14f2   :  { %7874 = vmatprep.subr.mxu1 %v6819_v45  ;;  %7912 = vmatprep.subr.mxu0 %v6851_v48  ;;  %v6838_v45 = vld [vmem:[%s10022_s21 + $0x190] sm:$0xff] }
0x14f3   :  { %7875 = vmatpush3.msra.mxu1 %v6803_v46  ;;  %7913 = vmatpush3.msra.mxu0 %v6835_v17  ;;  %v6790_v48 = vld [vmem:[%s10022_s21 + $0x10] sm:$0xff]  ;;  %v6805_v17 = vld [vmem:[%s10022_s21 + $0x88] sm:$0xff] }
0x14f4   :  { %7545 = vmatmul.mubr.msk.f32.gmra.mxu1 %vm229_vm0, %v9742_v25  ;;  %7547 = vmatmul.mubr.msk.f32.gmra.mxu0 %vm229_vm0, %v9742_v25  ;;  %v6822_v46 = vld [vmem:[%s10022_s21 + $0x110] sm:$0xff] }
0x14f5   :  { %7876 = vmatprep.subr.mxu1 %v6818_v31  ;;  %7914 = vmatprep.subr.mxu0 %v6850_v49  ;;  %v6837_v31 = vld [vmem:[%s10022_s21 + $0x188] sm:$0xff] }
0x14f6   :  { %7877 = vmatpush3.msra.mxu1 %v6802_v51  ;;  %7915 = vmatpush3.msra.mxu0 %v6834_v52  ;;  %v6789_v49 = vld [vmem:[%s10022_s21 + $0x8] sm:$0xff]  ;;  %v6804_v52 = vld [vmem:[%s10022_s21 + $0x80] sm:$0xff] }
0x14f7   :  { %7878 = vmatprep.subr.mxu1 %v6817_v10  ;;  %7916 = vmatprep.subr.mxu0 %v6849_v53  ;;  %v6821_v51 = vld [vmem:[%s10022_s21 + $0x108] sm:$0xff]  ;;  %v6836_v10 = vld [vmem:[%s10022_s21 + $0x180] sm:$0xff] }
0x14f8   :  { %7879 = vmatpush3.msra.mxu1 %v6801_v54  ;;  %7917 = vmatpush3.msra.mxu0 %v6833_v58  ;;  %v6788_v53 = vld [vmem:[%s10022_s21] sm:$0xff]  ;;  %v6883_v58 = vld [vmem:[%s10022_s21 + $0x2f8] sm:$0xff] }
0x14f9   :  { %7880 = vmatprep.subr.mxu1 %v6816_v59  ;;  %7918 = vmatprep.subr.mxu0 %v6848_v42  ;;  %v6820_v54 = vld [vmem:[%s10022_s21 + $0x100] sm:$0xff]  ;;  %v6915_v59 = vld [vmem:[%s10022_s21 + $0x3f8] sm:$0xff] }
0x14fa   :  { %7881 = vmatpush3.msra.mxu1 %v6800_v16  ;;  %7919 = vmatpush3.msra.mxu0 %v6832_v56  ;;  %v9837_v42 = vld [vmem:[%s10023_s25] sm:$0xff] }
0x14fb   :  { %7882 = vmatprep.subr.mxu1 %v6815_v50  ;;  %7920 = vmatprep.subr.mxu0 %v6847_v44  ;;  %v6421_v16 = vrot.slane %v9837_v42, %v2011_v2  ;;  %v6429_v56 = vrot.slane %v9837_v42, %v2019_v3  ;;  %v6425_v50 = vrot.slane %v9837_v42, %v2015_v5 }
0x14fc   :  { %7883 = vmatpush3.msra.mxu1 %v6799_v60  ;;  %7921 = vmatpush3.msra.mxu0 %v6831_v61  ;;  %v6433_v44 = vrot.slane %v9837_v42, %v2023_v9  ;;  %v6867_v9 = vld [vmem:[%s10022_s21 + $0x278] sm:$0xff] }
0x14fd   :  { %7884 = vmatprep.subr.mxu1 %v6814_v62  ;;  %7922 = vmatprep.subr.mxu0 %v6846_v63 }
0x14fe   :  { %7885 = vmatpush3.msra.mxu1 %v6798_v6  ;;  %7923 = vmatpush3.msra.mxu0 %v6830_v8 }
0x14ff   :  { %7886 = vmatprep.subr.mxu1 %v6813_v7  ;;  %7924 = vmatprep.subr.mxu0 %v6845_v12 }
0x1500   :  { %7887 = vmatpush3.msra.mxu1 %v6797_v57  ;;  %7925 = vmatpush3.msra.mxu0 %v6829_v13 }
0x1501   :  { %7888 = vmatprep.subr.mxu1 %v6812_v4  ;;  %7926 = vmatprep.subr.mxu0 %v6844_v14  ;;  %v6899_v14 = vld [vmem:[%s10022_s21 + $0x378] sm:$0xff] }
0x1502   :  { %7889 = vmatpush3.msra.mxu1 %v6796_v55  ;;  %7927 = vmatpush3.msra.mxu0 %v6828_v0 }
0x1503   :  { %7890 = vmatprep.subr.mxu1 %v6811_v47  ;;  %7928 = vmatprep.subr.mxu0 %v6843_v11  ;;  %v6882_v11 = vld [vmem:[%s10022_s21 + $0x2f0] sm:$0xff] }
0x1504   :  { %7891 = vmatpush3.msra.mxu1 %v6795_v39  ;;  %7929 = vmatpush3.msra.mxu0 %v6827_v18  ;;  %v6914_v39 = vld [vmem:[%s10022_s21 + $0x3f0] sm:$0xff] }
0x1505   :  { %7892 = vmatprep.subr.mxu1 %v6810_v15  ;;  %7930 = vmatprep.subr.mxu0 %v6842_v19 }
0x1506   :  { %7893 = vmatpush3.msra.mxu1 %v6794_v32  ;;  %7931 = vmatpush3.msra.mxu0 %v6826_v43  ;;  %v6866_v32 = vld [vmem:[%s10022_s21 + $0x270] sm:$0xff] }
0x1507   :  { %7894 = vmatprep.subr.mxu1 %v6809_v21  ;;  %7932 = vmatprep.subr.mxu0 %v6841_v22  ;;  %v6898_v43 = vld [vmem:[%s10022_s21 + $0x370] sm:$0xff] }
0x1508   :  { %7895 = vmatpush3.msra.mxu1 %v6793_v23  ;;  %7933 = vmatpush3.msra.mxu0 %v6825_v24  ;;  %v9860_v23 = vrot.slane %v9837_v42, %v2031_v27  ;;  %v9865_v24 = vrot.slane %v9837_v42, %v2039_v28  ;;  %v6865_v27 = vld [vmem:[%s10022_s21 + $0x268] sm:$0xff] }
0x1509   :  { %7896 = vmatprep.subr.mxu1 %v6808_v33  ;;  %7934 = vmatprep.subr.mxu0 %v6840_v26  ;;  %v6881_v33 = vld [vmem:[%s10022_s21 + $0x2e8] sm:$0xff] }
0x150a   :  { %7897 = vmatpush3.msra.mxu1 %v6792_v29  ;;  %7935 = vmatpush3.msra.mxu0 %v6824_v30  ;;  %v6913_v26 = vld [vmem:[%s10022_s21 + $0x3e8] sm:$0xff] }
0x150b   :  { %7898 = vmatprep.subr.mxu1 %v6807_v34  ;;  %7936 = vmatprep.subr.mxu0 %v6839_v37  ;;  %v6897_v28 = vld [vmem:[%s10022_s21 + $0x368] sm:$0xff] }
0x150c   :  { %7899 = vmatpush3.msra.mxu1 %v6791_v38  ;;  %7937 = vmatpush3.msra.mxu0 %v6823_v40 }
0x150d   :  { %7900 = vmatprep.subr.mxu1 %v6806_v41  ;;  %7938 = vmatprep.subr.mxu0 %v6838_v45  ;;  %v6880_v41 = vld [vmem:[%s10022_s21 + $0x2e0] sm:$0xff] }
0x150e   :  { %7901 = vmatpush3.msra.mxu1 %v6790_v48  ;;  %7939 = vmatpush3.msra.mxu0 %v6822_v46  ;;  %v6912_v45 = vld [vmem:[%s10022_s21 + $0x3e0] sm:$0xff] }
0x150f   :  { %7902 = vmatprep.subr.mxu1 %v6805_v17  ;;  %7940 = vmatprep.subr.mxu0 %v6837_v31  ;;  %v6864_v17 = vld [vmem:[%s10022_s21 + $0x260] sm:$0xff] }
0x1510   :  { %7903 = vmatpush3.msra.mxu1 %v6789_v49  ;;  %7941 = vmatpush3.msra.mxu0 %v6821_v51  ;;  %v6896_v31 = vld [vmem:[%s10022_s21 + $0x360] sm:$0xff]  ;;  %v6879_v49 = vld [vmem:[%s10022_s21 + $0x2d8] sm:$0xff] }
0x1511   :  { %7904 = vmatprep.subr.mxu1 %v6804_v52  ;;  %7942 = vmatprep.subr.mxu0 %v6836_v10  ;;  %v6911_v10 = vld [vmem:[%s10022_s21 + $0x3d8] sm:$0xff] }
0x1512   :  { %7905 = vmatpush3.msra.mxu1 %v6788_v53  ;;  %7943 = vmatpush3.msra.mxu0 %v6820_v54  ;;  %v6863_v53 = vld [vmem:[%s10022_s21 + $0x258] sm:$0xff] }
0x1513   :  { %7950 = vmatprep.subr.mxu1 %v6883_v58  ;;  %7988 = vmatprep.subr.mxu0 %v6915_v59  ;;  %v6895_v54 = vld [vmem:[%s10022_s21 + $0x358] sm:$0xff]  ;;  %v6878_v58 = vld [vmem:[%s10022_s21 + $0x2d0] sm:$0xff] }
0x1514   :  { %v6910_v59 = vld [vmem:[%s10022_s21 + $0x3d0] sm:$0xff] }
0x15a5   :  { %v6530_v60 = vpop.f32.mrf.mxu1  ;;  %v6607_v61 = vpop.f32.mrf.mxu0 }
0x15a6   :  { %v6531_v62 = vadd.f32 %v6530_v60, %v6421_v16  ;;  %v6608_v63 = vadd.f32 %v6607_v61, %v6429_v56  ;;  %v6861_v60 = vld [vmem:[%s10022_s21 + $0x248] sm:$0xff] }
0x15a7   :  { %v6532_v6 = vpop.f32.mrf.mxu1  ;;  %v6609_v2 = vpop.f32.mrf.mxu0  ;;  %v6893_v61 = vld [vmem:[%s10022_s21 + $0x348] sm:$0xff] }
0x15a8   :  { %v6533_v8 = vadd.f32 %v6532_v6, %v6425_v50  ;;  %v6610_v3 = vadd.f32 %v6609_v2, %v6433_v44  ;;  %v6772_v13 = vmax.f32 %v6531_v62, 0.0  ;;  %v6774_v4 = vmax.f32 %v6608_v63, 0.0  ;;  %v6876_v62 = vld [vmem:[%s10022_s21 + $0x2c0] sm:$0xff] }
0x15a9   :  { %v6908_v63 = vld [vmem:[%s10022_s21 + $0x3c0] sm:$0xff] }
0x15aa   :  { %v6773_v7 = vmax.f32 %v6533_v8, 0.0  ;;  %v6775_v12 = vmax.f32 %v6610_v3, 0.0  ;;  %v6536_v57 = vpop.f32.mrf.mxu1  ;;  %v6613_v5 = vpop.f32.mrf.mxu0  ;;  %v6860_v6 = vld [vmem:[%s10022_s21 + $0x240] sm:$0xff]  ;;  %v6875_v8 = vld [vmem:[%s10022_s21 + $0x2b8] sm:$0xff] }
0x15ab   :  { %v6537_v55 = vadd.f32 %v6536_v57, %v6421_v16  ;;  %v6614_v18 = vadd.f32 %v6613_v5, %v6429_v56  ;;  %v6862_v16 = vld [vmem:[%s10022_s21 + $0x250] sm:$0xff]  ;;  %v6892_v2 = vld [vmem:[%s10022_s21 + $0x340] sm:$0xff]  ;;  %v6907_v3 = vld [vmem:[%s10022_s21 + $0x3b8] sm:$0xff] }
0x15ac   :  { %v6538_v0 = vpop.f32.mrf.mxu1  ;;  %v6615_v47 = vpop.f32.mrf.mxu0  ;;  %6987 = vmatprep.mubr.f32.mxu1 %v6773_v7  ;;  %7062 = vmatprep.mubr.f32.mxu0 %v6775_v12  ;;  %v6894_v56 = vld [vmem:[%s10022_s21 + $0x350] sm:$0xff]  ;;  %v6859_v7 = vld [vmem:[%s10022_s21 + $0x238] sm:$0xff] }
0x15ad   :  { %v6539_v15 = vadd.f32 %v6538_v0, %v6425_v50  ;;  %v6616_v19 = vadd.f32 %v6615_v47, %v6433_v44  ;;  %6988 = vmatmul.mubr.f32.vlgmr.msra.gmra.mxu1 %v6772_v13  ;;  %7063 = vmatmul.mubr.f32.vlgmr.msra.gmra.mxu0 %v6774_v4  ;;  %v6780_v34 = vmax.f32 %v6537_v55, 0.0  ;;  %v6782_v37 = vmax.f32 %v6614_v18, 0.0  ;;  %v6877_v50 = vld [vmem:[%s10022_s21 + $0x2c8] sm:$0xff]  ;;  %v6891_v12 = vld [vmem:[%s10022_s21 + $0x338] sm:$0xff]  ;;  %v6874_v57 = vld [vmem:[%s10022_s21 + $0x2b0] sm:$0xff] }
0x15ae   :  { %7951 = vmatpush3.msra.mxu1 %v6867_v9  ;;  %7989 = vmatpush3.msra.mxu0 %v6899_v14  ;;  %v6909_v44 = vld [vmem:[%s10022_s21 + $0x3c8] sm:$0xff]  ;;  %v6906_v5 = vld [vmem:[%s10022_s21 + $0x3b0] sm:$0xff]  ;;  %v6872_v47 = vld [vmem:[%s10022_s21 + $0x2a0] sm:$0xff] }
0x15af   :  { %v6781_v21 = vmax.f32 %v6539_v15, 0.0  ;;  %v6783_v22 = vmax.f32 %v6616_v19, 0.0  ;;  %7952 = vmatprep.subr.mxu1 %v6882_v11  ;;  %7990 = vmatprep.subr.mxu0 %v6914_v39  ;;  %v6858_v13 = vld [vmem:[%s10022_s21 + $0x230] sm:$0xff]  ;;  %v6873_v9 = vld [vmem:[%s10022_s21 + $0x2a8] sm:$0xff]  ;;  %v6904_v11 = vld [vmem:[%s10022_s21 + $0x3a0] sm:$0xff] }
0x15b0   :  { %v9869_v29 = vpop.f32.mrf.mxu1  ;;  %v9871_v30 = vpop.f32.mrf.mxu0  ;;  %7953 = vmatpush3.msra.mxu1 %v6866_v32  ;;  %7991 = vmatpush3.msra.mxu0 %v6898_v43  ;;  %v6890_v4 = vld [vmem:[%s10022_s21 + $0x330] sm:$0xff]  ;;  %v6905_v14 = vld [vmem:[%s10022_s21 + $0x3a8] sm:$0xff]  ;;  %v6856_v15 = vld [vmem:[%s10022_s21 + $0x220] sm:$0xff] }
0x15b1   :  { %6992 = vmatprep.mubr.f32.mxu1 %v6781_v21  ;;  %7067 = vmatprep.mubr.f32.mxu0 %v6783_v22  ;;  %v6857_v55 = vld [vmem:[%s10022_s21 + $0x228] sm:$0xff]  ;;  %v6888_v19 = vld [vmem:[%s10022_s21 + $0x320] sm:$0xff]  ;;  %v6871_v32 = vld [vmem:[%s10022_s21 + $0x298] sm:$0xff]  ;;  %v6437_v21 = vrot.slane %v9837_v42, %v2027_v35  ;;  %v6445_v22 = vrot.slane %v9837_v42, %v2035_v36 }
0x15b2   :  { %v6686_v38 = vpop.f32.mrf.mxu1  ;;  %v6763_v40 = vpop.f32.mrf.mxu0  ;;  %7954 = vmatprep.subr.mxu1 %v6881_v33  ;;  %7992 = vmatprep.subr.mxu0 %v6913_v26  ;;  %v6889_v0 = vld [vmem:[%s10022_s21 + $0x328] sm:$0xff]  ;;  %v6903_v43 = vld [vmem:[%s10022_s21 + $0x398] sm:$0xff]  ;;  %v6854_v35 = vld [vmem:[%s10022_s21 + $0x210] sm:$0xff] }
0x15b3   :  { %v6687_v48 = vadd.f32 %v6686_v38, %v9860_v23  ;;  %v6764_v46 = vadd.f32 %v6763_v40, %v9865_v24  ;;  %6993 = vmatmul.mubr.f32.gmra.mxu1 %v6780_v34  ;;  %7068 = vmatmul.mubr.f32.gmra.mxu0 %v6782_v37  ;;  %v6855_v33 = vld [vmem:[%s10022_s21 + $0x218] sm:$0xff]  ;;  %v6870_v34 = vld [vmem:[%s10022_s21 + $0x290] sm:$0xff]  ;;  %v6869_v36 = vld [vmem:[%s10022_s21 + $0x288] sm:$0xff]  ;;  %v6685_v38 = vadd.f32 %v9869_v29, %v6437_v21 }
0x15b4   :  { %7955 = vmatpush3.msra.mxu1 %v6865_v27  ;;  %7993 = vmatpush3.msra.mxu0 %v6897_v28  ;;  %v6690_v39 = vpop.f32.mrf.mxu1  ;;  %v6767_v18 = vpop.f32.mrf.mxu0  ;;  %v6887_v26 = vld [vmem:[%s10022_s21 + $0x318] sm:$0xff]  ;;  %v6902_v37 = vld [vmem:[%s10022_s21 + $0x390] sm:$0xff]  ;;  %v6901_v42 = vld [vmem:[%s10022_s21 + $0x388] sm:$0xff]  ;;  %v6762_v40 = vadd.f32 %v9871_v30, %v6445_v22 }
0x15b5   :  { %v6777_v51 = vmax.f32 %v6687_v48, 0.0  ;;  %v6779_v52 = vmax.f32 %v6764_v46, 0.0  ;;  %7956 = vmatprep.subr.mxu1 %v6880_v41  ;;  %7994 = vmatprep.subr.mxu0 %v6912_v45  ;;  %v6853_v41 = vld [vmem:[%s10022_s21 + $0x208] sm:$0xff]  ;;  %v6776_v29 = vmax.f32 %v6685_v38, 0.0 }
0x15b6   :  { %7957 = vmatpush3.msra.mxu1 %v6864_v17  ;;  %7995 = vmatpush3.msra.mxu0 %v6896_v31  ;;  %v6692_v27 = vpop.f32.mrf.mxu1  ;;  %v6769_v28 = vpop.f32.mrf.mxu0  ;;  %v6885_v45 = vld [vmem:[%s10022_s21 + $0x308] sm:$0xff]  ;;  %v6868_v17 = vld [vmem:[%s10022_s21 + $0x280] sm:$0xff]  ;;  %v6778_v30 = vmax.f32 %v6762_v40, 0.0 }
0x15b7   :  { %7958 = vmatprep.subr.mxu1 %v6879_v49  ;;  %7137 = vmatprep.mubr.f32.mxu1 %v6777_v51  ;;  %v6693_v48 = vadd.f32 %v6692_v27, %v9860_v23  ;;  %v6770_v46 = vadd.f32 %v6769_v28, %v9865_v24  ;;  %v6900_v31 = vld [vmem:[%s10022_s21 + $0x380] sm:$0xff] }
0x15b8   :  { %7996 = vmatprep.subr.mxu0 %v6911_v10  ;;  %7212 = vmatprep.mubr.f32.mxu0 %v6779_v52  ;;  %v6852_v49 = vld [vmem:[%s10022_s21 + $0x200] sm:$0xff]  ;;  %v6691_v52 = vadd.f32 %v6690_v39, %v6437_v21  ;;  %v6768_v10 = vadd.f32 %v6767_v18, %v6445_v22 }
0x15b9   :  { %7959 = vmatpush3.msra.mxu1 %v6863_v53  ;;  %7997 = vmatpush3.msra.mxu0 %v6895_v54  ;;  %v6884_v51 = vld [vmem:[%s10022_s21 + $0x300] sm:$0xff]  ;;  %v6785_v53 = vmax.f32 %v6693_v48, 0.0  ;;  %v6787_v23 = vmax.f32 %v6770_v46, 0.0 }
0x15ba   :  { %7960 = vmatprep.subr.mxu1 %v6878_v58  ;;  %7998 = vmatprep.subr.mxu0 %v6910_v59  ;;  %v6784_v24 = vmax.f32 %v6691_v52, 0.0  ;;  %v6786_v54 = vmax.f32 %v6768_v10, 0.0  ;;  %v7269_v48 = vld [vmem:[%s8913_s27] sm:$0xff] }
0x15bb   :  { %7961 = vmatpush3.msra.mxu1 %v6862_v16  ;;  %7999 = vmatpush3.msra.mxu0 %v6894_v56  ;;  %v7549_v52 = vld [vmem:[#allocation2] ss:$0 sm:$0xff] }
0x15bc   :  { %7962 = vmatprep.subr.mxu1 %v6877_v50  ;;  %8000 = vmatprep.subr.mxu0 %v6909_v44 }
0x15bd   :  { %7963 = vmatpush3.msra.mxu1 %v6861_v60  ;;  %8001 = vmatpush3.msra.mxu0 %v6893_v61  ;;  %v7548_v61 = vld [vmem:[%s10024_s29] ss:$0 sm:$0xff] }
0x15be   :  { %7964 = vmatprep.subr.mxu1 %v6876_v62  ;;  %8002 = vmatprep.subr.mxu0 %v6908_v63 }
0x15bf   :  { %7965 = vmatpush3.msra.mxu1 %v6860_v6  ;;  %8003 = vmatpush3.msra.mxu0 %v6892_v2 }
0x15c0   :  { %7966 = vmatprep.subr.mxu1 %v6875_v8  ;;  %8004 = vmatprep.subr.mxu0 %v6907_v3 }
0x15c1   :  { %7967 = vmatpush3.msra.mxu1 %v6859_v7  ;;  %8005 = vmatpush3.msra.mxu0 %v6891_v12 }
0x15c2   :  { %7968 = vmatprep.subr.mxu1 %v6874_v57  ;;  %8006 = vmatprep.subr.mxu0 %v6906_v5 }
0x15c3   :  { %7969 = vmatpush3.msra.mxu1 %v6858_v13  ;;  %8007 = vmatpush3.msra.mxu0 %v6890_v4 }
0x15c4   :  { %7970 = vmatprep.subr.mxu1 %v6873_v9  ;;  %8008 = vmatprep.subr.mxu0 %v6905_v14 }
0x15c5   :  { %7971 = vmatpush3.msra.mxu1 %v6857_v55  ;;  %8009 = vmatpush3.msra.mxu0 %v6889_v0 }
0x15c6   :  { %7972 = vmatprep.subr.mxu1 %v6872_v47  ;;  %8010 = vmatprep.subr.mxu0 %v6904_v11 }
0x15c7   :  { %7973 = vmatpush3.msra.mxu1 %v6856_v15  ;;  %8011 = vmatpush3.msra.mxu0 %v6888_v19 }
0x15c8   :  { %7974 = vmatprep.subr.mxu1 %v6871_v32  ;;  %8012 = vmatprep.subr.mxu0 %v6903_v43 }
0x15c9   :  { %7975 = vmatpush3.msra.mxu1 %v6855_v33  ;;  %8013 = vmatpush3.msra.mxu0 %v6887_v26 }
0x15ca   :  { %7976 = vmatprep.subr.mxu1 %v6870_v34  ;;  %8014 = vmatprep.subr.mxu0 %v6902_v37 }
0x15cb   :  { %7977 = vmatpush3.msra.mxu1 %v6854_v35  ;;  %8015 = vmatpush3.msra.mxu0 %v6886_v1 }
0x15cc   :  { %7978 = vmatprep.subr.mxu1 %v6869_v36  ;;  %8016 = vmatprep.subr.mxu0 %v6901_v42 }
0x15cd   :  { %7979 = vmatpush3.msra.mxu1 %v6853_v41  ;;  %8017 = vmatpush3.msra.mxu0 %v6885_v45  ;;  %v7271_v41 = vld [vmem:[%s8913_s27 + $0x10] sm:$0xff]  ;;  %v7270_v45 = vld [vmem:[%s8913_s27 + $0x8] sm:$0xff] }
0x15ce   :  { %7980 = vmatprep.subr.mxu1 %v6868_v17  ;;  %8018 = vmatprep.subr.mxu0 %v6900_v31 }
0x15cf   :  { %7981 = vmatpush3.msra.mxu1 %v6852_v49  ;;  %8019 = vmatpush3.msra.mxu0 %v6884_v51 }
0x15d0   :  { %7138 = vmatmul.mubr.f32.vlgmr.msra.gmra.mxu1 %v6776_v29  ;;  %7213 = vmatmul.mubr.f32.vlgmr.msra.gmra.mxu0 %v6778_v30 }
0x15d1   :  { %7142 = vmatprep.mubr.f32.mxu1 %v6785_v53  ;;  %7217 = vmatprep.mubr.f32.mxu0 %v6787_v23  ;;  %v7550_v53 = vld [vmem:[#allocation4] ss:$0 sm:$0xff] }
0x15d4   :  { %7143 = vmatmul.mubr.f32.gmra.mxu1 %v6784_v24  ;;  %7218 = vmatmul.mubr.f32.gmra.mxu0 %v6786_v54 }
0x166d   :  { %v7906_v58 = vpop.f32.mrf.mxu1  ;;  %v7944_v59 = vpop.f32.mrf.mxu0 }
0x166f   :  { %v7907_v16 = vpop.f32.mrf.mxu1  ;;  %v7945_v56 = vpop.f32.mrf.mxu0 }
0x1670   :  { %v7908_v60 = vadd.f32 %v7907_v16, %v7906_v58  ;;  %v7946_v7 = vadd.f32 %v7945_v56, %v7944_v59  ;;  %v7551_v56 = vld [vmem:[%s8918_s4] ss:$0 sm:$0xff] }
0x1672   :  { %v6990_v6 = vadd.f32 %v7908_v60, %v7548_v61 }
0x1673   :  { %v7909_v50 = vpop.f32.mrf.mxu1  ;;  %v7947_v44 = vpop.f32.mrf.mxu0 }
0x1674   :  { %v7065_v5 = vadd.f32 %v7946_v7, %v6990_v6 }
0x1675   :  { %v7910_v62 = vpop.f32.mrf.mxu1  ;;  %v7948_v63 = vpop.f32.mrf.mxu0 }
0x1676   :  { %v7911_v2 = vadd.f32 %v7910_v62, %v7909_v50  ;;  %v7949_v55 = vadd.f32 %v7948_v63, %v7947_v44 }
0x1678   :  { %v6995_v13 = vadd.f32 %v7911_v2, %v7548_v61 }
0x167a   :  { %v7070_v18 = vadd.f32 %v7949_v55, %v6995_v13 }
0x1690   :  { %v7982_v8 = vpop.f32.mrf.mxu1  ;;  %v8020_v3 = vpop.f32.mrf.mxu0 }
0x1692   :  { %v7983_v12 = vpop.f32.mrf.mxu1  ;;  %v8021_v57 = vpop.f32.mrf.mxu0 }
0x1693   :  { %v7984_v4 = vadd.f32 %v7983_v12, %v7982_v8  ;;  %v8022_v47 = vadd.f32 %v8021_v57, %v8020_v3 }
0x1694   :  { %v7985_v9 = vpop.f32.mrf.mxu1  ;;  %v8023_v14 = vpop.f32.mrf.mxu0 }
0x1695   :  { %v7140_v0 = vadd.f32 %v7984_v4, %v7065_v5 }
0x1696   :  { %v7986_v11 = vpop.f32.mrf.mxu1  ;;  %v8024_v39 = vpop.f32.mrf.mxu0 }
0x1697   :  { %v7215_v15 = vadd.f32 %v8022_v47, %v7140_v0  ;;  %v7987_v19 = vadd.f32 %v7986_v11, %v7985_v9  ;;  %v8025_v43 = vadd.f32 %v8024_v39, %v8023_v14 }
0x1699   :  { %v7145_v32 = vadd.f32 %v7987_v19, %v7070_v18  ;;  %v7223_v21 = vadd.f32 %v7215_v15, %v9730_v20 }
0x169b   :  { %v7220_v22 = vadd.f32 %v8025_v43, %v7145_v32  ;;  %v7225_v33 = vsel %vm229_vm0, %v7223_v21, 0.0 }
0x169c   :  { %7226 = vadd.xlane.f32.xlu1 %v7225_v33 }
0x169d   :  { %v7224_v26 = vadd.f32 %v7220_v22, %v9742_v25  ;;  %v7272_v25 = vld [vmem:[%s8913_s27 + $0x18] sm:$0xff] }
0x169e   :  { %8404 = vmatprep.subr.mxu1 %v7272_v25 }
0x169f   :  { %v7228_v34 = vsel %vm229_vm0, %v7224_v26, 0.0  ;;  %8405 = vmatpush3.msra.mxu1 %v7272_v25 }
0x16a0   :  { %7229 = vadd.xlane.f32.xlu0 %v7228_v34  ;;  %8406 = vmatprep.subr.mxu1 %v7271_v41 }
0x16a1   :  { %8407 = vmatpush3.msra.mxu1 %v7271_v41 }
0x16a2   :  { %8408 = vmatprep.subr.mxu1 %v7270_v45 }
0x16a3   :  { %8409 = vmatpush3.msra.mxu1 %v7270_v45 }
0x16a4   :  { %8410 = vmatprep.subr.mxu1 %v7269_v48 }
0x16a5   :  { %8411 = vmatpush3.msra.mxu1 %v7269_v48 }
0x1725   :  { %v7227_v37 = vpop.xlane.xlu1 %7226 }
0x1726   :  { %v7231_v27 = vmul.f32 0.03125, %v7227_v37 }
0x1728   :  { %v7233_v28 = vsub.f32 %v7223_v21, %v7231_v27 }
0x1729   :  { %v7230_v35 = vpop.xlane.xlu0 %7229 }
0x172a   :  { %v7232_v1 = vmul.f32 0.03125, %v7230_v35  ;;  %v7235_v36 = vmul.f32 %v7233_v28, %v7233_v28 }
0x172c   :  { %v7234_v20 = vsub.f32 %v7224_v26, %v7232_v1  ;;  %v7237_v42 = vsel %vm229_vm0, %v7235_v36, 0.0 }
0x172d   :  { %7238 = vadd.xlane.f32.xlu1 %v7237_v42 }
0x172e   :  { %v7236_v38 = vmul.f32 %v7234_v20, %v7234_v20 }
0x1730   :  { %v7240_v40 = vsel %vm229_vm0, %v7236_v38, 0.0 }
0x1731   :  { %7241 = vadd.xlane.f32.xlu0 %v7240_v40 }
0x17b6   :  { %v7239_v46 = vpop.xlane.xlu1 %7238 }
0x17b7   :  { %v7243_v17 = vmul.f32 0.03125, %v7239_v46 }
0x17b9   :  { %v7245_v31 = vadd.f32 1e-05, %v7243_v17 }
0x17ba   :  { %v7242_v49 = vpop.xlane.xlu0 %7241 }
0x17bb   :  { %8583 = vrsqrt.f32 %v7245_v31  ;;  %v7244_v51 = vmul.f32 0.03125, %v7242_v49 }
0x17bd   :  { %v7246_v29 = vadd.f32 1e-05, %v7244_v51 }
0x17bf   :  { %8585 = vrsqrt.f32 %v7246_v29 }
0x17c8   :  { %v8584_v30 = vpop.eup %8583 }
0x17c9   :  { %v7249_v10 = vmul.f32 %v8584_v30, %v7233_v28 }
0x17cb   :  { %v7258_v23 = vmul.f32 %v7549_v52, %v7249_v10 }
0x17cc   :  { %v8586_v24 = vpop.eup %8585 }
0x17cd   :  { %v7250_v54 = vmul.f32 %v8586_v24, %v7234_v20  ;;  %v7267_v58 = vadd.f32 %v7550_v53, %v7258_v23 }
0x17cf   :  { %v7259_v59 = vmul.f32 %v7549_v52, %v7250_v54  ;;  %8412 = vmatprep.mubr.msk.f32.mxu1 %vm229_vm0, %v7267_v58 }
0x17d1   :  { %v7268_v16 = vadd.f32 %v7550_v53, %v7259_v59 }
0x17d3   :  { %8413 = vmatmul.mubr.msk.f32.vlgmr.msra.gmra.mxu1 %vm229_vm0, %v7268_v16 }
0x1893   :  { %v8414_v50 = vpop.f32.mrf.mxu1 }
0x1894   :  { %v7358_v44 = vadd.f32 %v8414_v50, %v7551_v56 }
0x1895   :  { %v7352_v60 = vpop.f32.mrf.mxu1 }
0x1896   :  { %7362 = vst [vmem:[%s8923_s6 + $0x8] sm:$0xff] %v7358_v44  ;;  %v7353_v61 = vadd.f32 %v7551_v56, %v7352_v60 }
0x1898   :  { %7361 = vst [vmem:[%s8923_s6] sm:$0xff] %v7353_v61 }
0x1899   :  { %7367 = vsyncpa [#allocation3], 1 }
0x189a   :  { %7368 = vsyncpa [#allocation5], 1 }

</bundles_post_ra>
